<compile_context>
chip_gen: v5e
topology: v5e:2x2
jax: 0.10.0
libtpu: 0.0.40
codegen_flags: <defaults>
</compile_context>

<pallas_src>
import math
import jax
import jax.numpy as jnp
import numpy as np
from jax.experimental import pallas as pl
from jax.experimental.pallas import tpu as pltpu  # noqa: F401  (TPU backend assumed)

# ---------------- small synthetic config ----------------
N_DIMS = 8          # d_in
N_POSITIONS = 8     # n
N_EMBD = 32         # D
N_LAYER = 3         # number of tied-backbone applications
N_HEAD = 4
FREQ = 2
B = 2
T = FREQ * N_POSITIONS          # 16
BT = B * T                      # 32
HD = N_EMBD // N_HEAD           # 8
BLOCK_SIZE = FREQ * N_POSITIONS + 1
LN_EPS = 1e-5
HP = jax.lax.Precision.HIGHEST  # reference only

SLAB_W = 128                    # lane-dense width for both packed slabs

# ---- f32 slab row layout (biases / LN params / wpe / additive mask) ----
F_BIN, F_BQKV, F_BPRJ, F_BFC1, F_BFC2 = 0, 1, 2, 3, 4
F_LN1G, F_LN1B, F_LN2G, F_LN2B, F_LNFG, F_LNFB, F_BOUT = 5, 6, 7, 8, 9, 10, 11
F_WPE = 16                      # rows 16 .. 16+T-1
F_MASK = F_WPE + T              # rows 32 .. 32+BT-1
F_ROWS = F_MASK + BT            # 64

# ---- bf16 slab row layout (all weight matrices, lane-padded to 128) ----
R_WIN = 0                       # (d_in, D)
R_WQKV = R_WIN + N_DIMS         # (D, 3D)   Q columns pre-scaled by 1/sqrt(HD)
R_WPRJ = R_WQKV + N_EMBD        # (D, D)
R_WFC1 = R_WPRJ + N_EMBD        # (D, 4D)
R_WFC2 = R_WFC1 + N_EMBD        # (4D, D)
R_WOUT = R_WFC2 + 4 * N_EMBD    # (1, D)
W_ROWS = 240                    # padded


# ---------------- in-kernel helpers ----------------
def _ln(x, g, b):
    mu = jnp.mean(x, axis=-1, keepdims=True)
    var = jnp.mean((x - mu) ** 2, axis=-1, keepdims=True)
    return (x - mu) * jax.lax.rsqrt(var + LN_EPS) * g + b


def _gelu_tanh(x):
    # nanoGPT-style "new_gelu" (tanh approximation)
    return 0.5 * x * (1.0 + jnp.tanh(0.7978845608028654 * (x + 0.044715 * x * x * x)))


# ---------------- the single fused kernel ----------------
def _fused_kernel(zs_ref, fs_ref, ws_ref, out_ref):
    f32 = jnp.float32
    bf16 = jnp.bfloat16
    D = N_EMBD

    # ---- unpack the two packed parameter slabs (one DMA each; everything stays
    #      VMEM-resident across all tied-layer applications) ----
    b_in = fs_ref[F_BIN:F_BIN + 1, 0:D]
    b_qkv = fs_ref[F_BQKV:F_BQKV + 1, 0:3 * D]
    b_proj = fs_ref[F_BPRJ:F_BPRJ + 1, 0:D]
    b_fc1 = fs_ref[F_BFC1:F_BFC1 + 1, 0:4 * D]
    b_fc2 = fs_ref[F_BFC2:F_BFC2 + 1, 0:D]
    ln1g = fs_ref[F_LN1G:F_LN1G + 1, 0:D]
    ln1b = fs_ref[F_LN1B:F_LN1B + 1, 0:D]
    ln2g = fs_ref[F_LN2G:F_LN2G + 1, 0:D]
    ln2b = fs_ref[F_LN2B:F_LN2B + 1, 0:D]
    lnfg = fs_ref[F_LNFG:F_LNFG + 1, 0:D]
    lnfb = fs_ref[F_LNFB:F_LNFB + 1, 0:D]
    b_out = fs_ref[F_BOUT:F_BOUT + 1, 0:1]
    pos = fs_ref[F_WPE:F_WPE + T, 0:D]                 # (T, D)
    mask_bias = fs_ref[F_MASK:F_MASK + BT, 0:BT]       # (BT, BT) additive (causal & same-batch)

    w_in = ws_ref[R_WIN:R_WIN + N_DIMS, 0:D]           # (d_in, D)  bf16
    w_qkv = ws_ref[R_WQKV:R_WQKV + D, 0:3 * D]         # (D, 3D)    bf16 (Q cols pre-scaled)
    w_proj = ws_ref[R_WPRJ:R_WPRJ + D, 0:D]            # (D, D)     bf16
    w_fc1 = ws_ref[R_WFC1:R_WFC1 + D, 0:4 * D]         # (D, 4D)    bf16
    w_fc2 = ws_ref[R_WFC2:R_WFC2 + 4 * D, 0:D]         # (4D, D)    bf16
    w_out = ws_ref[R_WOUT:R_WOUT + 1, 0:D]             # (1, D)     bf16

    # positional rows replicated over batch ONCE (outside the layer loop)
    pos_bt = jnp.concatenate([pos] * B, axis=0)        # (BT, D)

    # ---- read_in: one (BT, d_in) @ (d_in, D) matmul ----
    emb = jnp.dot(zs_ref[...].astype(bf16), w_in, preferred_element_type=f32) + b_in

    def layer(_, x):
        # positional embedding is re-added on every tied application (GPT2Model call)
        h = x + pos_bt                                  # (BT, D)

        # ---------------- attention ----------------
        a = _ln(h, ln1g, ln1b).astype(bf16)             # (BT, D)
        # fused QKV: ONE (32,32)@(32,96) MXU op; 1/sqrt(HD) folded into the Q columns
        qkv = jnp.dot(a, w_qkv, preferred_element_type=f32) + b_qkv   # (BT, 3D)

        def split_heads(base):                          # -> (H, BT, HD)
            return jnp.stack(
                [qkv[:, base + i * HD: base + (i + 1) * HD] for i in range(N_HEAD)],
                axis=0)

        q = split_heads(0).astype(bf16)
        k = split_heads(D).astype(bf16)
        v = split_heads(2 * D).astype(bf16)

        # scores over all BT tokens at once; cross-batch pairs are masked out,
        # so heads are the only batched dim (4 MXU ops for QK^T, 4 for PV).
        s = jnp.einsum('hqd,hkd->hqk', q, k, preferred_element_type=f32)   # (H, BT, BT)
        s = s + mask_bias[None]
        s = s - jnp.max(s, axis=-1, keepdims=True)
        p = jnp.exp(s)
        p = p * pl.reciprocal(jnp.sum(p, axis=-1, keepdims=True), approx=True)

        o = jnp.einsum('hqk,hkd->hqd', p.astype(bf16), v,
                       preferred_element_type=f32)                          # (H, BT, HD)
        # concat heads back onto the lane dim -> single (32,32)@(32,32) out-projection
        o_cat = jnp.concatenate([o[i] for i in range(N_HEAD)], axis=-1).astype(bf16)
        attn = jnp.dot(o_cat, w_proj, preferred_element_type=f32) + b_proj
        h2 = h + attn

        # ---------------- MLP ----------------
        m = _ln(h2, ln2g, ln2b).astype(bf16)
        ff = jnp.dot(m, w_fc1, preferred_element_type=f32) + b_fc1
        # TODO(synk): on v6e/v7x the tanh-GELU could run in bf16 (bf16 EUP); kept f32 so
        # the same kernel stays optimal on v5e (no bf16 VPU/EUP).
        ff = _gelu_tanh(ff)
        ff2 = jnp.dot(ff.astype(bf16), w_fc2, preferred_element_type=f32) + b_fc2
        h3 = h2 + ff2

        # ---------------- final LN of the (single, tied) GPT2 block ----------------
        return _ln(h3, lnfg, lnfb)

    x_fin = jax.lax.fori_loop(0, N_LAYER, layer, emb, unroll=True)

    # ---- read_out for all tokens as one lane-dense row, padded to 128 lanes ----
    pred = jax.lax.dot_general(w_out, x_fin.astype(bf16), (((1,), (1,)), ((), ())),
                               preferred_element_type=f32) + b_out          # (1, BT)
    out_ref[...] = jnp.concatenate(
        [pred, jnp.zeros((1, SLAB_W - BT), f32)], axis=-1)


# ---------------- parameter packing (done once, outside the jitted forward) ----------------
def pack_params(p):
    f32, bf16 = jnp.float32, jnp.bfloat16
    D = N_EMBD
    scale = 1.0 / math.sqrt(HD)

    # fold the attention scale into the fused Q weight & bias columns
    qscale = jnp.concatenate(
        [jnp.full((1, D), scale, f32), jnp.ones((1, 2 * D), f32)], axis=1)
    w_qkv = p["w_qkv"] * qscale
    b_qkv = p["b_qkv"] * qscale

    def frow(v):
        v = jnp.asarray(v, f32).reshape(1, -1)
        return jnp.pad(v, ((0, 0), (0, SLAB_W - v.shape[1])))

    # causal AND same-batch additive mask, precomputed on the host
    idx = np.arange(BT)
    ok = (idx[:, None] // T == idx[None, :] // T) & (idx[:, None] % T >= idx[None, :] % T)
    mask_bias = np.where(ok, 0.0, -1e30).astype(np.float32)

    fslab = jnp.concatenate([
        frow(p["b_in"]), frow(b_qkv), frow(p["b_proj"]), frow(p["b_fc1"]),
        frow(p["b_fc2"]), frow(p["ln1_g"]), frow(p["ln1_b"]),
        frow(p["ln2_g"]), frow(p["ln2_b"]), frow(p["lnf_g"]), frow(p["lnf_b"]),
        frow(p["b_out"]),
        jnp.zeros((F_WPE - 12, SLAB_W), f32),
        jnp.pad(p["wpe"][:T].astype(f32), ((0, 0), (0, SLAB_W - D))),
        jnp.pad(jnp.asarray(mask_bias), ((0, 0), (0, SLAB_W - BT))),
    ], axis=0)
    assert fslab.shape == (F_ROWS, SLAB_W)

    def wblk(m):
        m = jnp.asarray(m, bf16)
        return jnp.pad(m, ((0, 0), (0, SLAB_W - m.shape[1])))

    wslab = jnp.concatenate([
        wblk(p["w_in"]),        # rows   0:8
        wblk(w_qkv),            # rows   8:40
        wblk(p["w_proj"]),      # rows  40:72
        wblk(p["w_fc1"]),       # rows  72:104
        wblk(p["w_fc2"]),       # rows 104:232
        wblk(p["w_out"].T),     # row  232
        jnp.zeros((W_ROWS - (R_WOUT + 1), SLAB_W), bf16),
    ], axis=0)
    assert wslab.shape == (W_ROWS, SLAB_W)
    return fslab, wslab


# ---------------- model wrapper (thin JAX glue: data prep only) ----------------
def combine(xs, ys):
    Bq, n, d = xs.shape
    ys_wide = jnp.concatenate(
        [ys[..., None], jnp.zeros((Bq, n, d - 1), xs.dtype)], axis=2)
    zs = jnp.stack([xs, ys_wide], axis=2).reshape(Bq, FREQ * n, d)
    return zs


@jax.jit
def model_forward(xs, ys, fslab, wslab):
    Bq, n, d = xs.shape
    zs2d = combine(xs, ys).reshape(Bq * FREQ * n, d)              # (BT, d_in)

    # Single grid-less invocation: 3 operands, whole arrays resident in VMEM,
    # no pipeline prologue / double-buffering.
    # TODO(synk): on v7x, when batch grows, add a leading "parallel" grid axis over
    # batch so the second TensorCore is not idle (moot at BT=32).
    out_row = pl.pallas_call(
        _fused_kernel,
        out_shape=jax.ShapeDtypeStruct((1, SLAB_W), jnp.float32),
    )(zs2d, fslab, wslab)

    # regression head: every 2nd token. out_row is a lane-dense (1, 128) tile; the
    # first B*T columns hold the predictions, the stride-2 pick is a free metadata op.
    return out_row[0, :Bq * FREQ * n].reshape(Bq, FREQ * n)[:, 0::FREQ]


# ---------------- pure-JAX f32 reference for validation ----------------
def ref_forward(xs, ys, p):
    Bq, n, d = xs.shape
    zs = combine(xs, ys)
    x = jnp.einsum("btd,de->bte", zs, p["w_in"], precision=HP) + p["b_in"][0]
    pos = p["wpe"][:FREQ * n]
    mask = jnp.tril(jnp.ones((FREQ * n, FREQ * n), bool))

    def ln_(z, g, b):
        mu = z.mean(-1, keepdims=True)
        var = ((z - mu) ** 2).mean(-1, keepdims=True)
        return (z - mu) * jax.lax.rsqrt(var + LN_EPS) * g[0] + b[0]

    for _ in range(N_LAYER):
        h = x + pos[None]
        a = ln_(h, p["ln1_g"], p["ln1_b"])
        qkv = jnp.einsum("btd,de->bte", a, p["w_qkv"], precision=HP) + p["b_qkv"][0]
        q, k, v = jnp.split(qkv, 3, axis=-1)
        q = q.reshape(Bq, FREQ * n, N_HEAD, HD)
        k = k.reshape(Bq, FREQ * n, N_HEAD, HD)
        v = v.reshape(Bq, FREQ * n, N_HEAD, HD)
        s = jnp.einsum("bqhd,bkhd->bhqk", q, k, precision=HP) / math.sqrt(HD)
        s = jnp.where(mask[None, None], s, -1e30)
        pr = jax.nn.softmax(s, axis=-1)
        o = jnp.einsum("bhqk,bkhd->bqhd", pr, v,
                       precision=HP).reshape(Bq, FREQ * n, N_EMBD)
        attn = jnp.einsum("btd,de->bte", o, p["w_proj"], precision=HP) + p["b_proj"][0]
        h2 = h + attn
        m = ln_(h2, p["ln2_g"], p["ln2_b"])
        ff = jnp.einsum("btd,de->bte", m, p["w_fc1"], precision=HP) + p["b_fc1"][0]
        ff = 0.5 * ff * (1.0 + jnp.tanh(0.7978845608028654 * (ff + 0.044715 * ff ** 3)))
        ff = jnp.einsum("btd,de->bte", ff, p["w_fc2"], precision=HP) + p["b_fc2"][0]
        x = ln_(h2 + ff, p["lnf_g"], p["lnf_b"])

    pred = jnp.einsum("btd,do->bto", x, p["w_out"], precision=HP) + p["b_out"][0]
    return pred[:, 0::FREQ, 0]


# ---------------- deterministic parameter init ----------------
def init_params(key):
    ks = jax.random.split(key, 24)
    std = 0.02
    f32 = jnp.float32

    def nrm(k, shape, s=std):
        return jax.random.normal(k, shape, f32) * s

    return {
        # read-in / read-out linears
        "w_in": nrm(ks[0], (N_DIMS, N_EMBD)),
        "b_in": nrm(ks[1], (1, N_EMBD), 0.01),
        "w_out": nrm(ks[2], (N_EMBD, 1)),
        "b_out": nrm(ks[3], (1, 1), 0.01),
        # positional embedding table (block_size rows, only first T used)
        "wpe": nrm(ks[4], (BLOCK_SIZE, N_EMBD)),
        # transformer block (single, tied)
        "ln1_g": jnp.ones((1, N_EMBD), f32),
        "ln1_b": nrm(ks[5], (1, N_EMBD), 0.01),
        "w_qkv": nrm(ks[6], (N_EMBD, 3 * N_EMBD)),
        "b_qkv": nrm(ks[7], (1, 3 * N_EMBD), 0.01),
        "w_proj": nrm(ks[8], (N_EMBD, N_EMBD)),
        "b_proj": nrm(ks[9], (1, N_EMBD), 0.01),
        "ln2_g": jnp.ones((1, N_EMBD), f32),
        "ln2_b": nrm(ks[10], (1, N_EMBD), 0.01),
        "w_fc1": nrm(ks[11], (N_EMBD, 4 * N_EMBD)),
        "b_fc1": nrm(ks[12], (1, 4 * N_EMBD), 0.01),
        "w_fc2": nrm(ks[13], (4 * N_EMBD, N_EMBD)),
        "b_fc2": nrm(ks[14], (1, N_EMBD), 0.01),
        "lnf_g": jnp.ones((1, N_EMBD), f32),
        "lnf_b": nrm(ks[15], (1, N_EMBD), 0.01),
    }


if __name__ == "__main__":
    key = jax.random.PRNGKey(0)
    pkey, xkey, ykey = jax.random.split(key, 3)
    params = init_params(pkey)
    fslab, wslab = pack_params(params)

    xs = jax.random.normal(xkey, (B, N_POSITIONS, N_DIMS), jnp.float32)
    ys = jax.random.normal(ykey, (B, N_POSITIONS), jnp.float32)

    y = model_forward(xs, ys, fslab, wslab)
    y = jax.block_until_ready(y)
    assert y.shape == (B, N_POSITIONS), y.shape

    y_ref = jax.block_until_ready(ref_forward(xs, ys, params))
    # Kernel runs matmuls with bf16 operands / f32 accumulation and uses the EUP
    # approximate reciprocal for the softmax denominator (per perf guidance); the
    # reference is full-f32 HIGHEST, hence the relaxed tolerance.
    np.testing.assert_allclose(np.asarray(y), np.asarray(y_ref), atol=2e-2, rtol=2e-2)

    print("KERNEL_OK")
</pallas_src>

<mosaic_0001>
module attributes {stable_mosaic.version = 11 : i64} {
  func.func @_fused_kernel(%arg0: memref<32x8xf32, #tpu.memory_space<vmem>>, %arg1: memref<64x128xf32, #tpu.memory_space<vmem>>, %arg2: memref<240x128xbf16, #tpu.memory_space<vmem>>, %arg3: memref<1x128xf32, #tpu.memory_space<vmem>>) attributes {dimension_semantics = [], scalar_prefetch = 0 : i64, scratch_operands = 0 : i64, tpu.core_type = #tpu.core_type<tc>} {
    %c0 = arith.constant 0 : index
    %c0_0 = arith.constant 0 : index
    %0 = vector.load %arg1[%c0, %c0_0] : memref<64x128xf32, #tpu.memory_space<vmem>>, vector<1x32xf32>
    %c1 = arith.constant 1 : index
    %c0_1 = arith.constant 0 : index
    %1 = vector.load %arg1[%c1, %c0_1] : memref<64x128xf32, #tpu.memory_space<vmem>>, vector<1x96xf32>
    %c2 = arith.constant 2 : index
    %c0_2 = arith.constant 0 : index
    %2 = vector.load %arg1[%c2, %c0_2] : memref<64x128xf32, #tpu.memory_space<vmem>>, vector<1x32xf32>
    %c3 = arith.constant 3 : index
    %c0_3 = arith.constant 0 : index
    %3 = vector.load %arg1[%c3, %c0_3] : memref<64x128xf32, #tpu.memory_space<vmem>>, vector<1x128xf32>
    %c4 = arith.constant 4 : index
    %c0_4 = arith.constant 0 : index
    %4 = vector.load %arg1[%c4, %c0_4] : memref<64x128xf32, #tpu.memory_space<vmem>>, vector<1x32xf32>
    %c5 = arith.constant 5 : index
    %c0_5 = arith.constant 0 : index
    %5 = vector.load %arg1[%c5, %c0_5] : memref<64x128xf32, #tpu.memory_space<vmem>>, vector<1x32xf32>
    %c6 = arith.constant 6 : index
    %c0_6 = arith.constant 0 : index
    %6 = vector.load %arg1[%c6, %c0_6] : memref<64x128xf32, #tpu.memory_space<vmem>>, vector<1x32xf32>
    %c7 = arith.constant 7 : index
    %c0_7 = arith.constant 0 : index
    %7 = vector.load %arg1[%c7, %c0_7] : memref<64x128xf32, #tpu.memory_space<vmem>>, vector<1x32xf32>
    %c8 = arith.constant 8 : index
    %c0_8 = arith.constant 0 : index
    %8 = vector.load %arg1[%c8, %c0_8] : memref<64x128xf32, #tpu.memory_space<vmem>>, vector<1x32xf32>
    %c9 = arith.constant 9 : index
    %c0_9 = arith.constant 0 : index
    %9 = vector.load %arg1[%c9, %c0_9] : memref<64x128xf32, #tpu.memory_space<vmem>>, vector<1x32xf32>
    %c10 = arith.constant 10 : index
    %c0_10 = arith.constant 0 : index
    %10 = vector.load %arg1[%c10, %c0_10] : memref<64x128xf32, #tpu.memory_space<vmem>>, vector<1x32xf32>
    %c11 = arith.constant 11 : index
    %c0_11 = arith.constant 0 : index
    %11 = vector.load %arg1[%c11, %c0_11] : memref<64x128xf32, #tpu.memory_space<vmem>>, vector<1x1xf32>
    %c16 = arith.constant 16 : index
    %c0_12 = arith.constant 0 : index
    %12 = vector.load %arg1[%c16, %c0_12] : memref<64x128xf32, #tpu.memory_space<vmem>>, vector<16x32xf32>
    %c32 = arith.constant 32 : index
    %c0_13 = arith.constant 0 : index
    %13 = vector.load %arg1[%c32, %c0_13] : memref<64x128xf32, #tpu.memory_space<vmem>>, vector<32x32xf32>
    %c0_14 = arith.constant 0 : index
    %c0_15 = arith.constant 0 : index
    %14 = vector.load %arg2[%c0_14, %c0_15] : memref<240x128xbf16, #tpu.memory_space<vmem>>, vector<8x32xbf16>
    %c8_16 = arith.constant 8 : index
    %c0_17 = arith.constant 0 : index
    %15 = vector.load %arg2[%c8_16, %c0_17] : memref<240x128xbf16, #tpu.memory_space<vmem>>, vector<32x96xbf16>
    %c40 = arith.constant 40 : index
    %c0_18 = arith.constant 0 : index
    %16 = vector.load %arg2[%c40, %c0_18] : memref<240x128xbf16, #tpu.memory_space<vmem>>, vector<32x32xbf16>
    %c72 = arith.constant 72 : index
    %c0_19 = arith.constant 0 : index
    %17 = vector.load %arg2[%c72, %c0_19] : memref<240x128xbf16, #tpu.memory_space<vmem>>, vector<32x128xbf16>
    %c104 = arith.constant 104 : index
    %c0_20 = arith.constant 0 : index
    %18 = vector.load %arg2[%c104, %c0_20] : memref<240x128xbf16, #tpu.memory_space<vmem>>, vector<128x32xbf16>
    %c232 = arith.constant 232 : index
    %c0_21 = arith.constant 0 : index
    %19 = vector.load %arg2[%c232, %c0_21] : memref<240x128xbf16, #tpu.memory_space<vmem>>, vector<1x32xbf16>
    %20 = tpu.concatenate %12, %12 in 0 : vector<16x32xf32>, vector<16x32xf32> -> vector<32x32xf32>
    %c0_22 = arith.constant 0 : index
    %c0_23 = arith.constant 0 : index
    %21 = vector.load %arg0[%c0_22, %c0_23] : memref<32x8xf32, #tpu.memory_space<vmem>>, vector<32x8xf32>
    %22 = arith.truncf %21 : vector<32x8xf32> to vector<32x8xbf16>
    %cst = arith.constant dense<0.000000e+00> : vector<32x32xf32>
    %23 = tpu.matmul %22, %14, %cst {dimension_numbers = #tpu.dot_dimension_numbers<[1], [0], [0], [1], [0, 0, 1, 1], [], []>} : vector<32x8xbf16>, vector<8x32xbf16>, vector<32x32xf32> -> vector<32x32xf32>
    %24 = vector.broadcast %0 : vector<1x32xf32> to vector<32x32xf32>
    %25 = arith.addf %23, %24 : vector<32x32xf32>
    %c0_i32 = arith.constant 0 : i32
    %26 = arith.addf %25, %20 : vector<32x32xf32>
    %cst_24 = arith.constant dense<0.000000e+00> : vector<32xf32>
    %27 = vector.multi_reduction <add>, %26, %cst_24 [1] : vector<32x32xf32> to vector<32xf32>
    %28 = vector.shape_cast %27 : vector<32xf32> to vector<32x1xf32>
    %cst_25 = arith.constant 3.200000e+01 : f32
    %29 = vector.broadcast %cst_25 : f32 to vector<32x1xf32>
    %30 = arith.divf %28, %29 : vector<32x1xf32>
    %31 = vector.broadcast %30 : vector<32x1xf32> to vector<32x32xf32>
    %32 = arith.subf %26, %31 : vector<32x32xf32>
    %33 = arith.mulf %32, %32 : vector<32x32xf32>
    %cst_26 = arith.constant dense<0.000000e+00> : vector<32xf32>
    %34 = vector.multi_reduction <add>, %33, %cst_26 [1] : vector<32x32xf32> to vector<32xf32>
    %35 = vector.shape_cast %34 : vector<32xf32> to vector<32x1xf32>
    %cst_27 = arith.constant 3.200000e+01 : f32
    %36 = vector.broadcast %cst_27 : f32 to vector<32x1xf32>
    %37 = arith.divf %35, %36 : vector<32x1xf32>
    %38 = vector.broadcast %30 : vector<32x1xf32> to vector<32x32xf32>
    %39 = arith.subf %26, %38 : vector<32x32xf32>
    %cst_28 = arith.constant 9.99999974E-6 : f32
    %40 = vector.broadcast %cst_28 : f32 to vector<32x1xf32>
    %41 = arith.addf %37, %40 : vector<32x1xf32>
    %42 = math.rsqrt %41 : vector<32x1xf32>
    %43 = vector.broadcast %42 : vector<32x1xf32> to vector<32x32xf32>
    %44 = arith.mulf %39, %43 : vector<32x32xf32>
    %45 = vector.broadcast %5 : vector<1x32xf32> to vector<32x32xf32>
    %46 = arith.mulf %44, %45 : vector<32x32xf32>
    %47 = vector.broadcast %6 : vector<1x32xf32> to vector<32x32xf32>
    %48 = arith.addf %46, %47 : vector<32x32xf32>
    %49 = arith.truncf %48 : vector<32x32xf32> to vector<32x32xbf16>
    %cst_29 = arith.constant dense<0.000000e+00> : vector<32x96xf32>
    %50 = tpu.matmul %49, %15, %cst_29 {dimension_numbers = #tpu.dot_dimension_numbers<[1], [0], [0], [1], [0, 0, 1, 1], [], []>} : vector<32x32xbf16>, vector<32x96xbf16>, vector<32x96xf32> -> vector<32x96xf32>
    %51 = vector.broadcast %1 : vector<1x96xf32> to vector<32x96xf32>
    %52 = arith.addf %50, %51 : vector<32x96xf32>
    %53 = vector.extract_strided_slice %52 {offsets = [0, 0], sizes = [32, 8], strides = [1, 1]} : vector<32x96xf32> to vector<32x8xf32>
    %54 = vector.extract_strided_slice %52 {offsets = [0, 8], sizes = [32, 8], strides = [1, 1]} : vector<32x96xf32> to vector<32x8xf32>
    %55 = vector.extract_strided_slice %52 {offsets = [0, 16], sizes = [32, 8], strides = [1, 1]} : vector<32x96xf32> to vector<32x8xf32>
    %56 = vector.extract_strided_slice %52 {offsets = [0, 24], sizes = [32, 8], strides = [1, 1]} : vector<32x96xf32> to vector<32x8xf32>
    %57 = vector.shape_cast %53 : vector<32x8xf32> to vector<1x32x8xf32>
    %58 = vector.shape_cast %54 : vector<32x8xf32> to vector<1x32x8xf32>
    %59 = vector.shape_cast %55 : vector<32x8xf32> to vector<1x32x8xf32>
    %60 = vector.shape_cast %56 : vector<32x8xf32> to vector<1x32x8xf32>
    %61 = tpu.concatenate %57, %58, %59, %60 in 0 : vector<1x32x8xf32>, vector<1x32x8xf32>, vector<1x32x8xf32>, vector<1x32x8xf32> -> vector<4x32x8xf32>
    %62 = arith.truncf %61 : vector<4x32x8xf32> to vector<4x32x8xbf16>
    %63 = vector.extract_strided_slice %52 {offsets = [0, 32], sizes = [32, 8], strides = [1, 1]} : vector<32x96xf32> to vector<32x8xf32>
    %64 = vector.extract_strided_slice %52 {offsets = [0, 40], sizes = [32, 8], strides = [1, 1]} : vector<32x96xf32> to vector<32x8xf32>
    %65 = vector.extract_strided_slice %52 {offsets = [0, 48], sizes = [32, 8], strides = [1, 1]} : vector<32x96xf32> to vector<32x8xf32>
    %66 = vector.extract_strided_slice %52 {offsets = [0, 56], sizes = [32, 8], strides = [1, 1]} : vector<32x96xf32> to vector<32x8xf32>
    %67 = vector.shape_cast %63 : vector<32x8xf32> to vector<1x32x8xf32>
    %68 = vector.shape_cast %64 : vector<32x8xf32> to vector<1x32x8xf32>
    %69 = vector.shape_cast %65 : vector<32x8xf32> to vector<1x32x8xf32>
    %70 = vector.shape_cast %66 : vector<32x8xf32> to vector<1x32x8xf32>
    %71 = tpu.concatenate %67, %68, %69, %70 in 0 : vector<1x32x8xf32>, vector<1x32x8xf32>, vector<1x32x8xf32>, vector<1x32x8xf32> -> vector<4x32x8xf32>
    %72 = arith.truncf %71 : vector<4x32x8xf32> to vector<4x32x8xbf16>
    %73 = vector.extract_strided_slice %52 {offsets = [0, 64], sizes = [32, 8], strides = [1, 1]} : vector<32x96xf32> to vector<32x8xf32>
    %74 = vector.extract_strided_slice %52 {offsets = [0, 72], sizes = [32, 8], strides = [1, 1]} : vector<32x96xf32> to vector<32x8xf32>
    %75 = vector.extract_strided_slice %52 {offsets = [0, 80], sizes = [32, 8], strides = [1, 1]} : vector<32x96xf32> to vector<32x8xf32>
    %76 = vector.extract_strided_slice %52 {offsets = [0, 88], sizes = [32, 8], strides = [1, 1]} : vector<32x96xf32> to vector<32x8xf32>
    %77 = vector.shape_cast %73 : vector<32x8xf32> to vector<1x32x8xf32>
    %78 = vector.shape_cast %74 : vector<32x8xf32> to vector<1x32x8xf32>
    %79 = vector.shape_cast %75 : vector<32x8xf32> to vector<1x32x8xf32>
    %80 = vector.shape_cast %76 : vector<32x8xf32> to vector<1x32x8xf32>
    %81 = tpu.concatenate %77, %78, %79, %80 in 0 : vector<1x32x8xf32>, vector<1x32x8xf32>, vector<1x32x8xf32>, vector<1x32x8xf32> -> vector<4x32x8xf32>
    %82 = arith.truncf %81 : vector<4x32x8xf32> to vector<4x32x8xbf16>
    "tpu.trace_start"() <{level = 10 : i32, message = "hqd,hkd->hqk"}> : () -> ()
    %cst_30 = arith.constant dense<0.000000e+00> : vector<4x32x32xf32>
    %83 = tpu.matmul %62, %72, %cst_30 {dimension_numbers = #tpu.dot_dimension_numbers<[2], [2], [1], [1], [0, 0, 0, 1, 1, 1], [0], [0]>} : vector<4x32x8xbf16>, vector<4x32x8xbf16>, vector<4x32x32xf32> -> vector<4x32x32xf32>
    "tpu.trace_stop"() : () -> ()
    %84 = vector.shape_cast %13 : vector<32x32xf32> to vector<1x32x32xf32>
    %85 = vector.broadcast %84 : vector<1x32x32xf32> to vector<4x32x32xf32>
    %86 = arith.addf %83, %85 : vector<4x32x32xf32>
    %cst_31 = arith.constant dense<0xFF800000> : vector<4x32xf32>
    %87 = vector.multi_reduction <maximumf>, %86, %cst_31 [2] : vector<4x32x32xf32> to vector<4x32xf32>
    %88 = vector.shape_cast %87 : vector<4x32xf32> to vector<4x32x1xf32>
    %89 = vector.broadcast %88 : vector<4x32x1xf32> to vector<4x32x32xf32>
    %90 = arith.subf %86, %89 : vector<4x32x32xf32>
    %91 = math.exp %90 : vector<4x32x32xf32>
    %cst_32 = arith.constant dense<0.000000e+00> : vector<4x32xf32>
    %92 = vector.multi_reduction <add>, %91, %cst_32 [2] : vector<4x32x32xf32> to vector<4x32xf32>
    %93 = vector.shape_cast %92 : vector<4x32xf32> to vector<4x32x1xf32>
    %94 = tpu.reciprocal %93 {approx = true} : vector<4x32x1xf32> -> vector<4x32x1xf32>
    %95 = vector.broadcast %94 : vector<4x32x1xf32> to vector<4x32x32xf32>
    %96 = arith.mulf %91, %95 : vector<4x32x32xf32>
    %97 = arith.truncf %96 : vector<4x32x32xf32> to vector<4x32x32xbf16>
    "tpu.trace_start"() <{level = 10 : i32, message = "hqk,hkd->hqd"}> : () -> ()
    %cst_33 = arith.constant dense<0.000000e+00> : vector<4x32x8xf32>
    %98 = tpu.matmul %97, %82, %cst_33 {dimension_numbers = #tpu.dot_dimension_numbers<[2], [1], [1], [2], [0, 0, 0, 1, 1, 2], [0], [0]>} : vector<4x32x32xbf16>, vector<4x32x8xbf16>, vector<4x32x8xf32> -> vector<4x32x8xf32>
    "tpu.trace_stop"() : () -> ()
    %99 = vector.extract_strided_slice %98 {offsets = [0, 0, 0], sizes = [1, 32, 8], strides = [1, 1, 1]} : vector<4x32x8xf32> to vector<1x32x8xf32>
    %100 = vector.shape_cast %99 : vector<1x32x8xf32> to vector<32x8xf32>
    %101 = vector.extract_strided_slice %98 {offsets = [1, 0, 0], sizes = [1, 32, 8], strides = [1, 1, 1]} : vector<4x32x8xf32> to vector<1x32x8xf32>
    %102 = vector.shape_cast %101 : vector<1x32x8xf32> to vector<32x8xf32>
    %103 = vector.extract_strided_slice %98 {offsets = [2, 0, 0], sizes = [1, 32, 8], strides = [1, 1, 1]} : vector<4x32x8xf32> to vector<1x32x8xf32>
    %104 = vector.shape_cast %103 : vector<1x32x8xf32> to vector<32x8xf32>
    %105 = vector.extract_strided_slice %98 {offsets = [3, 0, 0], sizes = [1, 32, 8], strides = [1, 1, 1]} : vector<4x32x8xf32> to vector<1x32x8xf32>
    %106 = vector.shape_cast %105 : vector<1x32x8xf32> to vector<32x8xf32>
    %107 = tpu.concatenate %100, %102, %104, %106 in 1 : vector<32x8xf32>, vector<32x8xf32>, vector<32x8xf32>, vector<32x8xf32> -> vector<32x32xf32>
    %108 = arith.truncf %107 : vector<32x32xf32> to vector<32x32xbf16>
    %cst_34 = arith.constant dense<0.000000e+00> : vector<32x32xf32>
    %109 = tpu.matmul %108, %16, %cst_34 {dimension_numbers = #tpu.dot_dimension_numbers<[1], [0], [0], [1], [0, 0, 1, 1], [], []>} : vector<32x32xbf16>, vector<32x32xbf16>, vector<32x32xf32> -> vector<32x32xf32>
    %110 = vector.broadcast %2 : vector<1x32xf32> to vector<32x32xf32>
    %111 = arith.addf %109, %110 : vector<32x32xf32>
    %112 = arith.addf %26, %111 : vector<32x32xf32>
    %cst_35 = arith.constant dense<0.000000e+00> : vector<32xf32>
    %113 = vector.multi_reduction <add>, %112, %cst_35 [1] : vector<32x32xf32> to vector<32xf32>
    %114 = vector.shape_cast %113 : vector<32xf32> to vector<32x1xf32>
    %cst_36 = arith.constant 3.200000e+01 : f32
    %115 = vector.broadcast %cst_36 : f32 to vector<32x1xf32>
    %116 = arith.divf %114, %115 : vector<32x1xf32>
    %117 = vector.broadcast %116 : vector<32x1xf32> to vector<32x32xf32>
    %118 = arith.subf %112, %117 : vector<32x32xf32>
    %119 = arith.mulf %118, %118 : vector<32x32xf32>
    %cst_37 = arith.constant dense<0.000000e+00> : vector<32xf32>
    %120 = vector.multi_reduction <add>, %119, %cst_37 [1] : vector<32x32xf32> to vector<32xf32>
    %121 = vector.shape_cast %120 : vector<32xf32> to vector<32x1xf32>
    %cst_38 = arith.constant 3.200000e+01 : f32
    %122 = vector.broadcast %cst_38 : f32 to vector<32x1xf32>
    %123 = arith.divf %121, %122 : vector<32x1xf32>
    %124 = vector.broadcast %116 : vector<32x1xf32> to vector<32x32xf32>
    %125 = arith.subf %112, %124 : vector<32x32xf32>
    %cst_39 = arith.constant 9.99999974E-6 : f32
    %126 = vector.broadcast %cst_39 : f32 to vector<32x1xf32>
    %127 = arith.addf %123, %126 : vector<32x1xf32>
    %128 = math.rsqrt %127 : vector<32x1xf32>
    %129 = vector.broadcast %128 : vector<32x1xf32> to vector<32x32xf32>
    %130 = arith.mulf %125, %129 : vector<32x32xf32>
    %131 = vector.broadcast %7 : vector<1x32xf32> to vector<32x32xf32>
    %132 = arith.mulf %130, %131 : vector<32x32xf32>
    %133 = vector.broadcast %8 : vector<1x32xf32> to vector<32x32xf32>
    %134 = arith.addf %132, %133 : vector<32x32xf32>
    %135 = arith.truncf %134 : vector<32x32xf32> to vector<32x32xbf16>
    %cst_40 = arith.constant dense<0.000000e+00> : vector<32x128xf32>
    %136 = tpu.matmul %135, %17, %cst_40 {dimension_numbers = #tpu.dot_dimension_numbers<[1], [0], [0], [1], [0, 0, 1, 1], [], []>} : vector<32x32xbf16>, vector<32x128xbf16>, vector<32x128xf32> -> vector<32x128xf32>
    %137 = vector.broadcast %3 : vector<1x128xf32> to vector<32x128xf32>
    %138 = arith.addf %136, %137 : vector<32x128xf32>
    %cst_41 = arith.constant 5.000000e-01 : f32
    %139 = vector.broadcast %cst_41 : f32 to vector<32x128xf32>
    %140 = arith.mulf %139, %138 : vector<32x128xf32>
    %cst_42 = arith.constant 4.471500e-02 : f32
    %141 = vector.broadcast %cst_42 : f32 to vector<32x128xf32>
    %142 = arith.mulf %141, %138 : vector<32x128xf32>
    %143 = arith.mulf %142, %138 : vector<32x128xf32>
    %144 = arith.mulf %143, %138 : vector<32x128xf32>
    %145 = arith.addf %138, %144 : vector<32x128xf32>
    %cst_43 = arith.constant 0.797884583 : f32
    %146 = vector.broadcast %cst_43 : f32 to vector<32x128xf32>
    %147 = arith.mulf %146, %145 : vector<32x128xf32>
    %148 = math.tanh %147 : vector<32x128xf32>
    %cst_44 = arith.constant 1.000000e+00 : f32
    %149 = vector.broadcast %cst_44 : f32 to vector<32x128xf32>
    %150 = arith.addf %149, %148 : vector<32x128xf32>
    %151 = arith.mulf %140, %150 : vector<32x128xf32>
    %152 = arith.truncf %151 : vector<32x128xf32> to vector<32x128xbf16>
    %cst_45 = arith.constant dense<0.000000e+00> : vector<32x32xf32>
    %153 = tpu.matmul %152, %18, %cst_45 {dimension_numbers = #tpu.dot_dimension_numbers<[1], [0], [0], [1], [0, 0, 1, 1], [], []>} : vector<32x128xbf16>, vector<128x32xbf16>, vector<32x32xf32> -> vector<32x32xf32>
    %154 = vector.broadcast %4 : vector<1x32xf32> to vector<32x32xf32>
    %155 = arith.addf %153, %154 : vector<32x32xf32>
    %156 = arith.addf %112, %155 : vector<32x32xf32>
    %cst_46 = arith.constant dense<0.000000e+00> : vector<32xf32>
    %157 = vector.multi_reduction <add>, %156, %cst_46 [1] : vector<32x32xf32> to vector<32xf32>
    %158 = vector.shape_cast %157 : vector<32xf32> to vector<32x1xf32>
    %cst_47 = arith.constant 3.200000e+01 : f32
    %159 = vector.broadcast %cst_47 : f32 to vector<32x1xf32>
    %160 = arith.divf %158, %159 : vector<32x1xf32>
    %161 = vector.broadcast %160 : vector<32x1xf32> to vector<32x32xf32>
    %162 = arith.subf %156, %161 : vector<32x32xf32>
    %163 = arith.mulf %162, %162 : vector<32x32xf32>
    %cst_48 = arith.constant dense<0.000000e+00> : vector<32xf32>
    %164 = vector.multi_reduction <add>, %163, %cst_48 [1] : vector<32x32xf32> to vector<32xf32>
    %165 = vector.shape_cast %164 : vector<32xf32> to vector<32x1xf32>
    %cst_49 = arith.constant 3.200000e+01 : f32
    %166 = vector.broadcast %cst_49 : f32 to vector<32x1xf32>
    %167 = arith.divf %165, %166 : vector<32x1xf32>
    %168 = vector.broadcast %160 : vector<32x1xf32> to vector<32x32xf32>
    %169 = arith.subf %156, %168 : vector<32x32xf32>
    %cst_50 = arith.constant 9.99999974E-6 : f32
    %170 = vector.broadcast %cst_50 : f32 to vector<32x1xf32>
    %171 = arith.addf %167, %170 : vector<32x1xf32>
    %172 = math.rsqrt %171 : vector<32x1xf32>
    %173 = vector.broadcast %172 : vector<32x1xf32> to vector<32x32xf32>
    %174 = arith.mulf %169, %173 : vector<32x32xf32>
    %175 = vector.broadcast %9 : vector<1x32xf32> to vector<32x32xf32>
    %176 = arith.mulf %174, %175 : vector<32x32xf32>
    %177 = vector.broadcast %10 : vector<1x32xf32> to vector<32x32xf32>
    %178 = arith.addf %176, %177 : vector<32x32xf32>
    %c1_i32 = arith.constant 1 : i32
    %179 = arith.addf %178, %20 : vector<32x32xf32>
    %cst_51 = arith.constant dense<0.000000e+00> : vector<32xf32>
    %180 = vector.multi_reduction <add>, %179, %cst_51 [1] : vector<32x32xf32> to vector<32xf32>
    %181 = vector.shape_cast %180 : vector<32xf32> to vector<32x1xf32>
    %cst_52 = arith.constant 3.200000e+01 : f32
    %182 = vector.broadcast %cst_52 : f32 to vector<32x1xf32>
    %183 = arith.divf %181, %182 : vector<32x1xf32>
    %184 = vector.broadcast %183 : vector<32x1xf32> to vector<32x32xf32>
    %185 = arith.subf %179, %184 : vector<32x32xf32>
    %186 = arith.mulf %185, %185 : vector<32x32xf32>
    %cst_53 = arith.constant dense<0.000000e+00> : vector<32xf32>
    %187 = vector.multi_reduction <add>, %186, %cst_53 [1] : vector<32x32xf32> to vector<32xf32>
    %188 = vector.shape_cast %187 : vector<32xf32> to vector<32x1xf32>
    %cst_54 = arith.constant 3.200000e+01 : f32
    %189 = vector.broadcast %cst_54 : f32 to vector<32x1xf32>
    %190 = arith.divf %188, %189 : vector<32x1xf32>
    %191 = vector.broadcast %183 : vector<32x1xf32> to vector<32x32xf32>
    %192 = arith.subf %179, %191 : vector<32x32xf32>
    %cst_55 = arith.constant 9.99999974E-6 : f32
    %193 = vector.broadcast %cst_55 : f32 to vector<32x1xf32>
    %194 = arith.addf %190, %193 : vector<32x1xf32>
    %195 = math.rsqrt %194 : vector<32x1xf32>
    %196 = vector.broadcast %195 : vector<32x1xf32> to vector<32x32xf32>
    %197 = arith.mulf %192, %196 : vector<32x32xf32>
    %198 = vector.broadcast %5 : vector<1x32xf32> to vector<32x32xf32>
    %199 = arith.mulf %197, %198 : vector<32x32xf32>
    %200 = vector.broadcast %6 : vector<1x32xf32> to vector<32x32xf32>
    %201 = arith.addf %199, %200 : vector<32x32xf32>
    %202 = arith.truncf %201 : vector<32x32xf32> to vector<32x32xbf16>
    %cst_56 = arith.constant dense<0.000000e+00> : vector<32x96xf32>
    %203 = tpu.matmul %202, %15, %cst_56 {dimension_numbers = #tpu.dot_dimension_numbers<[1], [0], [0], [1], [0, 0, 1, 1], [], []>} : vector<32x32xbf16>, vector<32x96xbf16>, vector<32x96xf32> -> vector<32x96xf32>
    %204 = vector.broadcast %1 : vector<1x96xf32> to vector<32x96xf32>
    %205 = arith.addf %203, %204 : vector<32x96xf32>
    %206 = vector.extract_strided_slice %205 {offsets = [0, 0], sizes = [32, 8], strides = [1, 1]} : vector<32x96xf32> to vector<32x8xf32>
    %207 = vector.extract_strided_slice %205 {offsets = [0, 8], sizes = [32, 8], strides = [1, 1]} : vector<32x96xf32> to vector<32x8xf32>
    %208 = vector.extract_strided_slice %205 {offsets = [0, 16], sizes = [32, 8], strides = [1, 1]} : vector<32x96xf32> to vector<32x8xf32>
    %209 = vector.extract_strided_slice %205 {offsets = [0, 24], sizes = [32, 8], strides = [1, 1]} : vector<32x96xf32> to vector<32x8xf32>
    %210 = vector.shape_cast %206 : vector<32x8xf32> to vector<1x32x8xf32>
    %211 = vector.shape_cast %207 : vector<32x8xf32> to vector<1x32x8xf32>
    %212 = vector.shape_cast %208 : vector<32x8xf32> to vector<1x32x8xf32>
    %213 = vector.shape_cast %209 : vector<32x8xf32> to vector<1x32x8xf32>
    %214 = tpu.concatenate %210, %211, %212, %213 in 0 : vector<1x32x8xf32>, vector<1x32x8xf32>, vector<1x32x8xf32>, vector<1x32x8xf32> -> vector<4x32x8xf32>
    %215 = arith.truncf %214 : vector<4x32x8xf32> to vector<4x32x8xbf16>
    %216 = vector.extract_strided_slice %205 {offsets = [0, 32], sizes = [32, 8], strides = [1, 1]} : vector<32x96xf32> to vector<32x8xf32>
    %217 = vector.extract_strided_slice %205 {offsets = [0, 40], sizes = [32, 8], strides = [1, 1]} : vector<32x96xf32> to vector<32x8xf32>
    %218 = vector.extract_strided_slice %205 {offsets = [0, 48], sizes = [32, 8], strides = [1, 1]} : vector<32x96xf32> to vector<32x8xf32>
    %219 = vector.extract_strided_slice %205 {offsets = [0, 56], sizes = [32, 8], strides = [1, 1]} : vector<32x96xf32> to vector<32x8xf32>
    %220 = vector.shape_cast %216 : vector<32x8xf32> to vector<1x32x8xf32>
    %221 = vector.shape_cast %217 : vector<32x8xf32> to vector<1x32x8xf32>
    %222 = vector.shape_cast %218 : vector<32x8xf32> to vector<1x32x8xf32>
    %223 = vector.shape_cast %219 : vector<32x8xf32> to vector<1x32x8xf32>
    %224 = tpu.concatenate %220, %221, %222, %223 in 0 : vector<1x32x8xf32>, vector<1x32x8xf32>, vector<1x32x8xf32>, vector<1x32x8xf32> -> vector<4x32x8xf32>
    %225 = arith.truncf %224 : vector<4x32x8xf32> to vector<4x32x8xbf16>
    %226 = vector.extract_strided_slice %205 {offsets = [0, 64], sizes = [32, 8], strides = [1, 1]} : vector<32x96xf32> to vector<32x8xf32>
    %227 = vector.extract_strided_slice %205 {offsets = [0, 72], sizes = [32, 8], strides = [1, 1]} : vector<32x96xf32> to vector<32x8xf32>
    %228 = vector.extract_strided_slice %205 {offsets = [0, 80], sizes = [32, 8], strides = [1, 1]} : vector<32x96xf32> to vector<32x8xf32>
    %229 = vector.extract_strided_slice %205 {offsets = [0, 88], sizes = [32, 8], strides = [1, 1]} : vector<32x96xf32> to vector<32x8xf32>
    %230 = vector.shape_cast %226 : vector<32x8xf32> to vector<1x32x8xf32>
    %231 = vector.shape_cast %227 : vector<32x8xf32> to vector<1x32x8xf32>
    %232 = vector.shape_cast %228 : vector<32x8xf32> to vector<1x32x8xf32>
    %233 = vector.shape_cast %229 : vector<32x8xf32> to vector<1x32x8xf32>
    %234 = tpu.concatenate %230, %231, %232, %233 in 0 : vector<1x32x8xf32>, vector<1x32x8xf32>, vector<1x32x8xf32>, vector<1x32x8xf32> -> vector<4x32x8xf32>
    %235 = arith.truncf %234 : vector<4x32x8xf32> to vector<4x32x8xbf16>
    "tpu.trace_start"() <{level = 10 : i32, message = "hqd,hkd->hqk"}> : () -> ()
    %cst_57 = arith.constant dense<0.000000e+00> : vector<4x32x32xf32>
    %236 = tpu.matmul %215, %225, %cst_57 {dimension_numbers = #tpu.dot_dimension_numbers<[2], [2], [1], [1], [0, 0, 0, 1, 1, 1], [0], [0]>} : vector<4x32x8xbf16>, vector<4x32x8xbf16>, vector<4x32x32xf32> -> vector<4x32x32xf32>
    "tpu.trace_stop"() : () -> ()
    %237 = vector.shape_cast %13 : vector<32x32xf32> to vector<1x32x32xf32>
    %238 = vector.broadcast %237 : vector<1x32x32xf32> to vector<4x32x32xf32>
    %239 = arith.addf %236, %238 : vector<4x32x32xf32>
    %cst_58 = arith.constant dense<0xFF800000> : vector<4x32xf32>
    %240 = vector.multi_reduction <maximumf>, %239, %cst_58 [2] : vector<4x32x32xf32> to vector<4x32xf32>
    %241 = vector.shape_cast %240 : vector<4x32xf32> to vector<4x32x1xf32>
    %242 = vector.broadcast %241 : vector<4x32x1xf32> to vector<4x32x32xf32>
    %243 = arith.subf %239, %242 : vector<4x32x32xf32>
    %244 = math.exp %243 : vector<4x32x32xf32>
    %cst_59 = arith.constant dense<0.000000e+00> : vector<4x32xf32>
    %245 = vector.multi_reduction <add>, %244, %cst_59 [2] : vector<4x32x32xf32> to vector<4x32xf32>
    %246 = vector.shape_cast %245 : vector<4x32xf32> to vector<4x32x1xf32>
    %247 = tpu.reciprocal %246 {approx = true} : vector<4x32x1xf32> -> vector<4x32x1xf32>
    %248 = vector.broadcast %247 : vector<4x32x1xf32> to vector<4x32x32xf32>
    %249 = arith.mulf %244, %248 : vector<4x32x32xf32>
    %250 = arith.truncf %249 : vector<4x32x32xf32> to vector<4x32x32xbf16>
    "tpu.trace_start"() <{level = 10 : i32, message = "hqk,hkd->hqd"}> : () -> ()
    %cst_60 = arith.constant dense<0.000000e+00> : vector<4x32x8xf32>
    %251 = tpu.matmul %250, %235, %cst_60 {dimension_numbers = #tpu.dot_dimension_numbers<[2], [1], [1], [2], [0, 0, 0, 1, 1, 2], [0], [0]>} : vector<4x32x32xbf16>, vector<4x32x8xbf16>, vector<4x32x8xf32> -> vector<4x32x8xf32>
    "tpu.trace_stop"() : () -> ()
    %252 = vector.extract_strided_slice %251 {offsets = [0, 0, 0], sizes = [1, 32, 8], strides = [1, 1, 1]} : vector<4x32x8xf32> to vector<1x32x8xf32>
    %253 = vector.shape_cast %252 : vector<1x32x8xf32> to vector<32x8xf32>
    %254 = vector.extract_strided_slice %251 {offsets = [1, 0, 0], sizes = [1, 32, 8], strides = [1, 1, 1]} : vector<4x32x8xf32> to vector<1x32x8xf32>
    %255 = vector.shape_cast %254 : vector<1x32x8xf32> to vector<32x8xf32>
    %256 = vector.extract_strided_slice %251 {offsets = [2, 0, 0], sizes = [1, 32, 8], strides = [1, 1, 1]} : vector<4x32x8xf32> to vector<1x32x8xf32>
    %257 = vector.shape_cast %256 : vector<1x32x8xf32> to vector<32x8xf32>
    %258 = vector.extract_strided_slice %251 {offsets = [3, 0, 0], sizes = [1, 32, 8], strides = [1, 1, 1]} : vector<4x32x8xf32> to vector<1x32x8xf32>
    %259 = vector.shape_cast %258 : vector<1x32x8xf32> to vector<32x8xf32>
    %260 = tpu.concatenate %253, %255, %257, %259 in 1 : vector<32x8xf32>, vector<32x8xf32>, vector<32x8xf32>, vector<32x8xf32> -> vector<32x32xf32>
    %261 = arith.truncf %260 : vector<32x32xf32> to vector<32x32xbf16>
    %cst_61 = arith.constant dense<0.000000e+00> : vector<32x32xf32>
    %262 = tpu.matmul %261, %16, %cst_61 {dimension_numbers = #tpu.dot_dimension_numbers<[1], [0], [0], [1], [0, 0, 1, 1], [], []>} : vector<32x32xbf16>, vector<32x32xbf16>, vector<32x32xf32> -> vector<32x32xf32>
    %263 = vector.broadcast %2 : vector<1x32xf32> to vector<32x32xf32>
    %264 = arith.addf %262, %263 : vector<32x32xf32>
    %265 = arith.addf %179, %264 : vector<32x32xf32>
    %cst_62 = arith.constant dense<0.000000e+00> : vector<32xf32>
    %266 = vector.multi_reduction <add>, %265, %cst_62 [1] : vector<32x32xf32> to vector<32xf32>
    %267 = vector.shape_cast %266 : vector<32xf32> to vector<32x1xf32>
    %cst_63 = arith.constant 3.200000e+01 : f32
    %268 = vector.broadcast %cst_63 : f32 to vector<32x1xf32>
    %269 = arith.divf %267, %268 : vector<32x1xf32>
    %270 = vector.broadcast %269 : vector<32x1xf32> to vector<32x32xf32>
    %271 = arith.subf %265, %270 : vector<32x32xf32>
    %272 = arith.mulf %271, %271 : vector<32x32xf32>
    %cst_64 = arith.constant dense<0.000000e+00> : vector<32xf32>
    %273 = vector.multi_reduction <add>, %272, %cst_64 [1] : vector<32x32xf32> to vector<32xf32>
    %274 = vector.shape_cast %273 : vector<32xf32> to vector<32x1xf32>
    %cst_65 = arith.constant 3.200000e+01 : f32
    %275 = vector.broadcast %cst_65 : f32 to vector<32x1xf32>
    %276 = arith.divf %274, %275 : vector<32x1xf32>
    %277 = vector.broadcast %269 : vector<32x1xf32> to vector<32x32xf32>
    %278 = arith.subf %265, %277 : vector<32x32xf32>
    %cst_66 = arith.constant 9.99999974E-6 : f32
    %279 = vector.broadcast %cst_66 : f32 to vector<32x1xf32>
    %280 = arith.addf %276, %279 : vector<32x1xf32>
    %281 = math.rsqrt %280 : vector<32x1xf32>
    %282 = vector.broadcast %281 : vector<32x1xf32> to vector<32x32xf32>
    %283 = arith.mulf %278, %282 : vector<32x32xf32>
    %284 = vector.broadcast %7 : vector<1x32xf32> to vector<32x32xf32>
    %285 = arith.mulf %283, %284 : vector<32x32xf32>
    %286 = vector.broadcast %8 : vector<1x32xf32> to vector<32x32xf32>
    %287 = arith.addf %285, %286 : vector<32x32xf32>
    %288 = arith.truncf %287 : vector<32x32xf32> to vector<32x32xbf16>
    %cst_67 = arith.constant dense<0.000000e+00> : vector<32x128xf32>
    %289 = tpu.matmul %288, %17, %cst_67 {dimension_numbers = #tpu.dot_dimension_numbers<[1], [0], [0], [1], [0, 0, 1, 1], [], []>} : vector<32x32xbf16>, vector<32x128xbf16>, vector<32x128xf32> -> vector<32x128xf32>
    %290 = vector.broadcast %3 : vector<1x128xf32> to vector<32x128xf32>
    %291 = arith.addf %289, %290 : vector<32x128xf32>
    %cst_68 = arith.constant 5.000000e-01 : f32
    %292 = vector.broadcast %cst_68 : f32 to vector<32x128xf32>
    %293 = arith.mulf %292, %291 : vector<32x128xf32>
    %cst_69 = arith.constant 4.471500e-02 : f32
    %294 = vector.broadcast %cst_69 : f32 to vector<32x128xf32>
    %295 = arith.mulf %294, %291 : vector<32x128xf32>
    %296 = arith.mulf %295, %291 : vector<32x128xf32>
    %297 = arith.mulf %296, %291 : vector<32x128xf32>
    %298 = arith.addf %291, %297 : vector<32x128xf32>
    %cst_70 = arith.constant 0.797884583 : f32
    %299 = vector.broadcast %cst_70 : f32 to vector<32x128xf32>
    %300 = arith.mulf %299, %298 : vector<32x128xf32>
    %301 = math.tanh %300 : vector<32x128xf32>
    %cst_71 = arith.constant 1.000000e+00 : f32
    %302 = vector.broadcast %cst_71 : f32 to vector<32x128xf32>
    %303 = arith.addf %302, %301 : vector<32x128xf32>
    %304 = arith.mulf %293, %303 : vector<32x128xf32>
    %305 = arith.truncf %304 : vector<32x128xf32> to vector<32x128xbf16>
    %cst_72 = arith.constant dense<0.000000e+00> : vector<32x32xf32>
    %306 = tpu.matmul %305, %18, %cst_72 {dimension_numbers = #tpu.dot_dimension_numbers<[1], [0], [0], [1], [0, 0, 1, 1], [], []>} : vector<32x128xbf16>, vector<128x32xbf16>, vector<32x32xf32> -> vector<32x32xf32>
    %307 = vector.broadcast %4 : vector<1x32xf32> to vector<32x32xf32>
    %308 = arith.addf %306, %307 : vector<32x32xf32>
    %309 = arith.addf %265, %308 : vector<32x32xf32>
    %cst_73 = arith.constant dense<0.000000e+00> : vector<32xf32>
    %310 = vector.multi_reduction <add>, %309, %cst_73 [1] : vector<32x32xf32> to vector<32xf32>
    %311 = vector.shape_cast %310 : vector<32xf32> to vector<32x1xf32>
    %cst_74 = arith.constant 3.200000e+01 : f32
    %312 = vector.broadcast %cst_74 : f32 to vector<32x1xf32>
    %313 = arith.divf %311, %312 : vector<32x1xf32>
    %314 = vector.broadcast %313 : vector<32x1xf32> to vector<32x32xf32>
    %315 = arith.subf %309, %314 : vector<32x32xf32>
    %316 = arith.mulf %315, %315 : vector<32x32xf32>
    %cst_75 = arith.constant dense<0.000000e+00> : vector<32xf32>
    %317 = vector.multi_reduction <add>, %316, %cst_75 [1] : vector<32x32xf32> to vector<32xf32>
    %318 = vector.shape_cast %317 : vector<32xf32> to vector<32x1xf32>
    %cst_76 = arith.constant 3.200000e+01 : f32
    %319 = vector.broadcast %cst_76 : f32 to vector<32x1xf32>
    %320 = arith.divf %318, %319 : vector<32x1xf32>
    %321 = vector.broadcast %313 : vector<32x1xf32> to vector<32x32xf32>
    %322 = arith.subf %309, %321 : vector<32x32xf32>
    %cst_77 = arith.constant 9.99999974E-6 : f32
    %323 = vector.broadcast %cst_77 : f32 to vector<32x1xf32>
    %324 = arith.addf %320, %323 : vector<32x1xf32>
    %325 = math.rsqrt %324 : vector<32x1xf32>
    %326 = vector.broadcast %325 : vector<32x1xf32> to vector<32x32xf32>
    %327 = arith.mulf %322, %326 : vector<32x32xf32>
    %328 = vector.broadcast %9 : vector<1x32xf32> to vector<32x32xf32>
    %329 = arith.mulf %327, %328 : vector<32x32xf32>
    %330 = vector.broadcast %10 : vector<1x32xf32> to vector<32x32xf32>
    %331 = arith.addf %329, %330 : vector<32x32xf32>
    %c2_i32 = arith.constant 2 : i32
    %332 = arith.addf %331, %20 : vector<32x32xf32>
    %cst_78 = arith.constant dense<0.000000e+00> : vector<32xf32>
    %333 = vector.multi_reduction <add>, %332, %cst_78 [1] : vector<32x32xf32> to vector<32xf32>
    %334 = vector.shape_cast %333 : vector<32xf32> to vector<32x1xf32>
    %cst_79 = arith.constant 3.200000e+01 : f32
    %335 = vector.broadcast %cst_79 : f32 to vector<32x1xf32>
    %336 = arith.divf %334, %335 : vector<32x1xf32>
    %337 = vector.broadcast %336 : vector<32x1xf32> to vector<32x32xf32>
    %338 = arith.subf %332, %337 : vector<32x32xf32>
    %339 = arith.mulf %338, %338 : vector<32x32xf32>
    %cst_80 = arith.constant dense<0.000000e+00> : vector<32xf32>
    %340 = vector.multi_reduction <add>, %339, %cst_80 [1] : vector<32x32xf32> to vector<32xf32>
    %341 = vector.shape_cast %340 : vector<32xf32> to vector<32x1xf32>
    %cst_81 = arith.constant 3.200000e+01 : f32
    %342 = vector.broadcast %cst_81 : f32 to vector<32x1xf32>
    %343 = arith.divf %341, %342 : vector<32x1xf32>
    %344 = vector.broadcast %336 : vector<32x1xf32> to vector<32x32xf32>
    %345 = arith.subf %332, %344 : vector<32x32xf32>
    %cst_82 = arith.constant 9.99999974E-6 : f32
    %346 = vector.broadcast %cst_82 : f32 to vector<32x1xf32>
    %347 = arith.addf %343, %346 : vector<32x1xf32>
    %348 = math.rsqrt %347 : vector<32x1xf32>
    %349 = vector.broadcast %348 : vector<32x1xf32> to vector<32x32xf32>
    %350 = arith.mulf %345, %349 : vector<32x32xf32>
    %351 = vector.broadcast %5 : vector<1x32xf32> to vector<32x32xf32>
    %352 = arith.mulf %350, %351 : vector<32x32xf32>
    %353 = vector.broadcast %6 : vector<1x32xf32> to vector<32x32xf32>
    %354 = arith.addf %352, %353 : vector<32x32xf32>
    %355 = arith.truncf %354 : vector<32x32xf32> to vector<32x32xbf16>
    %cst_83 = arith.constant dense<0.000000e+00> : vector<32x96xf32>
    %356 = tpu.matmul %355, %15, %cst_83 {dimension_numbers = #tpu.dot_dimension_numbers<[1], [0], [0], [1], [0, 0, 1, 1], [], []>} : vector<32x32xbf16>, vector<32x96xbf16>, vector<32x96xf32> -> vector<32x96xf32>
    %357 = vector.broadcast %1 : vector<1x96xf32> to vector<32x96xf32>
    %358 = arith.addf %356, %357 : vector<32x96xf32>
    %359 = vector.extract_strided_slice %358 {offsets = [0, 0], sizes = [32, 8], strides = [1, 1]} : vector<32x96xf32> to vector<32x8xf32>
    %360 = vector.extract_strided_slice %358 {offsets = [0, 8], sizes = [32, 8], strides = [1, 1]} : vector<32x96xf32> to vector<32x8xf32>
    %361 = vector.extract_strided_slice %358 {offsets = [0, 16], sizes = [32, 8], strides = [1, 1]} : vector<32x96xf32> to vector<32x8xf32>
    %362 = vector.extract_strided_slice %358 {offsets = [0, 24], sizes = [32, 8], strides = [1, 1]} : vector<32x96xf32> to vector<32x8xf32>
    %363 = vector.shape_cast %359 : vector<32x8xf32> to vector<1x32x8xf32>
    %364 = vector.shape_cast %360 : vector<32x8xf32> to vector<1x32x8xf32>
    %365 = vector.shape_cast %361 : vector<32x8xf32> to vector<1x32x8xf32>
    %366 = vector.shape_cast %362 : vector<32x8xf32> to vector<1x32x8xf32>
    %367 = tpu.concatenate %363, %364, %365, %366 in 0 : vector<1x32x8xf32>, vector<1x32x8xf32>, vector<1x32x8xf32>, vector<1x32x8xf32> -> vector<4x32x8xf32>
    %368 = arith.truncf %367 : vector<4x32x8xf32> to vector<4x32x8xbf16>
    %369 = vector.extract_strided_slice %358 {offsets = [0, 32], sizes = [32, 8], strides = [1, 1]} : vector<32x96xf32> to vector<32x8xf32>
    %370 = vector.extract_strided_slice %358 {offsets = [0, 40], sizes = [32, 8], strides = [1, 1]} : vector<32x96xf32> to vector<32x8xf32>
    %371 = vector.extract_strided_slice %358 {offsets = [0, 48], sizes = [32, 8], strides = [1, 1]} : vector<32x96xf32> to vector<32x8xf32>
    %372 = vector.extract_strided_slice %358 {offsets = [0, 56], sizes = [32, 8], strides = [1, 1]} : vector<32x96xf32> to vector<32x8xf32>
    %373 = vector.shape_cast %369 : vector<32x8xf32> to vector<1x32x8xf32>
    %374 = vector.shape_cast %370 : vector<32x8xf32> to vector<1x32x8xf32>
    %375 = vector.shape_cast %371 : vector<32x8xf32> to vector<1x32x8xf32>
    %376 = vector.shape_cast %372 : vector<32x8xf32> to vector<1x32x8xf32>
    %377 = tpu.concatenate %373, %374, %375, %376 in 0 : vector<1x32x8xf32>, vector<1x32x8xf32>, vector<1x32x8xf32>, vector<1x32x8xf32> -> vector<4x32x8xf32>
    %378 = arith.truncf %377 : vector<4x32x8xf32> to vector<4x32x8xbf16>
    %379 = vector.extract_strided_slice %358 {offsets = [0, 64], sizes = [32, 8], strides = [1, 1]} : vector<32x96xf32> to vector<32x8xf32>
    %380 = vector.extract_strided_slice %358 {offsets = [0, 72], sizes = [32, 8], strides = [1, 1]} : vector<32x96xf32> to vector<32x8xf32>
    %381 = vector.extract_strided_slice %358 {offsets = [0, 80], sizes = [32, 8], strides = [1, 1]} : vector<32x96xf32> to vector<32x8xf32>
    %382 = vector.extract_strided_slice %358 {offsets = [0, 88], sizes = [32, 8], strides = [1, 1]} : vector<32x96xf32> to vector<32x8xf32>
    %383 = vector.shape_cast %379 : vector<32x8xf32> to vector<1x32x8xf32>
    %384 = vector.shape_cast %380 : vector<32x8xf32> to vector<1x32x8xf32>
    %385 = vector.shape_cast %381 : vector<32x8xf32> to vector<1x32x8xf32>
    %386 = vector.shape_cast %382 : vector<32x8xf32> to vector<1x32x8xf32>
    %387 = tpu.concatenate %383, %384, %385, %386 in 0 : vector<1x32x8xf32>, vector<1x32x8xf32>, vector<1x32x8xf32>, vector<1x32x8xf32> -> vector<4x32x8xf32>
    %388 = arith.truncf %387 : vector<4x32x8xf32> to vector<4x32x8xbf16>
    "tpu.trace_start"() <{level = 10 : i32, message = "hqd,hkd->hqk"}> : () -> ()
    %cst_84 = arith.constant dense<0.000000e+00> : vector<4x32x32xf32>
    %389 = tpu.matmul %368, %378, %cst_84 {dimension_numbers = #tpu.dot_dimension_numbers<[2], [2], [1], [1], [0, 0, 0, 1, 1, 1], [0], [0]>} : vector<4x32x8xbf16>, vector<4x32x8xbf16>, vector<4x32x32xf32> -> vector<4x32x32xf32>
    "tpu.trace_stop"() : () -> ()
    %390 = vector.shape_cast %13 : vector<32x32xf32> to vector<1x32x32xf32>
    %391 = vector.broadcast %390 : vector<1x32x32xf32> to vector<4x32x32xf32>
    %392 = arith.addf %389, %391 : vector<4x32x32xf32>
    %cst_85 = arith.constant dense<0xFF800000> : vector<4x32xf32>
    %393 = vector.multi_reduction <maximumf>, %392, %cst_85 [2] : vector<4x32x32xf32> to vector<4x32xf32>
    %394 = vector.shape_cast %393 : vector<4x32xf32> to vector<4x32x1xf32>
    %395 = vector.broadcast %394 : vector<4x32x1xf32> to vector<4x32x32xf32>
    %396 = arith.subf %392, %395 : vector<4x32x32xf32>
    %397 = math.exp %396 : vector<4x32x32xf32>
    %cst_86 = arith.constant dense<0.000000e+00> : vector<4x32xf32>
    %398 = vector.multi_reduction <add>, %397, %cst_86 [2] : vector<4x32x32xf32> to vector<4x32xf32>
    %399 = vector.shape_cast %398 : vector<4x32xf32> to vector<4x32x1xf32>
    %400 = tpu.reciprocal %399 {approx = true} : vector<4x32x1xf32> -> vector<4x32x1xf32>
    %401 = vector.broadcast %400 : vector<4x32x1xf32> to vector<4x32x32xf32>
    %402 = arith.mulf %397, %401 : vector<4x32x32xf32>
    %403 = arith.truncf %402 : vector<4x32x32xf32> to vector<4x32x32xbf16>
    "tpu.trace_start"() <{level = 10 : i32, message = "hqk,hkd->hqd"}> : () -> ()
    %cst_87 = arith.constant dense<0.000000e+00> : vector<4x32x8xf32>
    %404 = tpu.matmul %403, %388, %cst_87 {dimension_numbers = #tpu.dot_dimension_numbers<[2], [1], [1], [2], [0, 0, 0, 1, 1, 2], [0], [0]>} : vector<4x32x32xbf16>, vector<4x32x8xbf16>, vector<4x32x8xf32> -> vector<4x32x8xf32>
    "tpu.trace_stop"() : () -> ()
    %405 = vector.extract_strided_slice %404 {offsets = [0, 0, 0], sizes = [1, 32, 8], strides = [1, 1, 1]} : vector<4x32x8xf32> to vector<1x32x8xf32>
    %406 = vector.shape_cast %405 : vector<1x32x8xf32> to vector<32x8xf32>
    %407 = vector.extract_strided_slice %404 {offsets = [1, 0, 0], sizes = [1, 32, 8], strides = [1, 1, 1]} : vector<4x32x8xf32> to vector<1x32x8xf32>
    %408 = vector.shape_cast %407 : vector<1x32x8xf32> to vector<32x8xf32>
    %409 = vector.extract_strided_slice %404 {offsets = [2, 0, 0], sizes = [1, 32, 8], strides = [1, 1, 1]} : vector<4x32x8xf32> to vector<1x32x8xf32>
    %410 = vector.shape_cast %409 : vector<1x32x8xf32> to vector<32x8xf32>
    %411 = vector.extract_strided_slice %404 {offsets = [3, 0, 0], sizes = [1, 32, 8], strides = [1, 1, 1]} : vector<4x32x8xf32> to vector<1x32x8xf32>
    %412 = vector.shape_cast %411 : vector<1x32x8xf32> to vector<32x8xf32>
    %413 = tpu.concatenate %406, %408, %410, %412 in 1 : vector<32x8xf32>, vector<32x8xf32>, vector<32x8xf32>, vector<32x8xf32> -> vector<32x32xf32>
    %414 = arith.truncf %413 : vector<32x32xf32> to vector<32x32xbf16>
    %cst_88 = arith.constant dense<0.000000e+00> : vector<32x32xf32>
    %415 = tpu.matmul %414, %16, %cst_88 {dimension_numbers = #tpu.dot_dimension_numbers<[1], [0], [0], [1], [0, 0, 1, 1], [], []>} : vector<32x32xbf16>, vector<32x32xbf16>, vector<32x32xf32> -> vector<32x32xf32>
    %416 = vector.broadcast %2 : vector<1x32xf32> to vector<32x32xf32>
    %417 = arith.addf %415, %416 : vector<32x32xf32>
    %418 = arith.addf %332, %417 : vector<32x32xf32>
    %cst_89 = arith.constant dense<0.000000e+00> : vector<32xf32>
    %419 = vector.multi_reduction <add>, %418, %cst_89 [1] : vector<32x32xf32> to vector<32xf32>
    %420 = vector.shape_cast %419 : vector<32xf32> to vector<32x1xf32>
    %cst_90 = arith.constant 3.200000e+01 : f32
    %421 = vector.broadcast %cst_90 : f32 to vector<32x1xf32>
    %422 = arith.divf %420, %421 : vector<32x1xf32>
    %423 = vector.broadcast %422 : vector<32x1xf32> to vector<32x32xf32>
    %424 = arith.subf %418, %423 : vector<32x32xf32>
    %425 = arith.mulf %424, %424 : vector<32x32xf32>
    %cst_91 = arith.constant dense<0.000000e+00> : vector<32xf32>
    %426 = vector.multi_reduction <add>, %425, %cst_91 [1] : vector<32x32xf32> to vector<32xf32>
    %427 = vector.shape_cast %426 : vector<32xf32> to vector<32x1xf32>
    %cst_92 = arith.constant 3.200000e+01 : f32
    %428 = vector.broadcast %cst_92 : f32 to vector<32x1xf32>
    %429 = arith.divf %427, %428 : vector<32x1xf32>
    %430 = vector.broadcast %422 : vector<32x1xf32> to vector<32x32xf32>
    %431 = arith.subf %418, %430 : vector<32x32xf32>
    %cst_93 = arith.constant 9.99999974E-6 : f32
    %432 = vector.broadcast %cst_93 : f32 to vector<32x1xf32>
    %433 = arith.addf %429, %432 : vector<32x1xf32>
    %434 = math.rsqrt %433 : vector<32x1xf32>
    %435 = vector.broadcast %434 : vector<32x1xf32> to vector<32x32xf32>
    %436 = arith.mulf %431, %435 : vector<32x32xf32>
    %437 = vector.broadcast %7 : vector<1x32xf32> to vector<32x32xf32>
    %438 = arith.mulf %436, %437 : vector<32x32xf32>
    %439 = vector.broadcast %8 : vector<1x32xf32> to vector<32x32xf32>
    %440 = arith.addf %438, %439 : vector<32x32xf32>
    %441 = arith.truncf %440 : vector<32x32xf32> to vector<32x32xbf16>
    %cst_94 = arith.constant dense<0.000000e+00> : vector<32x128xf32>
    %442 = tpu.matmul %441, %17, %cst_94 {dimension_numbers = #tpu.dot_dimension_numbers<[1], [0], [0], [1], [0, 0, 1, 1], [], []>} : vector<32x32xbf16>, vector<32x128xbf16>, vector<32x128xf32> -> vector<32x128xf32>
    %443 = vector.broadcast %3 : vector<1x128xf32> to vector<32x128xf32>
    %444 = arith.addf %442, %443 : vector<32x128xf32>
    %cst_95 = arith.constant 5.000000e-01 : f32
    %445 = vector.broadcast %cst_95 : f32 to vector<32x128xf32>
    %446 = arith.mulf %445, %444 : vector<32x128xf32>
    %cst_96 = arith.constant 4.471500e-02 : f32
    %447 = vector.broadcast %cst_96 : f32 to vector<32x128xf32>
    %448 = arith.mulf %447, %444 : vector<32x128xf32>
    %449 = arith.mulf %448, %444 : vector<32x128xf32>
    %450 = arith.mulf %449, %444 : vector<32x128xf32>
    %451 = arith.addf %444, %450 : vector<32x128xf32>
    %cst_97 = arith.constant 0.797884583 : f32
    %452 = vector.broadcast %cst_97 : f32 to vector<32x128xf32>
    %453 = arith.mulf %452, %451 : vector<32x128xf32>
    %454 = math.tanh %453 : vector<32x128xf32>
    %cst_98 = arith.constant 1.000000e+00 : f32
    %455 = vector.broadcast %cst_98 : f32 to vector<32x128xf32>
    %456 = arith.addf %455, %454 : vector<32x128xf32>
    %457 = arith.mulf %446, %456 : vector<32x128xf32>
    %458 = arith.truncf %457 : vector<32x128xf32> to vector<32x128xbf16>
    %cst_99 = arith.constant dense<0.000000e+00> : vector<32x32xf32>
    %459 = tpu.matmul %458, %18, %cst_99 {dimension_numbers = #tpu.dot_dimension_numbers<[1], [0], [0], [1], [0, 0, 1, 1], [], []>} : vector<32x128xbf16>, vector<128x32xbf16>, vector<32x32xf32> -> vector<32x32xf32>
    %460 = vector.broadcast %4 : vector<1x32xf32> to vector<32x32xf32>
    %461 = arith.addf %459, %460 : vector<32x32xf32>
    %462 = arith.addf %418, %461 : vector<32x32xf32>
    %cst_100 = arith.constant dense<0.000000e+00> : vector<32xf32>
    %463 = vector.multi_reduction <add>, %462, %cst_100 [1] : vector<32x32xf32> to vector<32xf32>
    %464 = vector.shape_cast %463 : vector<32xf32> to vector<32x1xf32>
    %cst_101 = arith.constant 3.200000e+01 : f32
    %465 = vector.broadcast %cst_101 : f32 to vector<32x1xf32>
    %466 = arith.divf %464, %465 : vector<32x1xf32>
    %467 = vector.broadcast %466 : vector<32x1xf32> to vector<32x32xf32>
    %468 = arith.subf %462, %467 : vector<32x32xf32>
    %469 = arith.mulf %468, %468 : vector<32x32xf32>
    %cst_102 = arith.constant dense<0.000000e+00> : vector<32xf32>
    %470 = vector.multi_reduction <add>, %469, %cst_102 [1] : vector<32x32xf32> to vector<32xf32>
    %471 = vector.shape_cast %470 : vector<32xf32> to vector<32x1xf32>
    %cst_103 = arith.constant 3.200000e+01 : f32
    %472 = vector.broadcast %cst_103 : f32 to vector<32x1xf32>
    %473 = arith.divf %471, %472 : vector<32x1xf32>
    %474 = vector.broadcast %466 : vector<32x1xf32> to vector<32x32xf32>
    %475 = arith.subf %462, %474 : vector<32x32xf32>
    %cst_104 = arith.constant 9.99999974E-6 : f32
    %476 = vector.broadcast %cst_104 : f32 to vector<32x1xf32>
    %477 = arith.addf %473, %476 : vector<32x1xf32>
    %478 = math.rsqrt %477 : vector<32x1xf32>
    %479 = vector.broadcast %478 : vector<32x1xf32> to vector<32x32xf32>
    %480 = arith.mulf %475, %479 : vector<32x32xf32>
    %481 = vector.broadcast %9 : vector<1x32xf32> to vector<32x32xf32>
    %482 = arith.mulf %480, %481 : vector<32x32xf32>
    %483 = vector.broadcast %10 : vector<1x32xf32> to vector<32x32xf32>
    %484 = arith.addf %482, %483 : vector<32x32xf32>
    %485 = arith.truncf %484 : vector<32x32xf32> to vector<32x32xbf16>
    %cst_105 = arith.constant dense<0.000000e+00> : vector<1x32xf32>
    %486 = tpu.matmul %19, %485, %cst_105 {dimension_numbers = #tpu.dot_dimension_numbers<[1], [1], [0], [0], [0, 0, 1, 0], [], []>} : vector<1x32xbf16>, vector<32x32xbf16>, vector<1x32xf32> -> vector<1x32xf32>
    %487 = vector.broadcast %11 : vector<1x1xf32> to vector<1x32xf32>
    %488 = arith.addf %486, %487 : vector<1x32xf32>
    %cst_106 = arith.constant 0.000000e+00 : f32
    %489 = vector.broadcast %cst_106 : f32 to vector<1x96xf32>
    %490 = tpu.concatenate %488, %489 in 1 : vector<1x32xf32>, vector<1x96xf32> -> vector<1x128xf32>
    %c0_107 = arith.constant 0 : index
    %c0_108 = arith.constant 0 : index
    %491 = vector.load %arg3[%c0_107, %c0_108] : memref<1x128xf32, #tpu.memory_space<vmem>>, vector<1x128xf32>
    tpu.vector_store %arg3[%c0_107, %c0_108], %490 {strides = array<i32>} : memref<1x128xf32, #tpu.memory_space<vmem>>, vector<1x128xf32>,
    return
  }
}

</mosaic_0001>

<bundles_post_ra>
// kernel: squeeze.1
= control target key start
LH: loop header
LB: loop body
LE: loop exit
PB: predicated region body
PF: predicated region fallthrough
CT: control target
= control target key end

     0   :  { %vm7_vm0 = vcmask 130048   ;;  %s39_s0 = inlined_call_operand.vmem [shape: f32[32], index: 0, kind: input, shape index: {}]   ;;  %s40_s1 = inlined_call_operand.vmem [shape: f32[2,16], index: 1, kind: output, shape index: {}]  }
   0x1   :  { %v4_v0 = vld [vmem:[%s39_s0] sm:$0x1]  ;;  %s22_s0 = smov 112  }
   0x2   :  { %5 = vst [vmem:[#allocation1] sm:$0x1] %v4_v0 }
   0x9   :  { %v9_v1 = vld [vmem:[#allocation1] sm:$0x1]  }
   0xa   :  { %v6_v2 = vld [vmem:[#allocation1] sm:$0x1]   ;;  %10 = vrot.lane.b32.xlu0 %v9_v1, %s22_s0 }
   0xb   :  { %8 = vst.msk [vmem:[#allocation0] sm:$0x1] %vm7_vm0, %v6_v2  }
  0x7c   :  { %v11_v3 = vpop.permute.xlu0 %10  }
  0x7d   :  { %14 = vst.msk [vmem:[#allocation0 + $0x1] sm:$0x1] %vm7_vm0, %v11_v3  }
  0x84   :  { %v17_v4 = vld [vmem:[#allocation0] sm:$0x3] }
  0x85   :  { %20 = vst [vmem:[%s40_s1] sm:$0x3] %v17_v4 }

// kernel: model_forward.1
= control target key start
LH: loop header
LB: loop body
LE: loop exit
PB: predicated region body
PF: predicated region fallthrough
CT: control target
= control target key end

     0   :  { %8 = vsyncpa [#allocation3], 0  ;;  %s4243_s15 = smov [#allocation2]   ;;  %s4244_s17 = smov 128   ;;  %s5568_s0 = inlined_call_operand.vmem [shape: f32[32,8], index: 0, kind: input, shape index: {}]   ;;  %s5569_s1 = inlined_call_operand.hbm [shape: f32[64,128], index: 1, kind: input, shape index: {}]   ;;  %s5570_s2 = inlined_call_operand.vmem [shape: bf16[240,128], index: 2, kind: input, shape index: {}]   ;;  %s5571_s3 = inlined_call_operand.vmem [shape: f32[1,128], index: 3, kind: output, shape index: {}]  }
   0x1   :  { %s15_s14 = sshll.u32 %s5569_s1, 4  ;;  %s17_s16 = sshll.u32 %s4243_s15, 4  ;;  %s16_s14 = int_to_ptr.hbm [resolvable:$true] %s15_s14  ;;  %s18_s16 = int_to_ptr.vmem [resolvable:$true] %s17_s16 }
   0x2   :  { %s4245_s18 = smov 8  }
   0x3   :  { %23 = dma.hbm_to_vmem [thread:$0]  %s16_s14, 1024, %s18_s16, [#allocation3], %s4244_s17, %s4244_s17, %s4245_s18  }
   0x4   :  { %4241 = dma.done.wait [#allocation3], 1024  }
   0x5   :  { %4242 = vsyncadd [#allocation3], 4294966272  ;;  %vm93_vm0 = vcmask 1043456   ;;  %v49_v0 = vld [vmem:[%s5570_s2] sm:$0xf]  ;;  %v80_v2 = vld [vmem:[%s5568_s0 + $0x8] sm:$0xff] }
   0x6   :  { %v79_v1 = vld [vmem:[%s5568_s0] sm:$0xff]  ;;  %v95_v3 = vsel %vm93_vm0, %v49_v0, 0  ;;  %v81_v5 = vld [vmem:[%s5568_s0 + $0x10] sm:$0xff]  ;;  %v82_v6 = vld [vmem:[%s5568_s0 + $0x18] sm:$0xff]  ;;  %vm86_vm1 = vcmask 64512   ;;  %vm120_vm2 = vcmask 261120  }
   0x7   :  { %v83_v4 = vpack.c.bf16 %v80_v2, %v79_v1  ;;  %104 = vmatpush.bf16.msra.mxu0 %v95_v3  ;;  %3665 = vmatpush.bf16.msra.mxu2 %v95_v3  ;;  %v84_v7 = vpack.c.bf16 %v82_v6, %v81_v5  ;;  %v3860_v8 = vld [vmem:[#allocation2] ss:$0 sm:$0xff]  ;;  %v43_v9 = vld [vmem:[#allocation2 + $0x10] sm:$0xff]  ;;  %v44_v16 = vld [vmem:[#allocation2 + $0x18] sm:$0xff]  ;;  %v4246_v27 = vmov 32.0   ;;  %s4247_s4 = smov 120  }
   0x8   :  { %3871 = vrcp.f32 %v4246_v27  ;;  %v4345_v54 = vld [vmem:[%s5570_s2 + $0xc] sm:$0xff]  ;;  %v4352_v57 = vld [vmem:[%s5570_s2 + $0x4] sm:$0xff]  ;;  %s4248_s5 = smov 112   ;;  %s4249_s6 = smov 104   ;;  %vm910_vm0 = vcmask 130048  }
   0x9   :  { %253 = vmatpush.bf16.msra.mxu1 %v4345_v54  ;;  %s4250_s7 = smov 96   ;;  %s4251_s8 = smov 64  }
   0xa   :  { %3526 = vmatmul.msk.bf16.vlgmr.msra.gmra.mxu0 %vm86_vm1, %v83_v4  ;;  %3527 = vmatmul.msk.bf16.vlgmr.msra.gmra.mxu2 %vm86_vm1, %v84_v7  ;;  %s4252_s9 = smov 16   ;;  %s4253_s10 = smov 24  }
   0xd   :  { %254 = vmatpush.bf16.msra.mxu1 %v4352_v57 }
   0xe   :  { %v3872_v28 = vpop.eup %3871 }
   0xf   :  { %v134_v29 = vmul.f32 32.0, %v3872_v28  ;;  %vm138_vm3 = vweird.f32 %v3872_v28 }
  0x11   :  { %v135_v30 = vsub.f32 1.0, %v134_v29 }
  0x13   :  { %v136_v31 = vmul.f32 %v3872_v28, %v135_v30 }
  0x15   :  { %v137_v32 = vadd.f32 %v3872_v28, %v136_v31 }
  0x17   :  { %v4312_v33 = vsel %vm138_vm3, %v3872_v28, %v137_v32  ;;  %vm915_vm3 = vcmask 195584  }
  0x87   :  { %v106_v10 = vpop.f32.mrf.mxu0 }
  0x88   :  { %v107_v11 = vadd.f32 %v3860_v8, %v106_v10 }
  0x8a   :  { %v4296_v12 = vadd.f32 %v107_v11, %v43_v9 }
  0x8c   :  { %v121_v13 = vsel %vm120_vm2, %v4296_v12, 0.0 }
  0x8d   :  { %v111_v14 = vpop.f32.mrf.mxu2  ;;  %122 = vadd.xlane.f32.xlu0 %v121_v13 }
  0x8e   :  { %v112_v15 = vadd.f32 %v3860_v8, %v111_v14 }
  0x8f   :  { %v108_v17 = vpop.f32.mrf.mxu0 }
  0x90   :  { %v4300_v18 = vadd.f32 %v112_v15, %v43_v9  ;;  %v109_v19 = vadd.f32 %v3860_v8, %v108_v17 }
  0x92   :  { %v4302_v20 = vadd.f32 %v109_v19, %v44_v16  ;;  %v127_v21 = vsel %vm120_vm2, %v4300_v18, 0.0 }
  0x93   :  { %128 = vadd.xlane.f32.xlu1 %v127_v21 }
  0x94   :  { %v124_v22 = vsel %vm120_vm2, %v4302_v20, 0.0 }
  0x95   :  { %v113_v23 = vpop.f32.mrf.mxu2  ;;  %125 = vadd.xlane.f32.xlu0 %v124_v22 }
  0x96   :  { %v114_v24 = vadd.f32 %v3860_v8, %v113_v23 }
  0x98   :  { %v4308_v25 = vadd.f32 %v114_v24, %v44_v16 }
  0x9a   :  { %v130_v26 = vsel %vm120_vm2, %v4308_v25, 0.0 }
  0x9b   :  { %131 = vadd.xlane.f32.xlu1 %v130_v26  ;;  %v3861_v26 = vld [vmem:[#allocation2 + $0x5] ss:$0 sm:$0xff] }
 0x100   :  { %v123_v34 = vpop.xlane.xlu0 %122 }
 0x101   :  { %v140_v35 = vmul.f32 %v4312_v33, %v123_v34 }
 0x103   :  { %v4316_v36 = vsub.f32 %v4296_v12, %v140_v35  ;;  %v3862_v35 = vld [vmem:[#allocation2 + $0x6] ss:$0 sm:$0xff] }
 0x105   :  { %v148_v37 = vmul.f32 %v4316_v36, %v4316_v36 }
 0x106   :  { %v129_v38 = vpop.xlane.xlu1 %128 }
 0x107   :  { %v142_v39 = vmul.f32 %v4312_v33, %v129_v38  ;;  %v152_v40 = vsel %vm120_vm2, %v148_v37, 0.0 }
 0x108   :  { %153 = vadd.xlane.f32.xlu2 %v152_v40  ;;  %v126_v41 = vpop.xlane.xlu0 %125 }
 0x109   :  { %v4323_v42 = vsub.f32 %v4300_v18, %v142_v39  ;;  %v141_v43 = vmul.f32 %v4312_v33, %v126_v41 }
 0x10b   :  { %v4327_v44 = vsub.f32 %v4302_v20, %v141_v43  ;;  %v150_v45 = vmul.f32 %v4323_v42, %v4323_v42 }
 0x10d   :  { %v158_v46 = vsel %vm120_vm2, %v150_v45, 0.0  ;;  %v149_v47 = vmul.f32 %v4327_v44, %v4327_v44 }
 0x10e   :  { %v132_v48 = vpop.xlane.xlu1 %131  ;;  %159 = vadd.xlane.f32.xlu0 %v158_v46 }
 0x10f   :  { %v143_v49 = vmul.f32 %v4312_v33, %v132_v48  ;;  %v155_v50 = vsel %vm120_vm2, %v149_v47, 0.0 }
 0x110   :  { %156 = vadd.xlane.f32.xlu2 %v155_v50 }
 0x111   :  { %v4337_v51 = vsub.f32 %v4308_v25, %v143_v49 }
 0x113   :  { %v151_v52 = vmul.f32 %v4337_v51, %v4337_v51 }
 0x115   :  { %v161_v53 = vsel %vm120_vm2, %v151_v52, 0.0 }
 0x116   :  { %162 = vadd.xlane.f32.xlu1 %v161_v53 }
 0x17b   :  { %v154_v55 = vpop.xlane.xlu2 %153 }
 0x17c   :  { %v164_v56 = vmul.f32 %v154_v55, %v4312_v33 }
 0x17e   :  { %v168_v58 = vadd.f32 1e-05, %v164_v56 }
 0x180   :  { %3873 = vrsqrt.f32 %v168_v58  ;;  %vm178_vm5 = vweird.f32 %v168_v58 }
 0x181   :  { %v160_v59 = vpop.xlane.xlu0 %159 }
 0x182   :  { %v166_v60 = vmul.f32 %v160_v59, %v4312_v33 }
 0x183   :  { %v157_v61 = vpop.xlane.xlu2 %156 }
 0x184   :  { %v170_v62 = vadd.f32 1e-05, %v166_v60  ;;  %v165_v63 = vmul.f32 %v157_v61, %v4312_v33 }
 0x186   :  { %v3874_v0 = vpop.eup %3873  ;;  %3875 = vrsqrt.f32 %v170_v62  ;;  %v169_v1 = vadd.f32 1e-05, %v165_v63  ;;  %vm198_vm14 = vweird.f32 %v170_v62 }
 0x187   :  { %v173_v2 = vmul.f32 %v3874_v0, %v168_v58  ;;  %vm179_vm4 = vweird.f32 %v3874_v0  ;;  %v3863_v58 = vld [vmem:[#allocation2 + $0x1] ss:$0 sm:$0xff] }
 0x188   :  { %3877 = vrsqrt.f32 %v169_v1  ;;  %vm180_vm6 = vmor %vm178_vm5, %vm179_vm4  ;;  %vm188_vm8 = vweird.f32 %v169_v1 }
 0x189   :  { %v174_v3 = vmul.f32 %v3874_v0, %v173_v2  ;;  %v163_v4 = vpop.xlane.xlu1 %162 }
 0x18a   :  { %v167_v5 = vmul.f32 %v163_v4, %v4312_v33 }
 0x18b   :  { %v175_v6 = vmul.f32 0.5, %v174_v3 }
 0x18c   :  { %v3876_v7 = vpop.eup %3875  ;;  %v171_v8 = vadd.f32 1e-05, %v167_v5 }
 0x18d   :  { %v176_v9 = vsub.f32 1.5, %v175_v6  ;;  %v193_v13 = vmul.f32 %v3876_v7, %v170_v62  ;;  %vm199_vm11 = vweird.f32 %v3876_v7 }
 0x18e   :  { %v3878_v10 = vpop.eup %3877  ;;  %3879 = vrsqrt.f32 %v171_v8  ;;  %vm208_vm12 = vweird.f32 %v171_v8  ;;  %vm200_vm15 = vmor %vm198_vm14, %vm199_vm11 }
 0x18f   :  { %v177_v11 = vmul.f32 %v3874_v0, %v176_v9  ;;  %v183_v14 = vmul.f32 %v3878_v10, %v169_v1  ;;  %v194_v17 = vmul.f32 %v3876_v7, %v193_v13  ;;  %vm189_vm7 = vweird.f32 %v3878_v10 }
 0x190   :  { %vm190_vm9 = vmor %vm188_vm8, %vm189_vm7 }
 0x191   :  { %v184_v15 = vmul.f32 %v3878_v10, %v183_v14  ;;  %v181_v16 = vsel %vm180_vm6, %v3874_v0, %v177_v11  ;;  %v195_v27 = vmul.f32 0.5, %v194_v17 }
 0x192   :  { %v212_v24 = vmul.f32 %v181_v16, %v4316_v36 }
 0x193   :  { %v185_v19 = vmul.f32 0.5, %v184_v15  ;;  %v196_v37 = vsub.f32 1.5, %v195_v27 }
 0x194   :  { %v3880_v21 = vpop.eup %3879  ;;  %v217_v34 = vmul.f32 %v3861_v26, %v212_v24 }
 0x195   :  { %v186_v22 = vsub.f32 1.5, %v185_v19  ;;  %v203_v23 = vmul.f32 %v3880_v21, %v171_v8  ;;  %vm209_vm10 = vweird.f32 %v3880_v21  ;;  %v197_v36 = vmul.f32 %v3876_v7, %v196_v37 }
 0x196   :  { %v222_v41 = vadd.f32 %v3862_v35, %v217_v34  ;;  %vm210_vm13 = vmor %vm208_vm12, %vm209_vm10 }
 0x197   :  { %v187_v28 = vmul.f32 %v3878_v10, %v186_v22  ;;  %v204_v29 = vmul.f32 %v3880_v21, %v203_v23 }
 0x199   :  { %v191_v30 = vsel %vm190_vm9, %v3878_v10, %v187_v28  ;;  %v205_v31 = vmul.f32 0.5, %v204_v29 }
 0x19a   :  { %v213_v32 = vmul.f32 %v191_v30, %v4327_v44  ;;  %v201_v44 = vsel %vm200_vm15, %v3876_v7, %v197_v36 }
 0x19b   :  { %v206_v38 = vsub.f32 1.5, %v205_v31  ;;  %v214_v48 = vmul.f32 %v201_v44, %v4323_v42 }
 0x19c   :  { %v218_v39 = vmul.f32 %v3861_v26, %v213_v32 }
 0x19d   :  { %v207_v40 = vmul.f32 %v3880_v21, %v206_v38  ;;  %v219_v50 = vmul.f32 %v3861_v26, %v214_v48 }
 0x19e   :  { %v223_v43 = vadd.f32 %v3862_v35, %v218_v39 }
 0x19f   :  { %v211_v46 = vsel %vm210_vm13, %v3880_v21, %v207_v40  ;;  %v224_v53 = vadd.f32 %v3862_v35, %v219_v50 }
 0x1a0   :  { %v226_v45 = vpack.c.bf16 %v223_v43, %v222_v41  ;;  %v215_v47 = vmul.f32 %v211_v46, %v4337_v51 }
 0x1a2   :  { %3536 = vmatmul.msk.bf16.vlgmr.msra.gmra.mxu1 %vm120_vm2, %v226_v45  ;;  %v220_v49 = vmul.f32 %v3861_v26, %v215_v47 }
 0x1a4   :  { %v225_v52 = vadd.f32 %v3862_v35, %v220_v49 }
 0x1a6   :  { %v227_v55 = vpack.c.bf16 %v225_v52, %v224_v53 }
 0x1b2   :  { %3537 = vmatmul.msk.bf16.gmra.mxu1 %vm120_vm2, %v227_v55 }
 0x21f   :  { %v256_v56 = vpop.f32.mrf.mxu1 }
 0x220   :  { %v257_v59 = vadd.f32 %v3863_v58, %v256_v56 }
 0x222   :  { %v306_v62 = vpack.c.bf16 %v257_v59, %v257_v59 }
 0x224   :  { %v326_v51 = vunpack.c.l.b16 %v306_v62 }
 0x227   :  { %v258_v60 = vpop.f32.mrf.mxu1 }
 0x228   :  { %v259_v61 = vadd.f32 %v3863_v58, %v258_v60 }
 0x22a   :  { %v3683_v63 = vpack.i.bf16 %v259_v61, %v257_v59  ;;  %v307_v0 = vpack.c.bf16 %v259_v61, %v259_v61 }
 0x22c   :  { %3684 = vrot.lane.b32.xlu0 %v3683_v63, %s4247_s4  ;;  %v327_v42 = vunpack.c.l.b16 %v307_v0 }
 0x22e   :  { %v4365_v1 = vpack.c.b16 %v327_v42, %v326_v51 }
 0x22f   :  { %v261_v2 = vpop.f32.mrf.mxu1 }
 0x230   :  { %v262_v3 = vadd.f32 %v3863_v58, %v261_v2 }
 0x232   :  { %v308_v6 = vpack.c.bf16 %v262_v3, %v262_v3 }
 0x234   :  { %3694 = vrot.lane.b32.xlu0 %v3683_v63, %s4248_s5  ;;  %v328_v9 = vunpack.c.l.b16 %v308_v6 }
 0x237   :  { %v263_v4 = vpop.f32.mrf.mxu1 }
 0x238   :  { %v264_v5 = vadd.f32 %v3863_v58, %v263_v4 }
 0x23a   :  { %v3688_v7 = vpack.i.bf16 %v264_v5, %v262_v3  ;;  %v309_v8 = vpack.c.bf16 %v264_v5, %v264_v5 }
 0x23c   :  { %3689 = vrot.lane.b32.xlu1 %v3688_v7, %s4248_s5  ;;  %3679 = vrot.lane.b32.xlu2 %v3688_v7, %s4247_s4  ;;  %v329_v10 = vunpack.c.l.b16 %v309_v8 }
 0x23e   :  { %v4370_v11 = vpack.c.b16 %v329_v10, %v328_v9 }
 0x244   :  { %3699 = vrot.lane.b32.xlu2 %v3688_v7, %s4249_s6 }
 0x24c   :  { %3704 = vrot.lane.b32.xlu2 %v3683_v63, %s4249_s6 }
 0x296   :  { %v3680_v13 = vpop.permute.xlu2 %3679 }
 0x297   :  { %v3682_v14 = vunpack.i.h.bf16 %v3680_v13  ;;  %v3681_v15 = vunpack.i.l.bf16 %v3680_v13 }
 0x299   :  { %v313_v16 = vpack.c.bf16 %v3682_v14, %v3682_v14  ;;  %v312_v17 = vpack.c.bf16 %v3681_v15, %v3681_v15 }
 0x29b   :  { %v374_v19 = vunpack.c.l.b16 %v313_v16  ;;  %v373_v21 = vunpack.c.l.b16 %v312_v17 }
 0x29d   :  { %v4374_v22 = vpack.c.b16 %v374_v19, %v373_v21 }
 0x29e   :  { %v3700_v23 = vpop.permute.xlu2 %3699  ;;  %v3685_v24 = vpop.permute.xlu0 %3684 }
 0x29f   :  { %v3702_v26 = vunpack.i.h.bf16 %v3700_v23  ;;  %v3701_v27 = vunpack.i.l.bf16 %v3700_v23  ;;  %v3687_v28 = vunpack.i.h.bf16 %v3685_v24  ;;  %v3686_v29 = vunpack.i.l.bf16 %v3685_v24  ;;  %379 = vrot.lane.b32.xlu1 %v4374_v22, %s4250_s7 }
 0x2a1   :  { %v321_v30 = vpack.c.bf16 %v3702_v26, %v3702_v26  ;;  %v320_v31 = vpack.c.bf16 %v3701_v27, %v3701_v27  ;;  %v311_v32 = vpack.c.bf16 %v3687_v28, %v3687_v28  ;;  %v310_v34 = vpack.c.bf16 %v3686_v29, %v3686_v29 }
 0x2a3   :  { %v464_v35 = vunpack.c.l.b16 %v321_v30  ;;  %v463_v37 = vunpack.c.l.b16 %v320_v31  ;;  %v372_v38 = vunpack.c.l.b16 %v311_v32  ;;  %v371_v39 = vunpack.c.l.b16 %v310_v34  ;;  %v45_v31 = vld [vmem:[#allocation2 + $0x20] sm:$0xff] }
 0x2a5   :  { %v4378_v40 = vpack.c.b16 %v464_v35, %v463_v37  ;;  %v375_v41 = vpack.c.b16 %v372_v38, %v371_v39  ;;  %v46_v38 = vld [vmem:[#allocation2 + $0x28] sm:$0xff] }
 0x2a6   :  { %v3695_v43 = vpop.permute.xlu0 %3694  ;;  %v3705_v50 = vpop.permute.xlu2 %3704 }
 0x2a7   :  { %v3697_v36 = vunpack.i.h.bf16 %v3695_v43  ;;  %v3696_v45 = vunpack.i.l.bf16 %v3695_v43  ;;  %469 = vrot.lane.b32.xlu1 %v4378_v40, %s4250_s7  ;;  %377 = vrot.lane.b32.xlu0 %v375_v41, %s4250_s7  ;;  %v3707_v56 = vunpack.i.h.bf16 %v3705_v50  ;;  %v3706_v58 = vunpack.i.l.bf16 %v3705_v50 }
 0x2a9   :  { %v315_v46 = vpack.c.bf16 %v3697_v36, %v3697_v36  ;;  %v314_v44 = vpack.c.bf16 %v3696_v45, %v3696_v45  ;;  %v319_v63 = vpack.c.bf16 %v3707_v56, %v3707_v56  ;;  %v318_v0 = vpack.c.bf16 %v3706_v58, %v3706_v58 }
 0x2ab   :  { %v417_v47 = vunpack.c.l.b16 %v315_v46  ;;  %v416_v48 = vunpack.c.l.b16 %v314_v44  ;;  %v462_v42 = vunpack.c.l.b16 %v319_v63  ;;  %v461_v2 = vunpack.c.l.b16 %v318_v0 }
 0x2ad   :  { %v4383_v49 = vpack.c.b16 %v417_v47, %v416_v48  ;;  %v4394_v3 = vpack.c.b16 %v462_v42, %v461_v2  ;;  %v47_v47 = vld [vmem:[#allocation2 + $0x30] sm:$0xff] }
 0x2ae   :  { %v3690_v52 = vpop.permute.xlu1 %3689 }
 0x2af   :  { %v3692_v53 = vunpack.i.h.bf16 %v3690_v52  ;;  %v3691_v55 = vunpack.i.l.bf16 %v3690_v52  ;;  %334 = vrot.lane.b32.xlu1 %v4370_v11, %s4250_s7  ;;  %422 = vrot.lane.b32.xlu0 %v4383_v49, %s4250_s7 }
 0x2b1   :  { %v317_v59 = vpack.c.bf16 %v3692_v53, %v3692_v53  ;;  %v316_v60 = vpack.c.bf16 %v3691_v55, %v3691_v55 }
 0x2b3   :  { %v419_v61 = vunpack.c.l.b16 %v317_v59  ;;  %v418_v62 = vunpack.c.l.b16 %v316_v60  ;;  %v48_v60 = vld [vmem:[#allocation2 + $0x38] sm:$0xff] }
 0x2b5   :  { %v421_v51 = vpack.c.b16 %v419_v61, %v418_v62 }
 0x2b7   :  { %424 = vrot.lane.b32.xlu2 %v421_v51, %s4250_s7  ;;  %747 = vrot.lane.b32.xlu1 %v4374_v22, %s4251_s8 }
 0x2b8   :  { %332 = vrot.lane.b32.xlu0 %v4365_v1, %s4250_s7 }
 0x2bf   :  { %467 = vrot.lane.b32.xlu2 %v4394_v3, %s4250_s7 }
 0x2c0   :  { %745 = vrot.lane.b32.xlu0 %v375_v41, %s4251_s8 }
 0x2c7   :  { %788 = vrot.lane.b32.xlu2 %v421_v51, %s4251_s8 }
 0x2c8   :  { %829 = vrot.lane.b32.xlu0 %v4378_v40, %s4251_s8 }
 0x311   :  { %v425_v4 = vpop.permute.xlu2 %424  ;;  %v380_v5 = vpop.permute.xlu1 %379 }
 0x312   :  { %v391_v6 = vsel %vm86_vm1, %v380_v5, 0  ;;  %v436_v7 = vsel %vm86_vm1, %v425_v4, 0 }
 0x313   :  { %399 = vmatpush.bf16.xpose.msra.mxu3 %v391_v6  ;;  %444 = vmatpush.bf16.xpose.msrb.mxu0 %v436_v7 }
 0x319   :  { %v470_v8 = vpop.permute.xlu1 %469  ;;  %v468_v9 = vpop.permute.xlu2 %467 }
 0x31a   :  { %v378_v10 = vpop.permute.xlu0 %377  ;;  %v481_v13 = vsel %vm86_vm1, %v470_v8, 0  ;;  %v478_v21 = vsel %vm86_vm1, %v468_v9, 0 }
 0x31b   :  { %v388_v14 = vsel %vm86_vm1, %v378_v10, 0  ;;  %489 = vmatpush.bf16.xpose.msrb.mxu1 %v481_v13 }
 0x31c   :  { %400 = vmatpush.bf16.xpose.msra.mxu3 %v388_v14 }
 0x321   :  { %v335_v15 = vpop.permute.xlu1 %334  ;;  %v789_v23 = vpop.permute.xlu2 %788 }
 0x322   :  { %v423_v16 = vpop.permute.xlu0 %422  ;;  %v346_v17 = vsel %vm86_vm1, %v335_v15, 0 }
 0x323   :  { %3540 = vmatmul.msk.bf16.vlgmr.msra.gmra.mxu3 %vm86_vm1, %v375_v41  ;;  %354 = vmatpush.bf16.xpose.msrb.mxu2 %v346_v17  ;;  %v433_v19 = vsel %vm86_vm1, %v423_v16, 0 }
 0x324   :  { %445 = vmatpush.bf16.xpose.msrb.mxu0 %v433_v19  ;;  %490 = vmatpush.bf16.xpose.msrb.mxu1 %v478_v21 }
 0x329   :  { %v748_v24 = vpop.permute.xlu1 %747 }
 0x32a   :  { %v333_v26 = vpop.permute.xlu0 %332  ;;  %763 = vmatpush.bf16.msrb.mxu3 %v748_v24 }
 0x32b   :  { %3542 = vmatmul.msk.bf16.vlgmr.msrb.gmra.mxu0 %vm86_vm1, %v4383_v49  ;;  %3544 = vmatmul.msk.bf16.vlgmr.msrb.gmra.mxu1 %vm86_vm1, %v4394_v3  ;;  %v343_v27 = vsel %vm86_vm1, %v333_v26, 0 }
 0x32c   :  { %804 = vmatpush.bf16.msra.mxu0 %v789_v23  ;;  %355 = vmatpush.bf16.xpose.msrb.mxu2 %v343_v27 }
 0x332   :  { %v746_v28 = vpop.permute.xlu0 %745 }
 0x333   :  { %3538 = vmatmul.msk.bf16.vlgmr.msrb.gmra.mxu2 %vm86_vm1, %v4365_v1  ;;  %3541 = vmatmul.msk.bf16.gmra.mxu3 %vm86_vm1, %v4374_v22 }
 0x334   :  { %764 = vmatpush.bf16.msrb.mxu3 %v746_v28 }
 0x33a   :  { %v830_v29 = vpop.permute.xlu0 %829 }
 0x33b   :  { %3543 = vmatmul.msk.bf16.gmra.mxu0 %vm86_vm1, %v421_v51  ;;  %3545 = vmatmul.msk.bf16.gmra.mxu1 %vm86_vm1, %v4378_v40 }
 0x33c   :  { %845 = vmatpush.bf16.msra.mxu1 %v830_v29 }
 0x343   :  { %3539 = vmatmul.msk.bf16.gmra.mxu2 %vm86_vm1, %v4370_v11 }
 0x3a6   :  { %v402_v34 = vpop.f32.mrf.mxu3 }
 0x3a7   :  { %v4428_v37 = vadd.f32 %v402_v34, %v45_v31 }
 0x3a8   :  { %v447_v30 = vpop.f32.mrf.mxu0  ;;  %v492_v44 = vpop.f32.mrf.mxu1 }
 0x3a9   :  { %v514_v45 = vsel %vm120_vm2, %v4428_v37, -inf  ;;  %v493_v58 = vadd.f32 %v492_v44, %v45_v31  ;;  %v448_v4 = vadd.f32 %v447_v30, %v45_v31 }
 0x3ab   :  { %v538_v51 = vsel %vm120_vm2, %v493_v58, -inf  ;;  %v526_v7 = vsel %vm120_vm2, %v448_v4, -inf }
 0x3ae   :  { %v404_v43 = vpop.f32.mrf.mxu3 }
 0x3af   :  { %v4450_v5 = vadd.f32 %v404_v43, %v46_v38 }
 0x3b0   :  { %v449_v41 = vpop.f32.mrf.mxu0  ;;  %v494_v63 = vpop.f32.mrf.mxu1 }
 0x3b1   :  { %v450_v46 = vadd.f32 %v449_v41, %v46_v38  ;;  %v517_v8 = vsel %vm120_vm2, %v4450_v5, -inf  ;;  %v495_v13 = vadd.f32 %v494_v63, %v46_v38 }
 0x3b3   :  { %v529_v55 = vsel %vm120_vm2, %v450_v46, -inf  ;;  %v541_v15 = vsel %vm120_vm2, %v495_v13, -inf }
 0x3b6   :  { %v357_v32 = vpop.f32.mrf.mxu2  ;;  %v407_v56 = vpop.f32.mrf.mxu3 }
 0x3b7   :  { %v4424_v35 = vadd.f32 %v357_v32, %v45_v31  ;;  %v4441_v59 = vadd.f32 %v407_v56, %v47_v47 }
 0x3b8   :  { %v452_v52 = vpop.f32.mrf.mxu0  ;;  %v497_v9 = vpop.f32.mrf.mxu1 }
 0x3b9   :  { %v502_v22 = vsel %vm120_vm2, %v4424_v35, -inf  ;;  %v520_v42 = vsel %vm120_vm2, %v4441_v59, -inf  ;;  %v498_v14 = vadd.f32 %v497_v9, %v47_v47  ;;  %v4461_v19 = vadd.f32 %v452_v52, %v47_v47 }
 0x3ba   :  { %503 = vmax.xlane.f32.xlu2 %v502_v22 }
 0x3bb   :  { %v544_v16 = vsel %vm120_vm2, %v498_v14, -inf  ;;  %v532_v23 = vsel %vm120_vm2, %v4461_v19, -inf }
 0x3be   :  { %v359_v39 = vpop.f32.mrf.mxu2  ;;  %v409_v17 = vpop.f32.mrf.mxu3 }
 0x3bf   :  { %v4430_v40 = vadd.f32 %v359_v39, %v46_v38  ;;  %v4463_v21 = vadd.f32 %v409_v17, %v48_v60 }
 0x3c0   :  { %v454_v2 = vpop.f32.mrf.mxu0  ;;  %v499_v26 = vpop.f32.mrf.mxu1 }
 0x3c1   :  { %v505_v36 = vsel %vm120_vm2, %v4430_v40, -inf  ;;  %v4452_v6 = vadd.f32 %v454_v2, %v48_v60  ;;  %v523_v24 = vsel %vm120_vm2, %v4463_v21, -inf  ;;  %v4469_v27 = vadd.f32 %v499_v26, %v48_v60 }
 0x3c2   :  { %506 = vmax.xlane.f32.xlu1 %v505_v36  ;;  %515 = vmax.xlane.f32.xlu2 %v514_v45 }
 0x3c3   :  { %v535_v10 = vsel %vm120_vm2, %v4452_v6, -inf  ;;  %v547_v28 = vsel %vm120_vm2, %v4469_v27, -inf }
 0x3c6   :  { %v362_v48 = vpop.f32.mrf.mxu2 }
 0x3c7   :  { %v4436_v50 = vadd.f32 %v362_v48, %v47_v47 }
 0x3c9   :  { %v508_v53 = vsel %vm120_vm2, %v4436_v50, -inf }
 0x3ca   :  { %509 = vmax.xlane.f32.xlu1 %v508_v53  ;;  %530 = vmax.xlane.f32.xlu2 %v529_v55 }
 0x3ce   :  { %v364_v61 = vpop.f32.mrf.mxu2 }
 0x3cf   :  { %v4443_v62 = vadd.f32 %v364_v61, %v48_v60 }
 0x3d1   :  { %v511_v0 = vsel %vm120_vm2, %v4443_v62, -inf }
 0x3d2   :  { %512 = vmax.xlane.f32.xlu0 %v511_v0  ;;  %539 = vmax.xlane.f32.xlu1 %v538_v51 }
 0x3d3   :  { %521 = vmax.xlane.f32.xlu2 %v520_v42 }
 0x3da   :  { %527 = vmax.xlane.f32.xlu0 %v526_v7  ;;  %518 = vmax.xlane.f32.xlu1 %v517_v8 }
 0x3db   :  { %536 = vmax.xlane.f32.xlu2 %v535_v10 }
 0x3e2   :  { %542 = vmax.xlane.f32.xlu0 %v541_v15  ;;  %545 = vmax.xlane.f32.xlu1 %v544_v16 }
 0x3ea   :  { %533 = vmax.xlane.f32.xlu0 %v532_v23  ;;  %524 = vmax.xlane.f32.xlu1 %v523_v24 }
 0x3f2   :  { %548 = vmax.xlane.f32.xlu0 %v547_v28 }
 0x42d   :  { %v4473_v29 = vpop.xlane.xlu2 %503 }
 0x435   :  { %v4475_v30 = vpop.xlane.xlu1 %506  ;;  %v516_v31 = vpop.xlane.xlu2 %515 }
 0x436   :  { %v554_v36 = vsub.f32 %v4428_v37, %v516_v31 }
 0x438   :  { %v574_v48 = vmul.f32 1.442695, %v554_v36 }
 0x43d   :  { %v4477_v32 = vpop.xlane.xlu1 %509  ;;  %v531_v34 = vpop.xlane.xlu2 %530 }
 0x43e   :  { %v559_v22 = vsub.f32 %v450_v46, %v531_v34 }
 0x440   :  { %v584_v38 = vmul.f32 1.442695, %v559_v22 }
 0x442   :  { %3881 = vpow2.f32 %v584_v38 }
 0x445   :  { %v540_v39 = vpop.xlane.xlu1 %539  ;;  %v4479_v41 = vpop.xlane.xlu0 %512 }
 0x446   :  { %v562_v43 = vsub.f32 %v493_v58, %v540_v39 }
 0x448   :  { %v590_v45 = vmul.f32 1.442695, %v562_v43  ;;  %v4482_v44 = vpop.eup %3881 }
 0x449   :  { %v625_v47 = vsel %vm120_vm2, %v4482_v44, 0.0 }
 0x44a   :  { %3883 = vpow2.f32 %v590_v45  ;;  %626 = vadd.xlane.f32.xlu1 %v625_v47 }
 0x44b   :  { %3885 = vpow2.f32 %v574_v48 }
 0x44d   :  { %v528_v52 = vpop.xlane.xlu0 %527  ;;  %v519_v37 = vpop.xlane.xlu1 %518 }
 0x44e   :  { %v558_v53 = vsub.f32 %v448_v4, %v528_v52  ;;  %v555_v42 = vsub.f32 %v4450_v5, %v519_v37 }
 0x450   :  { %v4486_v46 = vpop.eup %3883  ;;  %v582_v55 = vmul.f32 1.442695, %v558_v53  ;;  %v576_v4 = vmul.f32 1.442695, %v555_v42 }
 0x451   :  { %v634_v56 = vsel %vm120_vm2, %v4486_v46, 0.0  ;;  %v4490_v60 = vpop.eup %3885 }
 0x452   :  { %635 = vadd.xlane.f32.xlu0 %v634_v56  ;;  %3887 = vpow2.f32 %v582_v55  ;;  %v610_v0 = vsel %vm120_vm2, %v4490_v60, 0.0  ;;  %v550_v55 = vsub.f32 %v4424_v35, %v4473_v29 }
 0x455   :  { %v543_v58 = vpop.xlane.xlu0 %542  ;;  %v546_v7 = vpop.xlane.xlu1 %545 }
 0x456   :  { %v563_v61 = vsub.f32 %v495_v13, %v543_v58  ;;  %v564_v9 = vsub.f32 %v498_v14, %v546_v7  ;;  %v522_v13 = vpop.xlane.xlu2 %521  ;;  %v552_v58 = vsub.f32 %v4436_v50, %v4477_v32 }
 0x457   :  { %v556_v16 = vsub.f32 %v4441_v59, %v522_v13 }
 0x458   :  { %v592_v63 = vmul.f32 1.442695, %v563_v61  ;;  %v4494_v51 = vpop.eup %3887  ;;  %v594_v5 = vmul.f32 1.442695, %v564_v9  ;;  %v570_v29 = vmul.f32 1.442695, %v552_v58 }
 0x459   :  { %v622_v2 = vsel %vm120_vm2, %v4494_v51, 0.0  ;;  %v578_v23 = vmul.f32 1.442695, %v556_v16 }
 0x45a   :  { %611 = vadd.xlane.f32.xlu0 %v610_v0  ;;  %3889 = vpow2.f32 %v592_v63  ;;  %623 = vadd.xlane.f32.xlu2 %v622_v2  ;;  %v553_v63 = vsub.f32 %v4443_v62, %v4479_v41 }
 0x45b   :  { %3891 = vpow2.f32 %v576_v4 }
 0x45c   :  { %3893 = vpow2.f32 %v594_v5  ;;  %v572_v0 = vmul.f32 1.442695, %v553_v63 }
 0x45d   :  { %v525_v14 = vpop.xlane.xlu1 %524  ;;  %3895 = vpow2.f32 %v578_v23  ;;  %v534_v28 = vpop.xlane.xlu0 %533 }
 0x460   :  { %v4499_v8 = vpop.eup %3889 }
 0x461   :  { %v637_v10 = vsel %vm120_vm2, %v4499_v8, 0.0  ;;  %v4505_v15 = vpop.eup %3891 }
 0x462   :  { %638 = vadd.xlane.f32.xlu2 %v637_v10  ;;  %v613_v17 = vsel %vm120_vm2, %v4505_v15, 0.0  ;;  %v4512_v24 = vpop.eup %3893 }
 0x463   :  { %786 = vrot.lane.b32.xlu1 %v4383_v49, %s4251_s8  ;;  %v557_v49 = vsub.f32 %v4463_v21, %v525_v14  ;;  %v640_v26 = vsel %vm120_vm2, %v4512_v24, 0.0  ;;  %v4517_v31 = vpop.eup %3895  ;;  %v537_v21 = vpop.xlane.xlu2 %536 }
 0x464   :  { %v616_v34 = vsel %vm120_vm2, %v4517_v31, 0.0  ;;  %v561_v45 = vsub.f32 %v4452_v6, %v537_v21  ;;  %v566_v6 = vmul.f32 1.442695, %v550_v55 }
 0x465   :  { %v580_v59 = vmul.f32 1.442695, %v557_v49  ;;  %v549_v39 = vpop.xlane.xlu0 %548 }
 0x466   :  { %v565_v36 = vsub.f32 %v4469_v27, %v549_v39  ;;  %v588_v52 = vmul.f32 1.442695, %v561_v45 }
 0x467   :  { %3897 = vpow2.f32 %v580_v59 }
 0x468   :  { %v596_v47 = vmul.f32 1.442695, %v565_v36 }
 0x46a   :  { %614 = vadd.xlane.f32.xlu2 %v613_v17 }
 0x46d   :  { %v4522_v22 = vpop.eup %3897 }
 0x46e   :  { %827 = vrot.lane.b32.xlu0 %v4394_v3, %s4251_s8  ;;  %v560_v3 = vsub.f32 %v4461_v19, %v534_v28  ;;  %v619_v43 = vsel %vm120_vm2, %v4522_v22, 0.0  ;;  %v551_v19 = vsub.f32 %v4430_v40, %v4475_v30 }
 0x470   :  { %v586_v38 = vmul.f32 1.442695, %v560_v3  ;;  %v568_v27 = vmul.f32 1.442695, %v551_v19 }
 0x472   :  { %641 = vadd.xlane.f32.xlu2 %v640_v26  ;;  %3899 = vpow2.f32 %v586_v38 }
 0x473   :  { %3901 = vpow2.f32 %v596_v47 }
 0x474   :  { %3903 = vpow2.f32 %v588_v52 }
 0x475   :  { %3905 = vpow2.f32 %v568_v27 }
 0x476   :  { %3907 = vpow2.f32 %v566_v6 }
 0x477   :  { %3909 = vpow2.f32 %v570_v29 }
 0x478   :  { %v4528_v48 = vpop.eup %3899  ;;  %3911 = vpow2.f32 %v572_v0 }
 0x479   :  { %v628_v53 = vsel %vm120_vm2, %v4528_v48, 0.0  ;;  %v4536_v56 = vpop.eup %3901 }
 0x47a   :  { %617 = vadd.xlane.f32.xlu2 %v616_v34  ;;  %v4538_v37 = vpop.eup %3903  ;;  %v643_v40 = vsel %vm120_vm2, %v4536_v56, 0.0 }
 0x47b   :  { %v631_v35 = vsel %vm120_vm2, %v4538_v37, 0.0  ;;  %v4546_v30 = vpop.eup %3905 }
 0x47c   :  { %v4548_v61 = vpop.eup %3907  ;;  %v601_v50 = vsel %vm120_vm2, %v4546_v30, 0.0 }
 0x47d   :  { %v598_v32 = vsel %vm120_vm2, %v4548_v61, 0.0  ;;  %v4558_v42 = vpop.eup %3909 }
 0x47e   :  { %v604_v2 = vsel %vm120_vm2, %v4558_v42, 0.0  ;;  %v4562_v62 = vpop.eup %3911 }
 0x482   :  { %620 = vadd.xlane.f32.xlu2 %v619_v43 }
 0x48d   :  { %629 = vadd.xlane.f32.xlu1 %v628_v53 }
 0x495   :  { %644 = vadd.xlane.f32.xlu1 %v643_v40 }
 0x498   :  { %632 = vadd.xlane.f32.xlu0 %v631_v35 }
 0x49a   :  { %706 = vrot.lane.b32.xlu2 %v4370_v11, %s4251_s8  ;;  %v607_v11 = vsel %vm120_vm2, %v4562_v62, 0.0 }
 0x49d   :  { %602 = vadd.xlane.f32.xlu1 %v601_v50 }
 0x4a0   :  { %599 = vadd.xlane.f32.xlu0 %v598_v32 }
 0x4a5   :  { %605 = vadd.xlane.f32.xlu1 %v604_v2 }
 0x4ad   :  { %608 = vadd.xlane.f32.xlu1 %v607_v11 }
 0x4b4   :  { %704 = vrot.lane.b32.xlu0 %v4365_v1, %s4251_s8 }
 0x4bd   :  { %v627_v41 = vpop.xlane.xlu1 %626 }
 0x4be   :  { %3913 = vrcp.f32 %v627_v41 }
 0x4c4   :  { %v3914_v9 = vpop.eup %3913 }
 0x4c5   :  { %v636_v4 = vpop.xlane.xlu0 %635  ;;  %v671_v10 = vmul.f32 %v3914_v9, %v4482_v44 }
 0x4c7   :  { %v687_v16 = vpack.c.bf16 %v671_v10, %v671_v10 }
 0x4c9   :  { %v781_v26 = vunpack.c.l.b16 %v687_v16 }
 0x4cd   :  { %v624_v7 = vpop.xlane.xlu2 %623  ;;  %v612_v23 = vpop.xlane.xlu0 %611 }
 0x4ce   :  { %3915 = vrcp.f32 %v624_v7 }
 0x4cf   :  { %3917 = vrcp.f32 %v636_v4 }
 0x4d4   :  { %v3916_v5 = vpop.eup %3915 }
 0x4d5   :  { %v787_v13 = vpop.permute.xlu1 %786  ;;  %v670_v17 = vmul.f32 %v3916_v5, %v4494_v51  ;;  %v639_v14 = vpop.xlane.xlu2 %638 }
 0x4d6   :  { %805 = vmatpush.bf16.msra.mxu0 %v787_v13  ;;  %v3918_v49 = vpop.eup %3917  ;;  %3919 = vrcp.f32 %v639_v14 }
 0x4d7   :  { %v686_v1 = vpack.c.bf16 %v670_v17, %v670_v17  ;;  %3921 = vrcp.f32 %v612_v23  ;;  %v674_v59 = vmul.f32 %v3918_v49, %v4486_v46 }
 0x4d9   :  { %v780_v28 = vunpack.c.l.b16 %v686_v1  ;;  %v690_v38 = vpack.c.bf16 %v674_v59, %v674_v59 }
 0x4db   :  { %v784_v34 = vpack.c.b16 %v781_v26, %v780_v28  ;;  %v821_v36 = vunpack.c.l.b16 %v690_v38 }
 0x4dc   :  { %v3920_v3 = vpop.eup %3919 }
 0x4dd   :  { %v675_v44 = vmul.f32 %v3920_v3, %v4499_v8  ;;  %3550 = vmatmul.msk.bf16.vlgmr.msra.gmra.mxu0 %vm120_vm2, %v784_v34  ;;  %v615_v39 = vpop.xlane.xlu2 %614  ;;  %v3922_v51 = vpop.eup %3921 }
 0x4de   :  { %3923 = vrcp.f32 %v615_v39  ;;  %v666_v45 = vmul.f32 %v3922_v51, %v4490_v60 }
 0x4df   :  { %v691_v43 = vpack.c.bf16 %v675_v44, %v675_v44 }
 0x4e0   :  { %v828_v21 = vpop.permute.xlu0 %827  ;;  %v682_v19 = vpack.c.bf16 %v666_v45, %v666_v45 }
 0x4e1   :  { %846 = vmatpush.bf16.msra.mxu1 %v828_v21  ;;  %v822_v46 = vunpack.c.l.b16 %v691_v43 }
 0x4e2   :  { %v739_v27 = vunpack.c.l.b16 %v682_v19 }
 0x4e3   :  { %v825_v47 = vpack.c.b16 %v822_v46, %v821_v36 }
 0x4e4   :  { %v3924_v52 = vpop.eup %3923 }
 0x4e5   :  { %1424 = vmatpush.bf16.msrb.mxu1 %v4345_v54  ;;  %v667_v8 = vmul.f32 %v3924_v52, %v4505_v15  ;;  %v642_v53 = vpop.xlane.xlu2 %641 }
 0x4e6   :  { %3552 = vmatmul.msk.bf16.vlgmr.msra.gmra.mxu1 %vm120_vm2, %v825_v47 }
 0x4e7   :  { %v683_v55 = vpack.c.bf16 %v667_v8, %v667_v8 }
 0x4e9   :  { %1425 = vmatpush.bf16.msrb.mxu1 %v4352_v57  ;;  %v740_v6 = vunpack.c.l.b16 %v683_v55 }
 0x4eb   :  { %v743_v58 = vpack.c.b16 %v740_v6, %v739_v27 }
 0x4ed   :  { %v618_v40 = vpop.xlane.xlu2 %617  ;;  %3548 = vmatmul.msk.bf16.vlgmr.msrb.gmra.mxu3 %vm120_vm2, %v743_v58 }
 0x4ee   :  { %3925 = vrcp.f32 %v618_v40 }
 0x4f4   :  { %v3926_v60 = vpop.eup %3925 }
 0x4f5   :  { %v621_v54 = vpop.xlane.xlu2 %620  ;;  %v668_v35 = vmul.f32 %v3926_v60, %v4517_v31 }
 0x4f6   :  { %3927 = vrcp.f32 %v621_v54 }
 0x4f7   :  { %v684_v63 = vpack.c.bf16 %v668_v35, %v668_v35  ;;  %3929 = vrcp.f32 %v642_v53 }
 0x4f9   :  { %v741_v0 = vunpack.c.l.b16 %v684_v63 }
 0x4fc   :  { %v3928_v57 = vpop.eup %3927 }
 0x4fd   :  { %v707_v29 = vpop.permute.xlu2 %706  ;;  %v669_v15 = vmul.f32 %v3928_v57, %v4522_v22  ;;  %v3930_v4 = vpop.eup %3929 }
 0x4fe   :  { %722 = vmatpush.bf16.msra.mxu2 %v707_v29  ;;  %v676_v9 = vmul.f32 %v3930_v4, %v4512_v24 }
 0x4ff   :  { %v685_v32 = vpack.c.bf16 %v669_v15, %v669_v15 }
 0x500   :  { %v630_v50 = vpop.xlane.xlu1 %629  ;;  %v692_v16 = vpack.c.bf16 %v676_v9, %v676_v9 }
 0x501   :  { %v742_v2 = vunpack.c.l.b16 %v685_v32  ;;  %3931 = vrcp.f32 %v630_v50 }
 0x502   :  { %v823_v26 = vunpack.c.l.b16 %v692_v16 }
 0x503   :  { %v744_v11 = vpack.c.b16 %v742_v2, %v741_v0 }
 0x505   :  { %3549 = vmatmul.msk.bf16.gmra.mxu3 %vm120_vm2, %v744_v11 }
 0x507   :  { %v3932_v31 = vpop.eup %3931 }
 0x508   :  { %v645_v41 = vpop.xlane.xlu1 %644  ;;  %v672_v22 = vmul.f32 %v3932_v31, %v4528_v48  ;;  %v3653_v31 = vld [vmem:[%s5570_s2 + $0x14] sm:$0xff] }
 0x509   :  { %3933 = vrcp.f32 %v645_v41 }
 0x50a   :  { %v688_v1 = vpack.c.bf16 %v672_v22, %v672_v22 }
 0x50b   :  { %v633_v7 = vpop.xlane.xlu0 %632 }
 0x50c   :  { %3935 = vrcp.f32 %v633_v7  ;;  %v782_v24 = vunpack.c.l.b16 %v688_v1  ;;  %v3654_v7 = vld [vmem:[%s5570_s2 + $0x1c] sm:$0xff] }
 0x50f   :  { %v3934_v10 = vpop.eup %3933 }
 0x510   :  { %v603_v5 = vpop.xlane.xlu1 %602  ;;  %v677_v13 = vmul.f32 %v3934_v10, %v4536_v56 }
 0x512   :  { %v3936_v17 = vpop.eup %3935  ;;  %v693_v14 = vpack.c.bf16 %v677_v13, %v677_v13 }
 0x513   :  { %v600_v23 = vpop.xlane.xlu0 %599  ;;  %v673_v49 = vmul.f32 %v3936_v17, %v4538_v37 }
 0x514   :  { %3937 = vrcp.f32 %v600_v23  ;;  %v824_v59 = vunpack.c.l.b16 %v693_v14 }
 0x515   :  { %3939 = vrcp.f32 %v603_v5  ;;  %v689_v28 = vpack.c.bf16 %v673_v49, %v673_v49 }
 0x516   :  { %v826_v34 = vpack.c.b16 %v824_v59, %v823_v26 }
 0x517   :  { %v783_v3 = vunpack.c.l.b16 %v689_v28 }
 0x518   :  { %v606_v48 = vpop.xlane.xlu1 %605  ;;  %3553 = vmatmul.msk.bf16.gmra.mxu1 %vm120_vm2, %v826_v34 }
 0x519   :  { %v785_v38 = vpack.c.b16 %v783_v3, %v782_v24 }
 0x51a   :  { %v3938_v56 = vpop.eup %3937 }
 0x51b   :  { %v3940_v44 = vpop.eup %3939  ;;  %3551 = vmatmul.msk.bf16.gmra.mxu0 %vm120_vm2, %v785_v38  ;;  %v662_v39 = vmul.f32 %v3938_v56, %v4548_v61 }
 0x51c   :  { %v663_v37 = vmul.f32 %v3940_v44, %v4546_v30 }
 0x51d   :  { %v678_v51 = vpack.c.bf16 %v662_v39, %v662_v39 }
 0x51e   :  { %v679_v43 = vpack.c.bf16 %v663_v37, %v663_v37 }
 0x51f   :  { %v698_v36 = vunpack.c.l.b16 %v678_v51 }
 0x520   :  { %v609_v21 = vpop.xlane.xlu1 %608  ;;  %v699_v45 = vunpack.c.l.b16 %v679_v43 }
 0x521   :  { %3941 = vrcp.f32 %v609_v21 }
 0x522   :  { %3943 = vrcp.f32 %v606_v48  ;;  %v702_v47 = vpack.c.b16 %v699_v45, %v698_v36 }
 0x526   :  { %v705_v46 = vpop.permute.xlu0 %704 }
 0x527   :  { %723 = vmatpush.bf16.msra.mxu2 %v705_v46  ;;  %v3942_v52 = vpop.eup %3941 }
 0x528   :  { %v3944_v19 = vpop.eup %3943  ;;  %v665_v8 = vmul.f32 %v3942_v52, %v4562_v62 }
 0x529   :  { %v664_v61 = vmul.f32 %v3944_v19, %v4558_v42 }
 0x52a   :  { %3546 = vmatmul.msk.bf16.vlgmr.msra.gmra.mxu2 %vm120_vm2, %v702_v47  ;;  %v681_v53 = vpack.c.bf16 %v665_v8, %v665_v8 }
 0x52b   :  { %v680_v30 = vpack.c.bf16 %v664_v61, %v664_v61  ;;  %947 = vmatpush.bf16.msrb.mxu2 %v3654_v7 }
 0x52c   :  { %v701_v55 = vunpack.c.l.b16 %v681_v53 }
 0x52d   :  { %v700_v27 = vunpack.c.l.b16 %v680_v30 }
 0x52f   :  { %v703_v6 = vpack.c.b16 %v701_v55, %v700_v27  ;;  %948 = vmatpush.bf16.msrb.mxu2 %v3653_v31  ;;  %v3864_v55 = vld [vmem:[#allocation2 + $0x2] ss:$0 sm:$0xff] }
 0x53a   :  { %3547 = vmatmul.msk.bf16.gmra.mxu2 %vm120_vm2, %v703_v6 }
 0x55a   :  { %v807_v58 = vpop.f32.mrf.mxu0 }
 0x562   :  { %v809_v40 = vpop.f32.mrf.mxu0 }
 0x563   :  { %v848_v54 = vpop.f32.mrf.mxu1  ;;  %v3713_v60 = vpack.i.bf16 %v809_v40, %v807_v58 }
 0x565   :  { %3714 = vrot.lane.b32.xlu0 %v3713_v60, %s4252_s9 }
 0x56b   :  { %v850_v35 = vpop.f32.mrf.mxu1 }
 0x56c   :  { %v3718_v57 = vpack.i.bf16 %v850_v35, %v848_v54 }
 0x56e   :  { %3719 = vrot.lane.b32.xlu2 %v3718_v57, %s4253_s10 }
 0x570   :  { %v766_v42 = vpop.f32.mrf.mxu3 }
 0x578   :  { %v768_v62 = vpop.f32.mrf.mxu3 }
 0x579   :  { %v3708_v29 = vpack.i.bf16 %v768_v62, %v766_v42 }
 0x57b   :  { %3709 = vrot.lane.b32.xlu1 %v3708_v29, %s4245_s18 }
 0x588   :  { %v771_v15 = vpop.f32.mrf.mxu3 }
 0x590   :  { %v773_v63 = vpop.f32.mrf.mxu3 }
 0x591   :  { %v3728_v50 = vpack.i.bf16 %v773_v63, %v771_v15 }
 0x593   :  { %3729 = vrot.lane.b32.xlu0 %v3728_v50, %s4245_s18 }
 0x595   :  { %v853_v32 = vpop.f32.mrf.mxu1 }
 0x598   :  { %v812_v0 = vpop.f32.mrf.mxu0 }
 0x59d   :  { %v855_v2 = vpop.f32.mrf.mxu1 }
 0x59e   :  { %v3733_v11 = vpack.i.bf16 %v855_v2, %v853_v32 }
 0x5a0   :  { %v814_v41 = vpop.f32.mrf.mxu0  ;;  %3734 = vrot.lane.b32.xlu0 %v3733_v11, %s4253_s10 }
 0x5a1   :  { %v3723_v4 = vpack.i.bf16 %v814_v41, %v812_v0 }
 0x5a3   :  { %3724 = vrot.lane.b32.xlu2 %v3723_v4, %s4252_s9 }
 0x5ad   :  { %v725_v9 = vpop.f32.mrf.mxu2 }
 0x5b5   :  { %v727_v17 = vpop.f32.mrf.mxu2 }
 0x5bd   :  { %v730_v38 = vpop.f32.mrf.mxu2 }
 0x5c5   :  { %v732_v51 = vpop.f32.mrf.mxu2 }
 0x5c8   :  { %v3720_v10 = vpop.permute.xlu2 %3719 }
 0x5c9   :  { %v3722_v49 = vunpack.i.h.bf16 %v3720_v10  ;;  %v3721_v1 = vunpack.i.l.bf16 %v3720_v10 }
 0x5d7   :  { %v3715_v22 = vpop.permute.xlu0 %3714 }
 0x5d8   :  { %v3717_v23 = vunpack.i.h.bf16 %v3715_v22  ;;  %v3716_v14 = vunpack.i.l.bf16 %v3715_v22 }
 0x5ed   :  { %v3710_v5 = vpop.permute.xlu1 %3709 }
 0x5ee   :  { %v3712_v13 = vunpack.i.h.bf16 %v3710_v5  ;;  %v3711_v16 = vunpack.i.l.bf16 %v3710_v5 }
 0x5f0   :  { %v906_v26 = vsel %vm86_vm1, %v725_v9, %v3711_v16  ;;  %v907_v59 = vsel %vm86_vm1, %v727_v17, %v3712_v13 }
 0x5f1   :  { %v911_v28 = vsel %vm910_vm0, %v906_v26, %v3716_v14  ;;  %v912_v34 = vsel %vm910_vm0, %v907_v59, %v3717_v23 }
 0x5f2   :  { %v916_v24 = vsel %vm915_vm3, %v911_v28, %v3721_v1  ;;  %v917_v3 = vsel %vm915_vm3, %v912_v34, %v3722_v49  ;;  %v4663_v1 = vld [vmem:[%s5570_s2 + $0x2c] sm:$0xff]  ;;  %v4670_v28 = vld [vmem:[%s5570_s2 + $0x24] sm:$0xff] }
 0x5f3   :  { %v920_v48 = vpack.c.bf16 %v917_v3, %v916_v24  ;;  %1089 = vmatpush.bf16.msra.mxu3 %v4663_v1 }
 0x5f5   :  { %3562 = vmatmul.msk.bf16.vlgmr.msrb.gmra.mxu2 %vm120_vm2, %v920_v48 }
 0x5f7   :  { %1090 = vmatpush.bf16.msra.mxu3 %v4670_v28 }
 0x5fd   :  { %v3725_v37 = vpop.permute.xlu2 %3724 }
 0x5fe   :  { %v3727_v36 = vunpack.i.h.bf16 %v3725_v37  ;;  %v3726_v45 = vunpack.i.l.bf16 %v3725_v37 }
 0x605   :  { %v3730_v56 = vpop.permute.xlu0 %3729 }
 0x606   :  { %v3732_v44 = vunpack.i.h.bf16 %v3730_v56  ;;  %v3731_v39 = vunpack.i.l.bf16 %v3730_v56 }
 0x608   :  { %v909_v21 = vsel %vm86_vm1, %v732_v51, %v3732_v44  ;;  %v908_v43 = vsel %vm86_vm1, %v730_v38, %v3731_v39 }
 0x609   :  { %v913_v19 = vsel %vm910_vm0, %v908_v43, %v3726_v45  ;;  %v914_v8 = vsel %vm910_vm0, %v909_v21, %v3727_v36 }
 0x612   :  { %v3735_v46 = vpop.permute.xlu0 %3734 }
 0x613   :  { %v3737_v47 = vunpack.i.h.bf16 %v3735_v46  ;;  %v3736_v52 = vunpack.i.l.bf16 %v3735_v46 }
 0x615   :  { %v918_v61 = vsel %vm915_vm3, %v913_v19, %v3736_v52  ;;  %v919_v53 = vsel %vm915_vm3, %v914_v8, %v3737_v47  ;;  %v3865_v52 = vld [vmem:[#allocation2 + $0x7] ss:$0 sm:$0xff] }
 0x616   :  { %v921_v30 = vpack.c.bf16 %v919_v53, %v918_v61 }
 0x618   :  { %3563 = vmatmul.msk.bf16.gmra.mxu2 %vm120_vm2, %v921_v30 }
 0x678   :  { %v950_v27 = vpop.f32.mrf.mxu2 }
 0x679   :  { %v951_v6 = vadd.f32 %v3864_v55, %v950_v27 }
 0x67b   :  { %v4621_v58 = vadd.f32 %v951_v6, %v4296_v12 }
 0x67d   :  { %v964_v40 = vsel %vm120_vm2, %v4621_v58, 0.0 }
 0x67e   :  { %965 = vadd.xlane.f32.xlu2 %v964_v40 }
 0x680   :  { %v952_v54 = vpop.f32.mrf.mxu2 }
 0x681   :  { %v953_v60 = vadd.f32 %v3864_v55, %v952_v54 }
 0x683   :  { %v4626_v35 = vadd.f32 %v953_v60, %v4302_v20 }
 0x685   :  { %v967_v57 = vsel %vm120_vm2, %v4626_v35, 0.0 }
 0x686   :  { %968 = vadd.xlane.f32.xlu1 %v967_v57 }
 0x69b   :  { %v955_v42 = vpop.f32.mrf.mxu2 }
 0x69c   :  { %v956_v62 = vadd.f32 %v3864_v55, %v955_v42 }
 0x69e   :  { %v4631_v29 = vadd.f32 %v956_v62, %v4300_v18 }
 0x6a0   :  { %v970_v12 = vsel %vm120_vm2, %v4631_v29, 0.0 }
 0x6a1   :  { %971 = vadd.xlane.f32.xlu0 %v970_v12 }
 0x6a3   :  { %v957_v15 = vpop.f32.mrf.mxu2 }
 0x6a4   :  { %v958_v63 = vadd.f32 %v3864_v55, %v957_v15  ;;  %v3866_v55 = vld [vmem:[#allocation2 + $0x8] ss:$0 sm:$0xff] }
 0x6a6   :  { %v4636_v50 = vadd.f32 %v958_v63, %v4308_v25 }
 0x6a8   :  { %v973_v20 = vsel %vm120_vm2, %v4636_v50, 0.0 }
 0x6a9   :  { %974 = vadd.xlane.f32.xlu2 %v973_v20 }
 0x6f1   :  { %v966_v32 = vpop.xlane.xlu2 %965 }
 0x6f2   :  { %v976_v0 = vmul.f32 %v966_v32, %v4312_v33 }
 0x6f4   :  { %v980_v2 = vsub.f32 %v4621_v58, %v976_v0 }
 0x6f6   :  { %v984_v18 = vmul.f32 %v980_v2, %v980_v2 }
 0x6f8   :  { %v988_v11 = vsel %vm120_vm2, %v984_v18, 0.0 }
 0x6f9   :  { %v969_v41 = vpop.xlane.xlu1 %968  ;;  %989 = vadd.xlane.f32.xlu1 %v988_v11 }
 0x6fa   :  { %v977_v4 = vmul.f32 %v969_v41, %v4312_v33 }
 0x6fc   :  { %v981_v7 = vsub.f32 %v4626_v35, %v977_v4 }
 0x6fe   :  { %v985_v25 = vmul.f32 %v981_v7, %v981_v7 }
 0x700   :  { %v991_v31 = vsel %vm120_vm2, %v985_v25, 0.0 }
 0x701   :  { %992 = vadd.xlane.f32.xlu0 %v991_v31 }
 0x714   :  { %v972_v9 = vpop.xlane.xlu0 %971 }
 0x715   :  { %v978_v22 = vmul.f32 %v972_v9, %v4312_v33 }
 0x717   :  { %v4648_v10 = vsub.f32 %v4631_v29, %v978_v22 }
 0x719   :  { %v986_v5 = vmul.f32 %v4648_v10, %v4648_v10 }
 0x71b   :  { %v994_v13 = vsel %vm120_vm2, %v986_v5, 0.0 }
 0x71c   :  { %995 = vadd.xlane.f32.xlu2 %v994_v13  ;;  %v975_v16 = vpop.xlane.xlu2 %974 }
 0x71d   :  { %v979_v17 = vmul.f32 %v975_v16, %v4312_v33 }
 0x71f   :  { %v4655_v23 = vsub.f32 %v4636_v50, %v979_v17 }
 0x721   :  { %v987_v14 = vmul.f32 %v4655_v23, %v4655_v23 }
 0x723   :  { %v997_v49 = vsel %vm120_vm2, %v987_v14, 0.0 }
 0x724   :  { %998 = vadd.xlane.f32.xlu1 %v997_v49 }
 0x76c   :  { %v990_v26 = vpop.xlane.xlu1 %989 }
 0x76d   :  { %v1000_v59 = vmul.f32 %v990_v26, %v4312_v33 }
 0x76f   :  { %v1004_v34 = vadd.f32 1e-05, %v1000_v59  ;;  %v3664_v59 = vld [vmem:[%s5570_s2 + $0x6c] sm:$0xff] }
 0x770   :  { %1189 = vmatpush.bf16.msrb.mxu0 %v3664_v59 }
 0x771   :  { %3945 = vrsqrt.f32 %v1004_v34  ;;  %vm1014_vm5 = vweird.f32 %v1004_v34 }
 0x774   :  { %v993_v24 = vpop.xlane.xlu0 %992 }
 0x775   :  { %v1001_v3 = vmul.f32 %v993_v24, %v4312_v33  ;;  %v3660_v24 = vld [vmem:[%s5570_s2 + $0x4c] sm:$0xff] }
 0x777   :  { %v3946_v48 = vpop.eup %3945  ;;  %v1005_v38 = vadd.f32 1e-05, %v1001_v3  ;;  %v3659_v3 = vld [vmem:[%s5570_s2 + $0x44] sm:$0xff] }
 0x778   :  { %v1009_v56 = vmul.f32 %v3946_v48, %v1004_v34  ;;  %vm1015_vm4 = vweird.f32 %v3946_v48  ;;  %v3661_v34 = vld [vmem:[%s5570_s2 + $0x54] sm:$0xff] }
 0x779   :  { %3947 = vrsqrt.f32 %v1005_v38  ;;  %vm1016_vm6 = vmor %vm1014_vm5, %vm1015_vm4  ;;  %vm1024_vm8 = vweird.f32 %v1005_v38 }
 0x77a   :  { %v1010_v44 = vmul.f32 %v3946_v48, %v1009_v56  ;;  %v3867_v56 = vld [vmem:[#allocation2 + $0x3] ss:$0 sm:$0xff] }
 0x77c   :  { %v1011_v39 = vmul.f32 0.5, %v1010_v44 }
 0x77e   :  { %v1012_v37 = vsub.f32 1.5, %v1011_v39 }
 0x77f   :  { %v3948_v51 = vpop.eup %3947 }
 0x780   :  { %v1013_v21 = vmul.f32 %v3946_v48, %v1012_v37  ;;  %v1019_v43 = vmul.f32 %v3948_v51, %v1005_v38  ;;  %vm1025_vm7 = vweird.f32 %v3948_v51  ;;  %v3657_v38 = vld [vmem:[%s5570_s2 + $0x34] sm:$0xff] }
 0x781   :  { %vm1026_vm9 = vmor %vm1024_vm8, %vm1025_vm7 }
 0x782   :  { %v1020_v36 = vmul.f32 %v3948_v51, %v1019_v43  ;;  %v1017_v45 = vsel %vm1016_vm6, %v3946_v48, %v1013_v21  ;;  %v3658_v48 = vld [vmem:[%s5570_s2 + $0x3c] sm:$0xff] }
 0x783   :  { %v1048_v19 = vmul.f32 %v1017_v45, %v980_v2 }
 0x784   :  { %v1021_v46 = vmul.f32 0.5, %v1020_v36 }
 0x785   :  { %v1053_v53 = vmul.f32 %v3865_v52, %v1048_v19 }
 0x786   :  { %v1022_v47 = vsub.f32 1.5, %v1021_v46 }
 0x787   :  { %v1058_v54 = vadd.f32 %v3866_v55, %v1053_v53 }
 0x788   :  { %v1023_v8 = vmul.f32 %v3948_v51, %v1022_v47 }
 0x78a   :  { %v1027_v61 = vsel %vm1026_vm9, %v3948_v51, %v1023_v8 }
 0x78b   :  { %v1049_v30 = vmul.f32 %v1027_v61, %v981_v7 }
 0x78d   :  { %v1054_v27 = vmul.f32 %v3865_v52, %v1049_v30 }
 0x78f   :  { %v996_v6 = vpop.xlane.xlu2 %995  ;;  %v1059_v60 = vadd.f32 %v3866_v55, %v1054_v27 }
 0x790   :  { %v1002_v40 = vmul.f32 %v996_v6, %v4312_v33 }
 0x791   :  { %v1062_v42 = vpack.c.bf16 %v1059_v60, %v1058_v54 }
 0x792   :  { %v1006_v57 = vadd.f32 1e-05, %v1002_v40 }
 0x793   :  { %3572 = vmatmul.msk.bf16.vlgmr.msra.gmra.mxu3 %vm120_vm2, %v1062_v42 }
 0x794   :  { %3949 = vrsqrt.f32 %v1006_v57  ;;  %vm1034_vm11 = vweird.f32 %v1006_v57 }
 0x797   :  { %v999_v62 = vpop.xlane.xlu1 %998 }
 0x798   :  { %v1003_v12 = vmul.f32 %v999_v62, %v4312_v33 }
 0x79a   :  { %v3950_v15 = vpop.eup %3949  ;;  %v1007_v63 = vadd.f32 1e-05, %v1003_v12 }
 0x79b   :  { %v1029_v20 = vmul.f32 %v3950_v15, %v1006_v57  ;;  %vm1035_vm10 = vweird.f32 %v3950_v15 }
 0x79c   :  { %3951 = vrsqrt.f32 %v1007_v63  ;;  %vm1036_vm12 = vmor %vm1034_vm11, %vm1035_vm10  ;;  %vm1044_vm14 = vweird.f32 %v1007_v63 }
 0x79d   :  { %v1030_v32 = vmul.f32 %v3950_v15, %v1029_v20 }
 0x79f   :  { %v1031_v0 = vmul.f32 0.5, %v1030_v32 }
 0x7a1   :  { %v1032_v2 = vsub.f32 1.5, %v1031_v0 }
 0x7a2   :  { %v3952_v18 = vpop.eup %3951 }
 0x7a3   :  { %v1033_v11 = vmul.f32 %v3950_v15, %v1032_v2  ;;  %v1039_v41 = vmul.f32 %v3952_v18, %v1007_v63  ;;  %vm1045_vm13 = vweird.f32 %v3952_v18 }
 0x7a4   :  { %vm1046_vm15 = vmor %vm1044_vm14, %vm1045_vm13 }
 0x7a5   :  { %v1040_v4 = vmul.f32 %v3952_v18, %v1039_v41  ;;  %v1037_v7 = vsel %vm1036_vm12, %v3950_v15, %v1033_v11 }
 0x7a6   :  { %v1050_v9 = vmul.f32 %v1037_v7, %v4648_v10  ;;  %v3663_v10 = vld [vmem:[%s5570_s2 + $0x64] sm:$0xff] }
 0x7a7   :  { %v1041_v25 = vmul.f32 0.5, %v1040_v4  ;;  %1190 = vmatpush.bf16.msrb.mxu0 %v3663_v10 }
 0x7a8   :  { %v1055_v16 = vmul.f32 %v3865_v52, %v1050_v9 }
 0x7a9   :  { %v1042_v31 = vsub.f32 1.5, %v1041_v25 }
 0x7aa   :  { %v1060_v14 = vadd.f32 %v3866_v55, %v1055_v16 }
 0x7ab   :  { %v1043_v22 = vmul.f32 %v3952_v18, %v1042_v31 }
 0x7ad   :  { %v1047_v5 = vsel %vm1046_vm15, %v3952_v18, %v1043_v22 }
 0x7ae   :  { %v1051_v13 = vmul.f32 %v1047_v5, %v4655_v23  ;;  %v3662_v23 = vld [vmem:[%s5570_s2 + $0x5c] sm:$0xff] }
 0x7af   :  { %1191 = vmatpush.bf16.msrb.mxu0 %v3662_v23 }
 0x7b0   :  { %v1056_v17 = vmul.f32 %v3865_v52, %v1051_v13 }
 0x7b2   :  { %v1061_v49 = vadd.f32 %v3866_v55, %v1056_v17 }
 0x7b3   :  { %1192 = vmatpush.bf16.msrb.mxu0 %v3661_v34 }
 0x7b4   :  { %v1063_v26 = vpack.c.bf16 %v1061_v49, %v1060_v14  ;;  %v3868_v49 = vld [vmem:[#allocation2 + $0x4] ss:$0 sm:$0xff] }
 0x7b6   :  { %3573 = vmatmul.msk.bf16.gmra.mxu3 %vm120_vm2, %v1063_v26 }
 0x7b7   :  { %1193 = vmatpush.bf16.msrb.mxu0 %v3660_v24 }
 0x7bb   :  { %1194 = vmatpush.bf16.msrb.mxu0 %v3659_v3 }
 0x7bf   :  { %1195 = vmatpush.bf16.msrb.mxu0 %v3658_v48 }
 0x7c3   :  { %1196 = vmatpush.bf16.msrb.mxu0 %v3657_v38 }
 0x816   :  { %v1092_v44 = vpop.f32.mrf.mxu3 }
 0x817   :  { %v1093_v39 = vadd.f32 %v3867_v56, %v1092_v44 }
 0x819   :  { %v1106_v37 = vmul.f32 0.044715, %v1093_v39  ;;  %v1102_v27 = vmul.f32 0.5, %v1093_v39 }
 0x81b   :  { %v1110_v51 = vmul.f32 %v1106_v37, %v1093_v39 }
 0x81d   :  { %v1114_v21 = vmul.f32 %v1110_v51, %v1093_v39 }
 0x81e   :  { %v1094_v43 = vpop.f32.mrf.mxu3 }
 0x81f   :  { %v1118_v36 = vadd.f32 %v1114_v21, %v1093_v39  ;;  %v1095_v45 = vadd.f32 %v3867_v56, %v1094_v43 }
 0x821   :  { %v1107_v46 = vmul.f32 0.044715, %v1095_v45  ;;  %v1122_v47 = vmul.f32 0.7978846, %v1118_v36  ;;  %v1103_v6 = vmul.f32 0.5, %v1095_v45 }
 0x823   :  { %v1111_v52 = vmul.f32 %v1107_v46, %v1095_v45  ;;  %3953 = vtanh.f32 %v1122_v47 }
 0x825   :  { %v1115_v19 = vmul.f32 %v1111_v52, %v1095_v45 }
 0x827   :  { %v1119_v8 = vadd.f32 %v1115_v19, %v1095_v45 }
 0x829   :  { %v1123_v61 = vmul.f32 0.7978846, %v1119_v8  ;;  %v3954_v53 = vpop.eup %3953 }
 0x82a   :  { %v1130_v30 = vadd.f32 1.0, %v3954_v53 }
 0x82b   :  { %3955 = vtanh.f32 %v1123_v61 }
 0x82c   :  { %v1134_v54 = vmul.f32 %v1130_v30, %v1102_v27 }
 0x831   :  { %v3956_v55 = vpop.eup %3955 }
 0x832   :  { %v1131_v40 = vadd.f32 1.0, %v3956_v55 }
 0x834   :  { %v1135_v60 = vmul.f32 %v1131_v40, %v1103_v6 }
 0x836   :  { %v1138_v57 = vpack.c.bf16 %v1135_v60, %v1134_v54 }
 0x838   :  { %1197 = vmatmul.bf16.vlgmr.msrb.gmra.mxu0 %v1138_v57 }
 0x839   :  { %v1097_v42 = vpop.f32.mrf.mxu3 }
 0x83a   :  { %v1098_v62 = vadd.f32 %v3867_v56, %v1097_v42 }
 0x83c   :  { %v1108_v12 = vmul.f32 0.044715, %v1098_v62  ;;  %v1104_v22 = vmul.f32 0.5, %v1098_v62 }
 0x83e   :  { %v1112_v15 = vmul.f32 %v1108_v12, %v1098_v62 }
 0x840   :  { %v1116_v63 = vmul.f32 %v1112_v15, %v1098_v62 }
 0x841   :  { %v1099_v20 = vpop.f32.mrf.mxu3 }
 0x842   :  { %v1100_v32 = vadd.f32 %v3867_v56, %v1099_v20  ;;  %v1120_v0 = vadd.f32 %v1116_v63, %v1098_v62 }
 0x844   :  { %v1109_v2 = vmul.f32 0.044715, %v1100_v32  ;;  %v1124_v11 = vmul.f32 0.7978846, %v1120_v0  ;;  %v1105_v5 = vmul.f32 0.5, %v1100_v32 }
 0x846   :  { %v1113_v18 = vmul.f32 %v1109_v2, %v1100_v32  ;;  %3957 = vtanh.f32 %v1124_v11 }
 0x848   :  { %v1117_v41 = vmul.f32 %v1113_v18, %v1100_v32 }
 0x84a   :  { %v1121_v4 = vadd.f32 %v1117_v41, %v1100_v32 }
 0x84c   :  { %v1125_v7 = vmul.f32 0.7978846, %v1121_v4  ;;  %v3958_v25 = vpop.eup %3957 }
 0x84d   :  { %v1132_v31 = vadd.f32 1.0, %v3958_v25 }
 0x84e   :  { %3959 = vtanh.f32 %v1125_v7  ;;  %v3869_v7 = vld [vmem:[#allocation2 + $0x9] ss:$0 sm:$0xff] }
 0x84f   :  { %v1136_v16 = vmul.f32 %v1132_v31, %v1104_v22  ;;  %v3870_v22 = vld [vmem:[#allocation2 + $0xa] ss:$0 sm:$0xff] }
 0x854   :  { %v3960_v9 = vpop.eup %3959 }
 0x855   :  { %v1133_v13 = vadd.f32 1.0, %v3960_v9 }
 0x857   :  { %v1137_v17 = vmul.f32 %v1133_v13, %v1105_v5 }
 0x859   :  { %v1139_v14 = vpack.c.bf16 %v1137_v17, %v1136_v16 }
 0x85b   :  { %1202 = vmatmul.bf16.gmra.mxu0 %v1139_v14 }
 0x8b5   :  { %v1198_v26 = vpop.f32.mrf.mxu0 }
 0x8b6   :  { %v1199_v59 = vadd.f32 %v3868_v49, %v1198_v26 }
 0x8b8   :  { %v1208_v10 = vadd.f32 %v1199_v59, %v4621_v58 }
 0x8ba   :  { %v1212_v23 = vsel %vm120_vm2, %v1208_v10, 0.0 }
 0x8bb   :  { %1213 = vadd.xlane.f32.xlu0 %v1212_v23 }
 0x8bd   :  { %v1200_v34 = vpop.f32.mrf.mxu0 }
 0x8be   :  { %v1201_v24 = vadd.f32 %v3868_v49, %v1200_v34 }
 0x8c0   :  { %v1209_v3 = vadd.f32 %v1201_v24, %v4626_v35 }
 0x8c2   :  { %v1215_v48 = vsel %vm120_vm2, %v1209_v3, 0.0 }
 0x8c3   :  { %1216 = vadd.xlane.f32.xlu2 %v1215_v48 }
 0x8d8   :  { %v1203_v38 = vpop.f32.mrf.mxu0 }
 0x8d9   :  { %v1204_v56 = vadd.f32 %v3868_v49, %v1203_v38 }
 0x8db   :  { %v1210_v44 = vadd.f32 %v1204_v56, %v4631_v29  ;;  %v4162_v56 = vld [vmem:[#allocation2 + $0x18] sm:$0xff] }
 0x8dd   :  { %v1218_v39 = vsel %vm120_vm2, %v1210_v44, 0.0 }
 0x8de   :  { %1219 = vadd.xlane.f32.xlu1 %v1218_v39 }
 0x8e0   :  { %v1205_v37 = vpop.f32.mrf.mxu0 }
 0x8e1   :  { %v1206_v51 = vadd.f32 %v3868_v49, %v1205_v37  ;;  %v4161_v49 = vld [vmem:[#allocation2 + $0x10] sm:$0xff] }
 0x8e3   :  { %v1211_v58 = vadd.f32 %v1206_v51, %v4636_v50 }
 0x8e5   :  { %v1221_v21 = vsel %vm120_vm2, %v1211_v58, 0.0 }
 0x8e6   :  { %1222 = vadd.xlane.f32.xlu0 %v1221_v21 }
 0x92e   :  { %v1214_v43 = vpop.xlane.xlu0 %1213 }
 0x92f   :  { %v1224_v35 = vmul.f32 %v1214_v43, %v4312_v33 }
 0x931   :  { %v1228_v36 = vsub.f32 %v1208_v10, %v1224_v35 }
 0x933   :  { %v1232_v45 = vmul.f32 %v1228_v36, %v1228_v36 }
 0x935   :  { %v1236_v46 = vsel %vm120_vm2, %v1232_v45, 0.0 }
 0x936   :  { %1237 = vadd.xlane.f32.xlu2 %v1236_v46  ;;  %v1217_v47 = vpop.xlane.xlu2 %1216 }
 0x937   :  { %v1225_v29 = vmul.f32 %v1217_v47, %v4312_v33 }
 0x939   :  { %v1229_v52 = vsub.f32 %v1209_v3, %v1225_v29 }
 0x93b   :  { %v1233_v19 = vmul.f32 %v1229_v52, %v1229_v52 }
 0x93d   :  { %v1239_v8 = vsel %vm120_vm2, %v1233_v19, 0.0 }
 0x93e   :  { %1240 = vadd.xlane.f32.xlu1 %v1239_v8 }
 0x951   :  { %v1220_v50 = vpop.xlane.xlu1 %1219 }
 0x952   :  { %v1226_v61 = vmul.f32 %v1220_v50, %v4312_v33 }
 0x954   :  { %v4717_v53 = vsub.f32 %v1210_v44, %v1226_v61 }
 0x956   :  { %v1234_v30 = vmul.f32 %v4717_v53, %v4717_v53 }
 0x958   :  { %v1242_v55 = vsel %vm120_vm2, %v1234_v30, 0.0 }
 0x959   :  { %v1223_v27 = vpop.xlane.xlu0 %1222  ;;  %1243 = vadd.xlane.f32.xlu0 %v1242_v55 }
 0x95a   :  { %v1227_v6 = vmul.f32 %v1223_v27, %v4312_v33 }
 0x95c   :  { %v4723_v40 = vsub.f32 %v1211_v58, %v1227_v6 }
 0x95e   :  { %v1235_v54 = vmul.f32 %v4723_v40, %v4723_v40 }
 0x960   :  { %v1245_v60 = vsel %vm120_vm2, %v1235_v54, 0.0 }
 0x961   :  { %1246 = vadd.xlane.f32.xlu2 %v1245_v60 }
 0x9a9   :  { %v1238_v57 = vpop.xlane.xlu2 %1237 }
 0x9aa   :  { %v1248_v42 = vmul.f32 %v1238_v57, %v4312_v33 }
 0x9ac   :  { %v1252_v62 = vadd.f32 1e-05, %v1248_v42 }
 0x9ae   :  { %3961 = vrsqrt.f32 %v1252_v62  ;;  %vm1262_vm5 = vweird.f32 %v1252_v62 }
 0x9b1   :  { %v1241_v12 = vpop.xlane.xlu1 %1240 }
 0x9b2   :  { %v1249_v15 = vmul.f32 %v1241_v12, %v4312_v33 }
 0x9b4   :  { %v3962_v63 = vpop.eup %3961  ;;  %v1253_v20 = vadd.f32 1e-05, %v1249_v15 }
 0x9b5   :  { %v1257_v32 = vmul.f32 %v3962_v63, %v1252_v62  ;;  %vm1263_vm4 = vweird.f32 %v3962_v63 }
 0x9b6   :  { %3963 = vrsqrt.f32 %v1253_v20  ;;  %vm1264_vm6 = vmor %vm1262_vm5, %vm1263_vm4  ;;  %vm1272_vm8 = vweird.f32 %v1253_v20 }
 0x9b7   :  { %v1258_v0 = vmul.f32 %v3962_v63, %v1257_v32 }
 0x9b9   :  { %v1259_v2 = vmul.f32 0.5, %v1258_v0 }
 0x9bb   :  { %v1260_v18 = vsub.f32 1.5, %v1259_v2 }
 0x9bc   :  { %v3964_v11 = vpop.eup %3963 }
 0x9bd   :  { %v1261_v41 = vmul.f32 %v3962_v63, %v1260_v18  ;;  %v1267_v4 = vmul.f32 %v3964_v11, %v1253_v20  ;;  %vm1273_vm7 = vweird.f32 %v3964_v11 }
 0x9be   :  { %vm1274_vm9 = vmor %vm1272_vm8, %vm1273_vm7 }
 0x9bf   :  { %v1265_v25 = vsel %vm1264_vm6, %v3962_v63, %v1261_v41  ;;  %v1268_v31 = vmul.f32 %v3964_v11, %v1267_v4 }
 0x9c0   :  { %v1296_v9 = vmul.f32 %v1265_v25, %v1228_v36 }
 0x9c1   :  { %v1269_v5 = vmul.f32 0.5, %v1268_v31 }
 0x9c2   :  { %v1301_v13 = vmul.f32 %v3869_v7, %v1296_v9 }
 0x9c3   :  { %v1270_v16 = vsub.f32 1.5, %v1269_v5 }
 0x9c4   :  { %v1306_v17 = vadd.f32 %v3870_v22, %v1301_v13 }
 0x9c5   :  { %v1271_v14 = vmul.f32 %v3964_v11, %v1270_v16 }
 0x9c6   :  { %v4730_v26 = vadd.f32 %v4161_v49, %v1306_v17 }
 0x9c7   :  { %v1275_v59 = vsel %vm1274_vm9, %v3964_v11, %v1271_v14 }
 0x9c8   :  { %v1314_v10 = vsel %vm120_vm2, %v4730_v26, 0.0  ;;  %v1297_v23 = vmul.f32 %v1275_v59, %v1229_v52 }
 0x9c9   :  { %1315 = vadd.xlane.f32.xlu1 %v1314_v10 }
 0x9ca   :  { %v1302_v34 = vmul.f32 %v3869_v7, %v1297_v23 }
 0x9cc   :  { %v1244_v24 = vpop.xlane.xlu0 %1243  ;;  %v1307_v48 = vadd.f32 %v3870_v22, %v1302_v34 }
 0x9cd   :  { %v1250_v3 = vmul.f32 %v1244_v24, %v4312_v33 }
 0x9ce   :  { %v4735_v44 = vadd.f32 %v4162_v56, %v1307_v48 }
 0x9cf   :  { %v1254_v38 = vadd.f32 1e-05, %v1250_v3 }
 0x9d0   :  { %v1317_v39 = vsel %vm120_vm2, %v4735_v44, 0.0 }
 0x9d1   :  { %3965 = vrsqrt.f32 %v1254_v38  ;;  %1318 = vadd.xlane.f32.xlu0 %v1317_v39  ;;  %vm1282_vm11 = vweird.f32 %v1254_v38 }
 0x9d4   :  { %v1247_v37 = vpop.xlane.xlu2 %1246 }
 0x9d5   :  { %v1251_v51 = vmul.f32 %v1247_v37, %v4312_v33 }
 0x9d7   :  { %v3966_v58 = vpop.eup %3965  ;;  %v1255_v21 = vadd.f32 1e-05, %v1251_v51 }
 0x9d8   :  { %v1277_v43 = vmul.f32 %v3966_v58, %v1254_v38  ;;  %vm1283_vm10 = vweird.f32 %v3966_v58 }
 0x9d9   :  { %3967 = vrsqrt.f32 %v1255_v21  ;;  %vm1284_vm12 = vmor %vm1282_vm11, %vm1283_vm10  ;;  %vm1292_vm14 = vweird.f32 %v1255_v21 }
 0x9da   :  { %v1278_v35 = vmul.f32 %v3966_v58, %v1277_v43 }
 0x9dc   :  { %v1279_v36 = vmul.f32 0.5, %v1278_v35 }
 0x9de   :  { %v1280_v45 = vsub.f32 1.5, %v1279_v36 }
 0x9df   :  { %v3968_v46 = vpop.eup %3967 }
 0x9e0   :  { %v1281_v47 = vmul.f32 %v3966_v58, %v1280_v45  ;;  %v1287_v29 = vmul.f32 %v3968_v46, %v1255_v21  ;;  %vm1293_vm13 = vweird.f32 %v3968_v46 }
 0x9e1   :  { %vm1294_vm15 = vmor %vm1292_vm14, %vm1293_vm13 }
 0x9e2   :  { %v1285_v52 = vsel %vm1284_vm12, %v3966_v58, %v1281_v47  ;;  %v1288_v19 = vmul.f32 %v3968_v46, %v1287_v29  ;;  %v4163_v47 = vld [vmem:[#allocation2 + $0x5] ss:$0 sm:$0xff] }
 0x9e3   :  { %v1298_v8 = vmul.f32 %v1285_v52, %v4717_v53 }
 0x9e4   :  { %v1289_v50 = vmul.f32 0.5, %v1288_v19 }
 0x9e5   :  { %v1303_v61 = vmul.f32 %v3869_v7, %v1298_v8 }
 0x9e6   :  { %v1290_v30 = vsub.f32 1.5, %v1289_v50 }
 0x9e7   :  { %v1308_v55 = vadd.f32 %v3870_v22, %v1303_v61  ;;  %v4164_v61 = vld [vmem:[#allocation2 + $0x6] ss:$0 sm:$0xff] }
 0x9e8   :  { %v1291_v27 = vmul.f32 %v3968_v46, %v1290_v30 }
 0x9e9   :  { %v4741_v6 = vadd.f32 %v4161_v49, %v1308_v55 }
 0x9ea   :  { %v1295_v54 = vsel %vm1294_vm15, %v3968_v46, %v1291_v27 }
 0x9eb   :  { %v1320_v60 = vsel %vm120_vm2, %v4741_v6, 0.0  ;;  %v1299_v57 = vmul.f32 %v1295_v54, %v4723_v40 }
 0x9ec   :  { %1321 = vadd.xlane.f32.xlu2 %v1320_v60 }
 0x9ed   :  { %v1304_v42 = vmul.f32 %v3869_v7, %v1299_v57 }
 0x9ef   :  { %v1309_v62 = vadd.f32 %v3870_v22, %v1304_v42 }
 0x9f1   :  { %v4746_v53 = vadd.f32 %v4162_v56, %v1309_v62 }
 0x9f3   :  { %v1323_v12 = vsel %vm120_vm2, %v4746_v53, 0.0 }
 0x9f4   :  { %1324 = vadd.xlane.f32.xlu1 %v1323_v12 }
 0xa3c   :  { %v1316_v15 = vpop.xlane.xlu1 %1315 }
 0xa3d   :  { %v1326_v63 = vmul.f32 %v1316_v15, %v4312_v33 }
 0xa3f   :  { %v1330_v20 = vsub.f32 %v4730_v26, %v1326_v63 }
 0xa41   :  { %v1334_v32 = vmul.f32 %v1330_v20, %v1330_v20 }
 0xa43   :  { %v1338_v0 = vsel %vm120_vm2, %v1334_v32, 0.0 }
 0xa44   :  { %v1319_v2 = vpop.xlane.xlu0 %1318  ;;  %1339 = vadd.xlane.f32.xlu0 %v1338_v0 }
 0xa45   :  { %v1327_v40 = vmul.f32 %v1319_v2, %v4312_v33 }
 0xa47   :  { %v1331_v18 = vsub.f32 %v4735_v44, %v1327_v40 }
 0xa49   :  { %v1335_v11 = vmul.f32 %v1331_v18, %v1331_v18 }
 0xa4b   :  { %v1341_v41 = vsel %vm120_vm2, %v1335_v11, 0.0 }
 0xa4c   :  { %1342 = vadd.xlane.f32.xlu2 %v1341_v41 }
 0xa5f   :  { %v1322_v4 = vpop.xlane.xlu2 %1321 }
 0xa60   :  { %v1328_v7 = vmul.f32 %v1322_v4, %v4312_v33 }
 0xa62   :  { %v4758_v25 = vsub.f32 %v4741_v6, %v1328_v7 }
 0xa64   :  { %v1336_v31 = vmul.f32 %v4758_v25, %v4758_v25 }
 0xa66   :  { %v1344_v9 = vsel %vm120_vm2, %v1336_v31, 0.0 }
 0xa67   :  { %v1325_v22 = vpop.xlane.xlu1 %1324  ;;  %1345 = vadd.xlane.f32.xlu1 %v1344_v9 }
 0xa68   :  { %v1329_v5 = vmul.f32 %v1325_v22, %v4312_v33 }
 0xa6a   :  { %v4765_v13 = vsub.f32 %v4746_v53, %v1329_v5 }
 0xa6c   :  { %v1337_v16 = vmul.f32 %v4765_v13, %v4765_v13 }
 0xa6e   :  { %v1347_v17 = vsel %vm120_vm2, %v1337_v16, 0.0 }
 0xa6f   :  { %1348 = vadd.xlane.f32.xlu0 %v1347_v17 }
 0xab7   :  { %v1340_v14 = vpop.xlane.xlu0 %1339 }
 0xab8   :  { %v1350_v49 = vmul.f32 %v1340_v14, %v4312_v33 }
 0xaba   :  { %v1354_v59 = vadd.f32 1e-05, %v1350_v49 }
 0xabc   :  { %3969 = vrsqrt.f32 %v1354_v59  ;;  %vm1364_vm5 = vweird.f32 %v1354_v59 }
 0xabf   :  { %v1343_v10 = vpop.xlane.xlu2 %1342 }
 0xac0   :  { %v1351_v23 = vmul.f32 %v1343_v10, %v4312_v33 }
 0xac2   :  { %v3970_v34 = vpop.eup %3969  ;;  %v1355_v24 = vadd.f32 1e-05, %v1351_v23 }
 0xac3   :  { %v1359_v3 = vmul.f32 %v3970_v34, %v1354_v59  ;;  %vm1365_vm4 = vweird.f32 %v3970_v34  ;;  %v4165_v59 = vld [vmem:[#allocation2 + $0x1] ss:$0 sm:$0xff] }
 0xac4   :  { %3971 = vrsqrt.f32 %v1355_v24  ;;  %vm1366_vm6 = vmor %vm1364_vm5, %vm1365_vm4  ;;  %vm1374_vm8 = vweird.f32 %v1355_v24 }
 0xac5   :  { %v1360_v48 = vmul.f32 %v3970_v34, %v1359_v3 }
 0xac7   :  { %v1361_v38 = vmul.f32 0.5, %v1360_v48 }
 0xac9   :  { %v1362_v56 = vsub.f32 1.5, %v1361_v38 }
 0xaca   :  { %v3972_v39 = vpop.eup %3971 }
 0xacb   :  { %v1363_v37 = vmul.f32 %v3970_v34, %v1362_v56  ;;  %v1369_v51 = vmul.f32 %v3972_v39, %v1355_v24  ;;  %vm1375_vm7 = vweird.f32 %v3972_v39 }
 0xacc   :  { %vm1376_vm9 = vmor %vm1374_vm8, %vm1375_vm7 }
 0xacd   :  { %v1370_v58 = vmul.f32 %v3972_v39, %v1369_v51  ;;  %v1367_v21 = vsel %vm1366_vm6, %v3970_v34, %v1363_v37 }
 0xace   :  { %v1398_v36 = vmul.f32 %v1367_v21, %v1330_v20 }
 0xacf   :  { %v1371_v43 = vmul.f32 0.5, %v1370_v58 }
 0xad0   :  { %v1402_v29 = vmul.f32 %v4163_v47, %v1398_v36 }
 0xad1   :  { %v1372_v35 = vsub.f32 1.5, %v1371_v43 }
 0xad2   :  { %v1406_v30 = vadd.f32 %v4164_v61, %v1402_v29 }
 0xad3   :  { %v1373_v45 = vmul.f32 %v3972_v39, %v1372_v35 }
 0xad5   :  { %v1377_v46 = vsel %vm1376_vm9, %v3972_v39, %v1373_v45 }
 0xad6   :  { %v1399_v52 = vmul.f32 %v1377_v46, %v1331_v18 }
 0xad8   :  { %v1403_v19 = vmul.f32 %v4163_v47, %v1399_v52 }
 0xada   :  { %v1346_v8 = vpop.xlane.xlu1 %1345  ;;  %v1407_v55 = vadd.f32 %v4164_v61, %v1403_v19 }
 0xadb   :  { %v1352_v50 = vmul.f32 %v1346_v8, %v4312_v33 }
 0xadc   :  { %v1410_v54 = vpack.c.bf16 %v1407_v55, %v1406_v30 }
 0xadd   :  { %v1356_v27 = vadd.f32 1e-05, %v1352_v50 }
 0xade   :  { %3606 = vmatmul.msk.bf16.vlgmr.msrb.gmra.mxu1 %vm120_vm2, %v1410_v54 }
 0xadf   :  { %3973 = vrsqrt.f32 %v1356_v27  ;;  %vm1384_vm11 = vweird.f32 %v1356_v27 }
 0xae2   :  { %v1349_v60 = vpop.xlane.xlu0 %1348 }
 0xae3   :  { %v1353_v57 = vmul.f32 %v1349_v60, %v4312_v33 }
 0xae5   :  { %v3974_v42 = vpop.eup %3973  ;;  %v1357_v62 = vadd.f32 1e-05, %v1353_v57 }
 0xae6   :  { %v1379_v12 = vmul.f32 %v3974_v42, %v1356_v27  ;;  %vm1385_vm10 = vweird.f32 %v3974_v42 }
 0xae7   :  { %3975 = vrsqrt.f32 %v1357_v62  ;;  %vm1386_vm12 = vmor %vm1384_vm11, %vm1385_vm10  ;;  %vm1394_vm14 = vweird.f32 %v1357_v62 }
 0xae8   :  { %v1380_v15 = vmul.f32 %v3974_v42, %v1379_v12 }
 0xaea   :  { %v1381_v63 = vmul.f32 0.5, %v1380_v15 }
 0xaec   :  { %v1382_v20 = vsub.f32 1.5, %v1381_v63 }
 0xaed   :  { %v3976_v32 = vpop.eup %3975 }
 0xaee   :  { %v1383_v0 = vmul.f32 %v3974_v42, %v1382_v20  ;;  %v1389_v2 = vmul.f32 %v3976_v32, %v1357_v62  ;;  %vm1395_vm13 = vweird.f32 %v3976_v32 }
 0xaef   :  { %vm1396_vm15 = vmor %vm1394_vm14, %vm1395_vm13 }
 0xaf0   :  { %v1390_v40 = vmul.f32 %v3976_v32, %v1389_v2  ;;  %v1387_v18 = vsel %vm1386_vm12, %v3974_v42, %v1383_v0 }
 0xaf1   :  { %v1400_v4 = vmul.f32 %v1387_v18, %v4758_v25 }
 0xaf2   :  { %v1391_v11 = vmul.f32 0.5, %v1390_v40 }
 0xaf3   :  { %v1404_v22 = vmul.f32 %v4163_v47, %v1400_v4 }
 0xaf4   :  { %v1392_v41 = vsub.f32 1.5, %v1391_v11 }
 0xaf5   :  { %v1408_v16 = vadd.f32 %v4164_v61, %v1404_v22 }
 0xaf6   :  { %v1393_v7 = vmul.f32 %v3976_v32, %v1392_v41 }
 0xaf8   :  { %v1397_v31 = vsel %vm1396_vm15, %v3976_v32, %v1393_v7 }
 0xaf9   :  { %v1401_v9 = vmul.f32 %v1397_v31, %v4765_v13 }
 0xafb   :  { %v1405_v5 = vmul.f32 %v4163_v47, %v1401_v9 }
 0xafd   :  { %v1409_v17 = vadd.f32 %v4164_v61, %v1405_v5 }
 0xaff   :  { %v1411_v14 = vpack.c.bf16 %v1409_v17, %v1408_v16 }
 0xb01   :  { %3607 = vmatmul.msk.bf16.gmra.mxu1 %vm120_vm2, %v1411_v14 }
 0xb5b   :  { %v1427_v49 = vpop.f32.mrf.mxu1 }
 0xb5c   :  { %v1428_v10 = vadd.f32 %v4165_v59, %v1427_v49 }
 0xb5e   :  { %v1477_v24 = vpack.c.bf16 %v1428_v10, %v1428_v10 }
 0xb60   :  { %v1497_v48 = vunpack.c.l.b16 %v1477_v24 }
 0xb63   :  { %v1429_v23 = vpop.f32.mrf.mxu1 }
 0xb64   :  { %v1430_v34 = vadd.f32 %v4165_v59, %v1429_v23 }
 0xb66   :  { %v3743_v25 = vpack.i.bf16 %v1430_v34, %v1428_v10  ;;  %v1478_v3 = vpack.c.bf16 %v1430_v34, %v1430_v34 }
 0xb68   :  { %3744 = vrot.lane.b32.xlu1 %v3743_v25, %s4247_s4  ;;  %v1498_v38 = vunpack.c.l.b16 %v1478_v3 }
 0xb6a   :  { %v4779_v13 = vpack.c.b16 %v1498_v38, %v1497_v48 }
 0xb70   :  { %3764 = vrot.lane.b32.xlu1 %v3743_v25, %s4249_s6 }
 0xb7e   :  { %v1432_v56 = vpop.f32.mrf.mxu1 }
 0xb7f   :  { %v1433_v39 = vadd.f32 %v4165_v59, %v1432_v56 }
 0xb81   :  { %v1479_v58 = vpack.c.bf16 %v1433_v39, %v1433_v39 }
 0xb83   :  { %v1499_v35 = vunpack.c.l.b16 %v1479_v58 }
 0xb86   :  { %v1434_v37 = vpop.f32.mrf.mxu1 }
 0xb87   :  { %v1435_v51 = vadd.f32 %v4165_v59, %v1434_v37 }
 0xb89   :  { %v3748_v21 = vpack.i.bf16 %v1435_v51, %v1433_v39  ;;  %v1480_v43 = vpack.c.bf16 %v1435_v51, %v1435_v51 }
 0xb8b   :  { %3749 = vrot.lane.b32.xlu0 %v3748_v21, %s4248_s5  ;;  %3739 = vrot.lane.b32.xlu2 %v3748_v21, %s4247_s4  ;;  %v1500_v36 = vunpack.c.l.b16 %v1480_v43 }
 0xb8d   :  { %v4784_v45 = vpack.c.b16 %v1500_v36, %v1499_v35 }
 0xb93   :  { %3754 = vrot.lane.b32.xlu2 %v3748_v21, %s4249_s6  ;;  %3759 = vrot.lane.b32.xlu0 %v3743_v25, %s4248_s5 }
 0xbda   :  { %v3745_v46 = vpop.permute.xlu1 %3744 }
 0xbdb   :  { %v3747_v47 = vunpack.i.h.bf16 %v3745_v46  ;;  %v3746_v29 = vunpack.i.l.bf16 %v3745_v46 }
 0xbdd   :  { %v1482_v52 = vpack.c.bf16 %v3747_v47, %v3747_v47  ;;  %v1481_v19 = vpack.c.bf16 %v3746_v29, %v3746_v29 }
 0xbdf   :  { %v1543_v8 = vunpack.c.l.b16 %v1482_v52  ;;  %v1542_v50 = vunpack.c.l.b16 %v1481_v19 }
 0xbe1   :  { %v4788_v61 = vpack.c.b16 %v1543_v8, %v1542_v50 }
 0xbe2   :  { %v3765_v18 = vpop.permute.xlu1 %3764 }
 0xbe3   :  { %1548 = vrot.lane.b32.xlu0 %v4788_v61, %s4250_s7  ;;  %v3767_v7 = vunpack.i.h.bf16 %v3765_v18  ;;  %v3766_v31 = vunpack.i.l.bf16 %v3765_v18 }
 0xbe5   :  { %v3740_v30 = vpop.permute.xlu2 %3739  ;;  %v1490_v17 = vpack.c.bf16 %v3767_v7, %v3767_v7  ;;  %v1489_v14 = vpack.c.bf16 %v3766_v31, %v3766_v31  ;;  %v4168_v7 = vld [vmem:[#allocation2 + $0x30] sm:$0xff] }
 0xbe6   :  { %v3742_v55 = vunpack.i.h.bf16 %v3740_v30  ;;  %v3741_v27 = vunpack.i.l.bf16 %v3740_v30 }
 0xbe7   :  { %v1633_v34 = vunpack.c.l.b16 %v1490_v17  ;;  %v1632_v24 = vunpack.c.l.b16 %v1489_v14 }
 0xbe8   :  { %v1484_v54 = vpack.c.bf16 %v3742_v55, %v3742_v55  ;;  %v1483_v60 = vpack.c.bf16 %v3741_v27, %v3741_v27 }
 0xbe9   :  { %v4801_v56 = vpack.c.b16 %v1633_v34, %v1632_v24 }
 0xbea   :  { %v1545_v57 = vunpack.c.l.b16 %v1484_v54  ;;  %v1544_v42 = vunpack.c.l.b16 %v1483_v60 }
 0xbec   :  { %v1547_v62 = vpack.c.b16 %v1545_v57, %v1544_v42 }
 0xbed   :  { %v3755_v12 = vpop.permute.xlu2 %3754 }
 0xbee   :  { %v3757_v15 = vunpack.i.h.bf16 %v3755_v12  ;;  %v3756_v63 = vunpack.i.l.bf16 %v3755_v12  ;;  %1550 = vrot.lane.b32.xlu2 %v1547_v62, %s4250_s7 }
 0xbf0   :  { %v1492_v20 = vpack.c.bf16 %v3757_v15, %v3757_v15  ;;  %v1491_v32 = vpack.c.bf16 %v3756_v63, %v3756_v63 }
 0xbf2   :  { %v1635_v0 = vunpack.c.l.b16 %v1492_v20  ;;  %v1634_v2 = vunpack.c.l.b16 %v1491_v32  ;;  %v4167_v20 = vld [vmem:[#allocation2 + $0x28] sm:$0xff] }
 0xbf4   :  { %v4793_v40 = vpack.c.b16 %v1635_v0, %v1634_v2 }
 0xbf6   :  { %1640 = vrot.lane.b32.xlu2 %v4793_v40, %s4250_s7 }
 0xbfd   :  { %v3750_v11 = vpop.permute.xlu0 %3749 }
 0xbfe   :  { %v3752_v41 = vunpack.i.h.bf16 %v3750_v11  ;;  %v3751_v4 = vunpack.i.l.bf16 %v3750_v11  ;;  %1505 = vrot.lane.b32.xlu2 %v4784_v45, %s4250_s7 }
 0xc00   :  { %v1488_v9 = vpack.c.bf16 %v3752_v41, %v3752_v41  ;;  %v1487_v22 = vpack.c.bf16 %v3751_v4, %v3751_v4 }
 0xc02   :  { %v1590_v5 = vunpack.c.l.b16 %v1488_v9  ;;  %v1589_v16 = vunpack.c.l.b16 %v1487_v22 }
 0xc04   :  { %v1592_v49 = vpack.c.b16 %v1590_v5, %v1589_v16 }
 0xc05   :  { %v3760_v59 = vpop.permute.xlu0 %3759 }
 0xc06   :  { %v3762_v10 = vunpack.i.h.bf16 %v3760_v59  ;;  %v3761_v23 = vunpack.i.l.bf16 %v3760_v59  ;;  %1918 = vrot.lane.b32.xlu2 %v1547_v62, %s4251_s8  ;;  %1595 = vrot.lane.b32.xlu1 %v1592_v49, %s4250_s7  ;;  %v4169_v59 = vld [vmem:[#allocation2 + $0x38] sm:$0xff] }
 0xc08   :  { %v1486_v25 = vpack.c.bf16 %v3762_v10, %v3762_v10  ;;  %v1485_v3 = vpack.c.bf16 %v3761_v23, %v3761_v23 }
 0xc0a   :  { %v1588_v48 = vunpack.c.l.b16 %v1486_v25  ;;  %v1587_v38 = vunpack.c.l.b16 %v1485_v3 }
 0xc0c   :  { %v4803_v39 = vpack.c.b16 %v1588_v48, %v1587_v38 }
 0xc0e   :  { %1638 = vrot.lane.b32.xlu1 %v4801_v56, %s4250_s7  ;;  %1593 = vrot.lane.b32.xlu0 %v4803_v39, %s4250_s7 }
 0xc16   :  { %1503 = vrot.lane.b32.xlu0 %v4779_v13, %s4250_s7 }
 0xc1e   :  { %1916 = vrot.lane.b32.xlu0 %v4788_v61, %s4251_s8 }
 0xc26   :  { %1959 = vrot.lane.b32.xlu0 %v1592_v49, %s4251_s8 }
 0xc48   :  { %v1551_v37 = vpop.permute.xlu2 %1550 }
 0xc49   :  { %v1562_v51 = vsel %vm86_vm1, %v1551_v37, 0 }
 0xc4a   :  { %1570 = vmatpush.bf16.xpose.msrb.mxu3 %v1562_v51 }
 0xc50   :  { %v1641_v58 = vpop.permute.xlu2 %1640 }
 0xc51   :  { %v1652_v21 = vsel %vm86_vm1, %v1641_v58, 0 }
 0xc52   :  { %1660 = vmatpush.bf16.xpose.msra.mxu1 %v1652_v21 }
 0xc55   :  { %v1549_v43 = vpop.permute.xlu0 %1548 }
 0xc56   :  { %v1559_v35 = vsel %vm86_vm1, %v1549_v43, 0 }
 0xc57   :  { %1571 = vmatpush.bf16.xpose.msrb.mxu3 %v1559_v35 }
 0xc58   :  { %v1506_v36 = vpop.permute.xlu2 %1505 }
 0xc59   :  { %v1517_v46 = vsel %vm86_vm1, %v1506_v36, 0 }
 0xc5a   :  { %1525 = vmatpush.bf16.xpose.msra.mxu2 %v1517_v46 }
 0xc5e   :  { %3610 = vmatmul.msk.bf16.vlgmr.msrb.gmra.mxu3 %vm86_vm1, %v4788_v61 }
 0xc60   :  { %v1919_v47 = vpop.permute.xlu2 %1918 }
 0xc61   :  { %1934 = vmatpush.bf16.msra.mxu3 %v1919_v47 }
 0xc6e   :  { %3611 = vmatmul.msk.bf16.gmra.mxu3 %vm86_vm1, %v1547_v62  ;;  %v4166_v62 = vld [vmem:[#allocation2 + $0x20] sm:$0xff] }
 0xc78   :  { %v1596_v29 = vpop.permute.xlu1 %1595 }
 0xc79   :  { %v1607_v52 = vsel %vm86_vm1, %v1596_v29, 0 }
 0xc7a   :  { %1615 = vmatpush.bf16.xpose.msra.mxu0 %v1607_v52 }
 0xc80   :  { %v1639_v19 = vpop.permute.xlu1 %1638  ;;  %v1594_v8 = vpop.permute.xlu0 %1593 }
 0xc81   :  { %v1649_v50 = vsel %vm86_vm1, %v1639_v19, 0  ;;  %v1604_v30 = vsel %vm86_vm1, %v1594_v8, 0 }
 0xc82   :  { %1616 = vmatpush.bf16.xpose.msra.mxu0 %v1604_v30  ;;  %1661 = vmatpush.bf16.xpose.msra.mxu1 %v1649_v50 }
 0xc88   :  { %v1504_v55 = vpop.permute.xlu0 %1503 }
 0xc89   :  { %3612 = vmatmul.msk.bf16.vlgmr.msra.gmra.mxu0 %vm86_vm1, %v4803_v39  ;;  %3614 = vmatmul.msk.bf16.vlgmr.msra.gmra.mxu1 %vm86_vm1, %v4801_v56  ;;  %v1514_v61 = vsel %vm86_vm1, %v1504_v55, 0 }
 0xc8a   :  { %1526 = vmatpush.bf16.xpose.msra.mxu2 %v1514_v61 }
 0xc90   :  { %v1917_v27 = vpop.permute.xlu0 %1916 }
 0xc91   :  { %3608 = vmatmul.msk.bf16.vlgmr.msra.gmra.mxu2 %vm86_vm1, %v4779_v13  ;;  %1935 = vmatpush.bf16.msra.mxu3 %v1917_v27 }
 0xc95   :  { %2230 = vmatpush.bf16.msrb.mxu3 %v4663_v1 }
 0xc98   :  { %v1960_v54 = vpop.permute.xlu0 %1959 }
 0xc99   :  { %2231 = vmatpush.bf16.msrb.mxu3 %v4670_v28  ;;  %3613 = vmatmul.msk.bf16.gmra.mxu0 %vm86_vm1, %v1592_v49 }
 0xc9a   :  { %3615 = vmatmul.msk.bf16.gmra.mxu1 %vm86_vm1, %v4793_v40  ;;  %1975 = vmatpush.bf16.msrb.mxu0 %v1960_v54 }
 0xca1   :  { %3609 = vmatmul.msk.bf16.gmra.mxu2 %vm86_vm1, %v4784_v45 }
 0xce1   :  { %v1573_v42 = vpop.f32.mrf.mxu3 }
 0xce2   :  { %v4842_v28 = vadd.f32 %v4166_v62, %v1573_v42 }
 0xce4   :  { %v1685_v18 = vsel %vm120_vm2, %v4842_v28, -inf }
 0xce9   :  { %v1575_v0 = vpop.f32.mrf.mxu3 }
 0xcea   :  { %v4864_v48 = vadd.f32 %v4167_v20, %v1575_v0 }
 0xcec   :  { %v1688_v58 = vsel %vm120_vm2, %v4864_v48, -inf }
 0xcf1   :  { %v1578_v16 = vpop.f32.mrf.mxu3 }
 0xcf2   :  { %v4855_v14 = vadd.f32 %v4168_v7, %v1578_v16 }
 0xcf4   :  { %v1691_v25 = vsel %vm120_vm2, %v4855_v14, -inf }
 0xcf9   :  { %v1580_v29 = vpop.f32.mrf.mxu3 }
 0xcfa   :  { %v4875_v52 = vadd.f32 %v4169_v59, %v1580_v29 }
 0xcfc   :  { %v1694_v50 = vsel %vm120_vm2, %v4875_v52, -inf }
 0xd06   :  { %v1618_v60 = vpop.f32.mrf.mxu0  ;;  %v1663_v41 = vpop.f32.mrf.mxu1 }
 0xd07   :  { %v1664_v17 = vadd.f32 %v4166_v62, %v1663_v41  ;;  %v1619_v38 = vadd.f32 %v4166_v62, %v1618_v60 }
 0xd09   :  { %v1709_v24 = vsel %vm120_vm2, %v1664_v17, -inf  ;;  %v1697_v51 = vsel %vm120_vm2, %v1619_v38, -inf }
 0xd0e   :  { %v1620_v63 = vpop.f32.mrf.mxu0  ;;  %v1665_v23 = vpop.f32.mrf.mxu1 }
 0xd0f   :  { %v1621_v11 = vadd.f32 %v4167_v20, %v1620_v63  ;;  %v1666_v35 = vadd.f32 %v4167_v20, %v1665_v23 }
 0xd11   :  { %v1700_v5 = vsel %vm120_vm2, %v1621_v11, -inf  ;;  %v1712_v46 = vsel %vm120_vm2, %v1666_v35, -inf }
 0xd14   :  { %v1528_v57 = vpop.f32.mrf.mxu2 }
 0xd15   :  { %v4838_v12 = vadd.f32 %v4166_v62, %v1528_v57 }
 0xd16   :  { %v1623_v9 = vpop.f32.mrf.mxu0 }
 0xd17   :  { %v1673_v1 = vsel %vm120_vm2, %v4838_v12, -inf  ;;  %v1668_v21 = vpop.f32.mrf.mxu1  ;;  %v4877_v19 = vadd.f32 %v4168_v7, %v1623_v9 }
 0xd18   :  { %1674 = vmax.xlane.f32.xlu1 %v1673_v1  ;;  %v4870_v36 = vadd.f32 %v4168_v7, %v1668_v21 }
 0xd19   :  { %v1703_v8 = vsel %vm120_vm2, %v4877_v19, -inf }
 0xd1a   :  { %v1715_v47 = vsel %vm120_vm2, %v4870_v36, -inf }
 0xd1c   :  { %v1530_v15 = vpop.f32.mrf.mxu2 }
 0xd1d   :  { %v4844_v32 = vadd.f32 %v4167_v20, %v1530_v15 }
 0xd1e   :  { %v1625_v3 = vpop.f32.mrf.mxu0 }
 0xd1f   :  { %v1676_v2 = vsel %vm120_vm2, %v4844_v32, -inf  ;;  %v1626_v37 = vadd.f32 %v4169_v59, %v1625_v3  ;;  %v1670_v30 = vpop.f32.mrf.mxu1 }
 0xd20   :  { %1677 = vmax.xlane.f32.xlu2 %v1676_v2  ;;  %1686 = vmax.xlane.f32.xlu1 %v1685_v18  ;;  %v4883_v55 = vadd.f32 %v4169_v59, %v1670_v30 }
 0xd21   :  { %v1706_v43 = vsel %vm120_vm2, %v1626_v37, -inf }
 0xd22   :  { %v1718_v61 = vsel %vm120_vm2, %v4883_v55, -inf }
 0xd24   :  { %v1533_v4 = vpop.f32.mrf.mxu2 }
 0xd25   :  { %v4850_v31 = vadd.f32 %v4168_v7, %v1533_v4 }
 0xd27   :  { %v1679_v22 = vsel %vm120_vm2, %v4850_v31, -inf }
 0xd28   :  { %1680 = vmax.xlane.f32.xlu2 %v1679_v22  ;;  %1701 = vmax.xlane.f32.xlu1 %v1700_v5 }
 0xd2c   :  { %v1535_v49 = vpop.f32.mrf.mxu2 }
 0xd2d   :  { %v4857_v10 = vadd.f32 %v4169_v59, %v1535_v49 }
 0xd2f   :  { %v1682_v34 = vsel %vm120_vm2, %v4857_v10, -inf }
 0xd30   :  { %1683 = vmax.xlane.f32.xlu0 %v1682_v34  ;;  %1710 = vmax.xlane.f32.xlu2 %v1709_v24 }
 0xd31   :  { %1692 = vmax.xlane.f32.xlu1 %v1691_v25 }
 0xd38   :  { %1698 = vmax.xlane.f32.xlu0 %v1697_v51  ;;  %1689 = vmax.xlane.f32.xlu2 %v1688_v58 }
 0xd39   :  { %1707 = vmax.xlane.f32.xlu1 %v1706_v43 }
 0xd40   :  { %1713 = vmax.xlane.f32.xlu0 %v1712_v46  ;;  %1716 = vmax.xlane.f32.xlu2 %v1715_v47 }
 0xd48   :  { %1704 = vmax.xlane.f32.xlu0 %v1703_v8  ;;  %1695 = vmax.xlane.f32.xlu2 %v1694_v50 }
 0xd50   :  { %1719 = vmax.xlane.f32.xlu0 %v1718_v61 }
 0xd52   :  { %2000 = vrot.lane.b32.xlu1 %v4793_v40, %s4251_s8 }
 0xd60   :  { %1957 = vrot.lane.b32.xlu2 %v4803_v39, %s4251_s8 }
 0xd64   :  { %1998 = vrot.lane.b32.xlu0 %v4801_v56, %s4251_s8 }
 0xd8b   :  { %v4893_v27 = vpop.xlane.xlu1 %1674 }
 0xd93   :  { %v1678_v54 = vpop.xlane.xlu2 %1677  ;;  %v1687_v60 = vpop.xlane.xlu1 %1686 }
 0xd94   :  { %v1725_v39 = vsub.f32 %v4842_v28, %v1687_v60  ;;  %v1722_v34 = vsub.f32 %v4844_v32, %v1678_v54 }
 0xd96   :  { %v1745_v18 = vmul.f32 1.442695, %v1725_v39  ;;  %v1739_v51 = vmul.f32 1.442695, %v1722_v34 }
 0xd9b   :  { %v4895_v57 = vpop.xlane.xlu2 %1680  ;;  %v1702_v42 = vpop.xlane.xlu1 %1701 }
 0xd9c   :  { %v1730_v62 = vsub.f32 %v1621_v11, %v1702_v42 }
 0xd9e   :  { %v1755_v1 = vmul.f32 1.442695, %v1730_v62 }
 0xda0   :  { %3977 = vpow2.f32 %v1755_v1 }
 0xda3   :  { %v1711_v15 = vpop.xlane.xlu2 %1710  ;;  %v4897_v63 = vpop.xlane.xlu0 %1683 }
 0xda4   :  { %v1733_v40 = vsub.f32 %v1664_v17, %v1711_v15  ;;  %v1693_v20 = vpop.xlane.xlu1 %1692  ;;  %v1721_v15 = vsub.f32 %v4838_v12, %v4893_v27 }
 0xda6   :  { %v1761_v0 = vmul.f32 1.442695, %v1733_v40  ;;  %v4900_v2 = vpop.eup %3977  ;;  %v1737_v12 = vmul.f32 1.442695, %v1721_v15 }
 0xda7   :  { %v1796_v56 = vsel %vm120_vm2, %v4900_v2, 0.0 }
 0xda8   :  { %3979 = vpow2.f32 %v1761_v0  ;;  %1797 = vadd.xlane.f32.xlu2 %v1796_v56  ;;  %v4171_v0 = vld [vmem:[%s5570_s2 + $0x64] sm:$0xff] }
 0xda9   :  { %3981 = vpow2.f32 %v1745_v18 }
 0xdab   :  { %v1690_v41 = vpop.xlane.xlu2 %1689  ;;  %v1699_v11 = vpop.xlane.xlu0 %1698 }
 0xdac   :  { %v1708_v4 = vpop.xlane.xlu1 %1707  ;;  %v1729_v7 = vsub.f32 %v1619_v38, %v1699_v11  ;;  %v1726_v38 = vsub.f32 %v4864_v48, %v1690_v41  ;;  %v1727_v48 = vsub.f32 %v4855_v14, %v1693_v20  ;;  %v4170_v14 = vld [vmem:[%s5570_s2 + $0x6c] sm:$0xff] }
 0xdad   :  { %v1732_v22 = vsub.f32 %v1626_v37, %v1708_v4 }
 0xdae   :  { %v4904_v9 = vpop.eup %3979  ;;  %v1753_v5 = vmul.f32 1.442695, %v1729_v7  ;;  %v1747_v32 = vmul.f32 1.442695, %v1726_v38  ;;  %v1749_v50 = vmul.f32 1.442695, %v1727_v48 }
 0xdaf   :  { %v1805_v28 = vsel %vm120_vm2, %v4904_v9, 0.0  ;;  %v1759_v16 = vmul.f32 1.442695, %v1732_v22  ;;  %v4910_v59 = vpop.eup %3981  ;;  %v4173_v7 = vld [vmem:[%s5570_s2 + $0x54] sm:$0xff] }
 0xdb0   :  { %1806 = vadd.xlane.f32.xlu0 %v1805_v28  ;;  %3983 = vpow2.f32 %v1753_v5  ;;  %v1781_v25 = vsel %vm120_vm2, %v4910_v59, 0.0  ;;  %v4174_v28 = vld [vmem:[%s5570_s2 + $0x4c] sm:$0xff] }
 0xdb1   :  { %3985 = vpow2.f32 %v1759_v16 }
 0xdb3   :  { %v4908_v17 = vpop.xlane.xlu2 %1716  ;;  %v1714_v49 = vpop.xlane.xlu0 %1713 }
 0xdb4   :  { %v1734_v23 = vsub.f32 %v1666_v35, %v1714_v49  ;;  %v1735_v11 = vsub.f32 %v4870_v36, %v4908_v17  ;;  %v1723_v17 = vsub.f32 %v4850_v31, %v4895_v57  ;;  %v4177_v57 = vld [vmem:[%s5570_s2 + $0x4] sm:$0xff] }
 0xdb6   :  { %v1763_v24 = vmul.f32 1.442695, %v1734_v23  ;;  %v4915_v3 = vpop.eup %3983  ;;  %v1765_v22 = vmul.f32 1.442695, %v1735_v11  ;;  %v4175_v23 = vld [vmem:[%s5570_s2 + $0xc] sm:$0xff] }
 0xdb7   :  { %v1793_v37 = vsel %vm120_vm2, %v4915_v3, 0.0  ;;  %v4920_v43 = vpop.eup %3985  ;;  %v1741_v31 = vmul.f32 1.442695, %v1723_v17 }
 0xdb8   :  { %1782 = vadd.xlane.f32.xlu0 %v1781_v25  ;;  %3987 = vpow2.f32 %v1763_v24  ;;  %1794 = vadd.xlane.f32.xlu1 %v1793_v37  ;;  %v1802_v29 = vsel %vm120_vm2, %v4920_v43, 0.0  ;;  %v4176_v24 = vld [vmem:[%s5570_s2 + $0x44] sm:$0xff]  ;;  %v4178_v25 = vld [vmem:[%s5570_s2 + $0x3c] sm:$0xff]  ;;  %v1724_v37 = vsub.f32 %v4857_v10, %v4897_v63 }
 0xdb9   :  { %3989 = vpow2.f32 %v1739_v51 }
 0xdba   :  { %3991 = vpow2.f32 %v1747_v32 }
 0xdbb   :  { %v1696_v58 = vpop.xlane.xlu2 %1695  ;;  %v1705_v21 = vpop.xlane.xlu0 %1704 }
 0xdbc   :  { %v1731_v35 = vsub.f32 %v4877_v19, %v1705_v21 }
 0xdbe   :  { %v1757_v46 = vmul.f32 1.442695, %v1731_v35  ;;  %v4923_v47 = vpop.eup %3987 }
 0xdbf   :  { %v1808_v8 = vsel %vm120_vm2, %v4923_v47, 0.0  ;;  %v4930_v19 = vpop.eup %3989 }
 0xdc0   :  { %1803 = vadd.xlane.f32.xlu0 %v1802_v29  ;;  %3993 = vpow2.f32 %v1757_v46  ;;  %1809 = vadd.xlane.f32.xlu1 %v1808_v8  ;;  %v4936_v42 = vpop.eup %3991  ;;  %v1772_v40 = vsel %vm120_vm2, %v4930_v19, 0.0 }
 0xdc1   :  { %3995 = vpow2.f32 %v1749_v50  ;;  %v1784_v39 = vsel %vm120_vm2, %v4936_v42, 0.0 }
 0xdc3   :  { %v1958_v30 = vpop.permute.xlu2 %1957  ;;  %v1720_v61 = vpop.xlane.xlu0 %1719 }
 0xdc4   :  { %v2001_v54 = vpop.permute.xlu1 %2000  ;;  %v1736_v60 = vsub.f32 %v4883_v55, %v1720_v61  ;;  %1976 = vmatpush.bf16.msrb.mxu0 %v1958_v30  ;;  %v1728_v55 = vsub.f32 %v4875_v52, %v1696_v58  ;;  %v4172_v52 = vld [vmem:[%s5570_s2 + $0x5c] sm:$0xff]  ;;  %v1743_v58 = vmul.f32 1.442695, %v1724_v37 }
 0xdc5   :  { %2016 = vmatpush.bf16.msrb.mxu1 %v2001_v54 }
 0xdc6   :  { %v1767_v62 = vmul.f32 1.442695, %v1736_v60  ;;  %v4938_v1 = vpop.eup %3993  ;;  %v1751_v27 = vmul.f32 1.442695, %v1728_v55 }
 0xdc7   :  { %v1799_v20 = vsel %vm120_vm2, %v4938_v1, 0.0  ;;  %v4952_v56 = vpop.eup %3995 }
 0xdc8   :  { %2281 = vmatpush.bf16.msra.mxu0 %v4170_v14  ;;  %3997 = vpow2.f32 %v1767_v62  ;;  %1773 = vadd.xlane.f32.xlu0 %v1772_v40  ;;  %v1787_v4 = vsel %vm120_vm2, %v4952_v56, 0.0 }
 0xdc9   :  { %1800 = vadd.xlane.f32.xlu2 %v1799_v20  ;;  %1785 = vadd.xlane.f32.xlu1 %v1784_v39  ;;  %3999 = vpow2.f32 %v1737_v12 }
 0xdca   :  { %4001 = vpow2.f32 %v1751_v27 }
 0xdcb   :  { %4003 = vpow2.f32 %v1765_v22 }
 0xdcc   :  { %2282 = vmatpush.bf16.msra.mxu0 %v4171_v0  ;;  %4005 = vpow2.f32 %v1741_v31 }
 0xdcd   :  { %4007 = vpow2.f32 %v1743_v58 }
 0xdce   :  { %v4957_v18 = vpop.eup %3997 }
 0xdcf   :  { %v1814_v41 = vsel %vm120_vm2, %v4957_v18, 0.0  ;;  %v4968_v5 = vpop.eup %3999 }
 0xdd0   :  { %2283 = vmatpush.bf16.msra.mxu0 %v4172_v52  ;;  %v4973_v36 = vpop.eup %4001  ;;  %v1769_v49 = vsel %vm120_vm2, %v4968_v5, 0.0 }
 0xdd1   :  { %1815 = vadd.xlane.f32.xlu2 %v1814_v41  ;;  %1788 = vadd.xlane.f32.xlu1 %v1787_v4  ;;  %v1790_v34 = vsel %vm120_vm2, %v4973_v36, 0.0  ;;  %v4995_v38 = vpop.eup %4003 }
 0xdd2   :  { %v1811_v51 = vsel %vm120_vm2, %v4995_v38, 0.0  ;;  %v5004_v21 = vpop.eup %4005 }
 0xdd3   :  { %v1775_v32 = vsel %vm120_vm2, %v5004_v21, 0.0  ;;  %v5008_v35 = vpop.eup %4007 }
 0xdd4   :  { %2284 = vmatpush.bf16.msra.mxu0 %v4173_v7  ;;  %v1778_v10 = vsel %vm120_vm2, %v5008_v35, 0.0 }
 0xdd6   :  { %v1999_v16 = vpop.permute.xlu0 %1998 }
 0xdd7   :  { %2017 = vmatpush.bf16.msrb.mxu1 %v1999_v16 }
 0xdd8   :  { %2285 = vmatpush.bf16.msra.mxu0 %v4174_v28 }
 0xdd9   :  { %1770 = vadd.xlane.f32.xlu2 %v1769_v49  ;;  %1791 = vadd.xlane.f32.xlu1 %v1790_v34 }
 0xddb   :  { %2514 = vmatpush.bf16.msra.mxu1 %v4175_v23 }
 0xddc   :  { %2286 = vmatpush.bf16.msra.mxu0 %v4176_v24  ;;  %1875 = vrot.lane.b32.xlu0 %v4779_v13, %s4251_s8  ;;  %v4179_v13 = vld [vmem:[%s5570_s2 + $0x34] sm:$0xff] }
 0xddf   :  { %2515 = vmatpush.bf16.msra.mxu1 %v4177_v57 }
 0xde0   :  { %2287 = vmatpush.bf16.msra.mxu0 %v4178_v25 }
 0xde1   :  { %1812 = vadd.xlane.f32.xlu1 %v1811_v51 }
 0xde4   :  { %2288 = vmatpush.bf16.msra.mxu0 %v4179_v13 }
 0xde9   :  { %1776 = vadd.xlane.f32.xlu1 %v1775_v32 }
 0xdf1   :  { %1877 = vrot.lane.b32.xlu2 %v4784_v45, %s4251_s8  ;;  %1779 = vadd.xlane.f32.xlu1 %v1778_v10 }
 0xe1b   :  { %v1798_v46 = vpop.xlane.xlu2 %1797 }
 0xe1c   :  { %4009 = vrcp.f32 %v1798_v46 }
 0xe22   :  { %v4010_v8 = vpop.eup %4009 }
 0xe23   :  { %v1807_v63 = vpop.xlane.xlu0 %1806  ;;  %v1842_v50 = vmul.f32 %v4010_v8, %v4900_v2 }
 0xe25   :  { %v1858_v54 = vpack.c.bf16 %v1842_v50, %v1842_v50 }
 0xe27   :  { %v1952_v15 = vunpack.c.l.b16 %v1858_v54 }
 0xe2b   :  { %v1783_v48 = vpop.xlane.xlu0 %1782  ;;  %v1795_v29 = vpop.xlane.xlu1 %1794 }
 0xe2c   :  { %4011 = vrcp.f32 %v1795_v29 }
 0xe2d   :  { %4013 = vrcp.f32 %v1807_v63 }
 0xe32   :  { %v4012_v30 = vpop.eup %4011 }
 0xe33   :  { %v1804_v61 = vpop.xlane.xlu0 %1803  ;;  %v1841_v60 = vmul.f32 %v4012_v30, %v4915_v3  ;;  %v1810_v14 = vpop.xlane.xlu1 %1809 }
 0xe34   :  { %v4014_v62 = vpop.eup %4013  ;;  %4015 = vrcp.f32 %v1810_v14 }
 0xe35   :  { %v1857_v45 = vpack.c.bf16 %v1841_v60, %v1841_v60  ;;  %4017 = vrcp.f32 %v1804_v61  ;;  %v1845_v40 = vmul.f32 %v4014_v62, %v4904_v9 }
 0xe36   :  { %4019 = vrcp.f32 %v1783_v48 }
 0xe37   :  { %v1951_v55 = vunpack.c.l.b16 %v1857_v45  ;;  %v1861_v2 = vpack.c.bf16 %v1845_v40, %v1845_v40 }
 0xe39   :  { %v1955_v20 = vpack.c.b16 %v1952_v15, %v1951_v55  ;;  %v1992_v4 = vunpack.c.l.b16 %v1861_v2 }
 0xe3a   :  { %v4016_v39 = vpop.eup %4015 }
 0xe3b   :  { %v4018_v12 = vpop.eup %4017  ;;  %v1846_v27 = vmul.f32 %v4016_v39, %v4923_v47  ;;  %3620 = vmatmul.msk.bf16.vlgmr.msrb.gmra.mxu0 %vm120_vm2, %v1955_v20  ;;  %v1774_v17 = vpop.xlane.xlu0 %1773 }
 0xe3c   :  { %v1801_v0 = vpop.xlane.xlu2 %1800  ;;  %v1786_v3 = vpop.xlane.xlu1 %1785  ;;  %v1844_v11 = vmul.f32 %v4018_v12, %v4920_v43 }
 0xe3d   :  { %4021 = vrcp.f32 %v1801_v0  ;;  %v4020_v52 = vpop.eup %4019  ;;  %v1862_v41 = vpack.c.bf16 %v1846_v27, %v1846_v27 }
 0xe3e   :  { %4023 = vrcp.f32 %v1786_v3  ;;  %v1837_v9 = vmul.f32 %v4020_v52, %v4910_v59  ;;  %v1860_v23 = vpack.c.bf16 %v1844_v11, %v1844_v11 }
 0xe3f   :  { %v1993_v7 = vunpack.c.l.b16 %v1862_v41  ;;  %4025 = vrcp.f32 %v1774_v17 }
 0xe40   :  { %v1853_v34 = vpack.c.bf16 %v1837_v9, %v1837_v9  ;;  %v1954_v25 = vunpack.c.l.b16 %v1860_v23 }
 0xe41   :  { %v1996_v28 = vpack.c.b16 %v1993_v7, %v1992_v4 }
 0xe42   :  { %v1910_v37 = vunpack.c.l.b16 %v1853_v34 }
 0xe43   :  { %v4022_v22 = vpop.eup %4021  ;;  %3622 = vmatmul.msk.bf16.vlgmr.msrb.gmra.mxu1 %vm120_vm2, %v1996_v28 }
 0xe44   :  { %v4024_v16 = vpop.eup %4023  ;;  %v1816_v49 = vpop.xlane.xlu2 %1815  ;;  %v1843_v47 = vmul.f32 %v4022_v22, %v4938_v1 }
 0xe45   :  { %v1838_v24 = vmul.f32 %v4024_v16, %v4936_v42  ;;  %v1789_v31 = vpop.xlane.xlu1 %1788  ;;  %v4026_v10 = vpop.eup %4025 }
 0xe46   :  { %v1859_v57 = vpack.c.bf16 %v1843_v47, %v1843_v47  ;;  %4027 = vrcp.f32 %v1789_v31  ;;  %v1834_v63 = vmul.f32 %v4026_v10, %v4930_v19 }
 0xe47   :  { %v1854_v43 = vpack.c.bf16 %v1838_v24, %v1838_v24 }
 0xe48   :  { %v1953_v59 = vunpack.c.l.b16 %v1859_v57  ;;  %v1850_v8 = vpack.c.bf16 %v1834_v63, %v1834_v63 }
 0xe49   :  { %v1911_v51 = vunpack.c.l.b16 %v1854_v43 }
 0xe4a   :  { %v1956_v13 = vpack.c.b16 %v1954_v25, %v1953_v59  ;;  %v1870_v15 = vunpack.c.l.b16 %v1850_v8 }
 0xe4b   :  { %v1914_v58 = vpack.c.b16 %v1911_v51, %v1910_v37 }
 0xe4c   :  { %v1771_v32 = vpop.xlane.xlu2 %1770  ;;  %3621 = vmatmul.msk.bf16.gmra.mxu0 %vm120_vm2, %v1956_v13  ;;  %v4028_v42 = vpop.eup %4027 }
 0xe4d   :  { %v1792_v1 = vpop.xlane.xlu1 %1791  ;;  %4029 = vrcp.f32 %v1771_v32  ;;  %3618 = vmatmul.msk.bf16.vlgmr.msra.gmra.mxu3 %vm120_vm2, %v1914_v58  ;;  %v1839_v46 = vmul.f32 %v4028_v42, %v4952_v56 }
 0xe4e   :  { %4031 = vrcp.f32 %v1792_v1  ;;  %v1876_v40 = vpop.permute.xlu0 %1875 }
 0xe4f   :  { %4033 = vrcp.f32 %v1816_v49  ;;  %v1855_v60 = vpack.c.bf16 %v1839_v46, %v1839_v46 }
 0xe51   :  { %v1912_v56 = vunpack.c.l.b16 %v1855_v60 }
 0xe53   :  { %v4030_v48 = vpop.eup %4029 }
 0xe54   :  { %v4032_v29 = vpop.eup %4031  ;;  %v1833_v50 = vmul.f32 %v4030_v48, %v4968_v5  ;;  %v1878_v30 = vpop.permute.xlu2 %1877  ;;  %v4180_v5 = vld [vmem:[%s5570_s2 + $0x1c] sm:$0xff] }
 0xe55   :  { %v1813_v61 = vpop.xlane.xlu1 %1812  ;;  %1893 = vmatpush.bf16.msrb.mxu2 %v1878_v30  ;;  %v1840_v54 = vmul.f32 %v4032_v29, %v4973_v36  ;;  %v4034_v14 = vpop.eup %4033 }
 0xe56   :  { %v1849_v62 = vpack.c.bf16 %v1833_v50, %v1833_v50  ;;  %4035 = vrcp.f32 %v1813_v61  ;;  %v1848_v20 = vmul.f32 %v4034_v14, %v4957_v18  ;;  %v4181_v18 = vld [vmem:[%s5570_s2 + $0x14] sm:$0xff] }
 0xe57   :  { %v1856_v45 = vpack.c.bf16 %v1840_v54, %v1840_v54 }
 0xe58   :  { %v1869_v19 = vunpack.c.l.b16 %v1849_v62  ;;  %v1864_v27 = vpack.c.bf16 %v1848_v20, %v1848_v20 }
 0xe59   :  { %1894 = vmatpush.bf16.msrb.mxu2 %v1876_v40  ;;  %v1913_v55 = vunpack.c.l.b16 %v1856_v45 }
 0xe5a   :  { %v1873_v39 = vpack.c.b16 %v1870_v15, %v1869_v19  ;;  %v1995_v41 = vunpack.c.l.b16 %v1864_v27 }
 0xe5b   :  { %v1915_v36 = vpack.c.b16 %v1913_v55, %v1912_v56 }
 0xe5c   :  { %v4036_v0 = vpop.eup %4035  ;;  %3616 = vmatmul.msk.bf16.vlgmr.msrb.gmra.mxu2 %vm120_vm2, %v1873_v39 }
 0xe5d   :  { %2103 = vmatpush.bf16.msra.mxu2 %v4180_v5  ;;  %v1777_v12 = vpop.xlane.xlu1 %1776  ;;  %3619 = vmatmul.msk.bf16.gmra.mxu3 %vm120_vm2, %v1915_v36  ;;  %v1847_v2 = vmul.f32 %v4036_v0, %v4995_v38 }
 0xe5e   :  { %4037 = vrcp.f32 %v1777_v12 }
 0xe5f   :  { %v1863_v3 = vpack.c.bf16 %v1847_v2, %v1847_v2 }
 0xe61   :  { %2104 = vmatpush.bf16.msra.mxu2 %v4181_v18  ;;  %v1994_v52 = vunpack.c.l.b16 %v1863_v3 }
 0xe63   :  { %v1997_v11 = vpack.c.b16 %v1995_v41, %v1994_v52 }
 0xe64   :  { %v4038_v9 = vpop.eup %4037 }
 0xe65   :  { %v1780_v4 = vpop.xlane.xlu1 %1779  ;;  %3623 = vmatmul.msk.bf16.gmra.mxu1 %vm120_vm2, %v1997_v11  ;;  %v1835_v7 = vmul.f32 %v4038_v9, %v5004_v21 }
 0xe66   :  { %4039 = vrcp.f32 %v1780_v4 }
 0xe67   :  { %v1851_v28 = vpack.c.bf16 %v1835_v7, %v1835_v7 }
 0xe69   :  { %v1871_v17 = vunpack.c.l.b16 %v1851_v28 }
 0xe6c   :  { %v4040_v22 = vpop.eup %4039 }
 0xe6d   :  { %v1836_v38 = vmul.f32 %v4040_v22, %v5008_v35 }
 0xe6f   :  { %v1852_v16 = vpack.c.bf16 %v1836_v38, %v1836_v38 }
 0xe71   :  { %v1872_v49 = vunpack.c.l.b16 %v1852_v16  ;;  %v4182_v16 = vld [vmem:[#allocation2 + $0x2] ss:$0 sm:$0xff] }
 0xe73   :  { %v1874_v47 = vpack.c.b16 %v1872_v49, %v1871_v17 }
 0xe75   :  { %3617 = vmatmul.msk.bf16.gmra.mxu2 %vm120_vm2, %v1874_v47 }
 0xeb8   :  { %v1978_v23 = vpop.f32.mrf.mxu0 }
 0xec0   :  { %v1980_v34 = vpop.f32.mrf.mxu0  ;;  %v2019_v24 = vpop.f32.mrf.mxu1 }
 0xec1   :  { %v3773_v31 = vpack.i.bf16 %v1980_v34, %v1978_v23 }
 0xec3   :  { %3774 = vrot.lane.b32.xlu0 %v3773_v31, %s4252_s9 }
 0xec8   :  { %v2021_v43 = vpop.f32.mrf.mxu1 }
 0xec9   :  { %v1983_v57 = vpop.f32.mrf.mxu0  ;;  %v3778_v59 = vpack.i.bf16 %v2021_v43, %v2019_v24 }
 0xecb   :  { %3779 = vrot.lane.b32.xlu2 %v3778_v59, %s4253_s10 }
 0xed0   :  { %v1937_v21 = vpop.f32.mrf.mxu3 }
 0xed1   :  { %v1985_v35 = vpop.f32.mrf.mxu0 }
 0xed2   :  { %v3783_v25 = vpack.i.bf16 %v1985_v35, %v1983_v57 }
 0xed4   :  { %3784 = vrot.lane.b32.xlu2 %v3783_v25, %s4252_s9 }
 0xed8   :  { %v1939_v37 = vpop.f32.mrf.mxu3 }
 0xed9   :  { %v3768_v51 = vpack.i.bf16 %v1939_v37, %v1937_v21 }
 0xedb   :  { %3769 = vrot.lane.b32.xlu1 %v3768_v51, %s4245_s18 }
 0xedf   :  { %v1896_v63 = vpop.f32.mrf.mxu2 }
 0xee0   :  { %v1942_v13 = vpop.f32.mrf.mxu3 }
 0xee2   :  { %v2024_v58 = vpop.f32.mrf.mxu1 }
 0xee7   :  { %v1898_v30 = vpop.f32.mrf.mxu2 }
 0xee8   :  { %v1944_v32 = vpop.f32.mrf.mxu3 }
 0xee9   :  { %v3788_v10 = vpack.i.bf16 %v1944_v32, %v1942_v13 }
 0xeea   :  { %v2026_v1 = vpop.f32.mrf.mxu1 }
 0xeeb   :  { %3789 = vrot.lane.b32.xlu0 %v3788_v10, %s4245_s18  ;;  %v3793_v42 = vpack.i.bf16 %v2026_v1, %v2024_v58 }
 0xef3   :  { %3794 = vrot.lane.b32.xlu0 %v3793_v42, %s4253_s10 }
 0xef8   :  { %v1901_v20 = vpop.f32.mrf.mxu2 }
 0xf00   :  { %v1903_v12 = vpop.f32.mrf.mxu2 }
 0xf25   :  { %v3780_v48 = vpop.permute.xlu2 %3779 }
 0xf26   :  { %v3782_v60 = vunpack.i.h.bf16 %v3780_v48  ;;  %v3781_v14 = vunpack.i.l.bf16 %v3780_v48 }
 0xf2e   :  { %v3785_v0 = vpop.permute.xlu2 %3784 }
 0xf2f   :  { %v3787_v18 = vunpack.i.h.bf16 %v3785_v0  ;;  %v3786_v3 = vunpack.i.l.bf16 %v3785_v0 }
 0xf35   :  { %v3775_v46 = vpop.permute.xlu0 %3774 }
 0xf36   :  { %v3777_v61 = vunpack.i.h.bf16 %v3775_v46  ;;  %v3776_v54 = vunpack.i.l.bf16 %v3775_v46 }
 0xf4d   :  { %v3770_v29 = vpop.permute.xlu1 %3769 }
 0xf4e   :  { %v3772_v8 = vunpack.i.h.bf16 %v3770_v29  ;;  %v3771_v50 = vunpack.i.l.bf16 %v3770_v29 }
 0xf50   :  { %v2077_v62 = vsel %vm86_vm1, %v1896_v63, %v3771_v50  ;;  %v2078_v45 = vsel %vm86_vm1, %v1898_v30, %v3772_v8 }
 0xf51   :  { %v2081_v15 = vsel %vm910_vm0, %v2077_v62, %v3776_v54  ;;  %v2082_v19 = vsel %vm910_vm0, %v2078_v45, %v3777_v61 }
 0xf52   :  { %v2085_v40 = vsel %vm915_vm3, %v2081_v15, %v3781_v14  ;;  %v2086_v56 = vsel %vm915_vm3, %v2082_v19, %v3782_v60 }
 0xf53   :  { %v2089_v55 = vpack.c.bf16 %v2086_v56, %v2085_v40 }
 0xf55   :  { %3624 = vmatmul.msk.bf16.vlgmr.msra.gmra.mxu2 %vm120_vm2, %v2089_v55 }
 0xf5d   :  { %v3790_v39 = vpop.permute.xlu0 %3789 }
 0xf5e   :  { %v3792_v5 = vunpack.i.h.bf16 %v3790_v39  ;;  %v3791_v36 = vunpack.i.l.bf16 %v3790_v39 }
 0xf60   :  { %v2080_v2 = vsel %vm86_vm1, %v1903_v12, %v3792_v5  ;;  %v2079_v27 = vsel %vm86_vm1, %v1901_v20, %v3791_v36 }
 0xf61   :  { %v2083_v4 = vsel %vm910_vm0, %v2079_v27, %v3786_v3  ;;  %v2084_v9 = vsel %vm910_vm0, %v2080_v2, %v3787_v18 }
 0xf65   :  { %v3795_v52 = vpop.permute.xlu0 %3794 }
 0xf66   :  { %v3797_v41 = vunpack.i.h.bf16 %v3795_v52  ;;  %v3796_v11 = vunpack.i.l.bf16 %v3795_v52 }
 0xf68   :  { %v2087_v7 = vsel %vm915_vm3, %v2083_v4, %v3796_v11  ;;  %v2088_v22 = vsel %vm915_vm3, %v2084_v9, %v3797_v41 }
 0xf69   :  { %v2090_v38 = vpack.c.bf16 %v2088_v22, %v2087_v7 }
 0xf6b   :  { %3625 = vmatmul.msk.bf16.gmra.mxu2 %vm120_vm2, %v2090_v38  ;;  %v4183_v38 = vld [vmem:[#allocation2 + $0x7] ss:$0 sm:$0xff] }
 0xfd8   :  { %v2106_v28 = vpop.f32.mrf.mxu2 }
 0xfd9   :  { %v2107_v17 = vadd.f32 %v4182_v16, %v2106_v28 }
 0xfdb   :  { %v5065_v49 = vadd.f32 %v2107_v17, %v4730_v26 }
 0xfdd   :  { %v2120_v47 = vsel %vm120_vm2, %v5065_v49, 0.0 }
 0xfde   :  { %2121 = vadd.xlane.f32.xlu2 %v2120_v47 }
 0xfe0   :  { %v2108_v23 = vpop.f32.mrf.mxu2 }
 0xfe1   :  { %v2109_v34 = vadd.f32 %v4182_v16, %v2108_v23 }
 0xfe3   :  { %v5070_v24 = vadd.f32 %v2109_v34, %v4735_v44 }
 0xfe5   :  { %v2123_v31 = vsel %vm120_vm2, %v5070_v24, 0.0 }
 0xfe6   :  { %2124 = vadd.xlane.f32.xlu1 %v2123_v31 }
 0xfee   :  { %v2111_v57 = vpop.f32.mrf.mxu2 }
 0xfef   :  { %v2112_v43 = vadd.f32 %v4182_v16, %v2111_v57  ;;  %v4184_v57 = vld [vmem:[#allocation2 + $0x8] ss:$0 sm:$0xff] }
 0xff1   :  { %v5075_v59 = vadd.f32 %v2112_v43, %v4741_v6 }
 0xff3   :  { %v2126_v26 = vsel %vm120_vm2, %v5075_v59, 0.0 }
 0xff4   :  { %2127 = vadd.xlane.f32.xlu0 %v2126_v26 }
 0xff6   :  { %v2113_v21 = vpop.f32.mrf.mxu2 }
 0xff7   :  { %v2114_v35 = vadd.f32 %v4182_v16, %v2113_v21 }
 0xff9   :  { %v5080_v25 = vadd.f32 %v2114_v35, %v4746_v53 }
 0xffb   :  { %v2129_v44 = vsel %vm120_vm2, %v5080_v25, 0.0 }
 0xffc   :  { %2130 = vadd.xlane.f32.xlu2 %v2129_v44 }
0x1051   :  { %v2122_v37 = vpop.xlane.xlu2 %2121 }
0x1052   :  { %v2132_v51 = vmul.f32 %v2122_v37, %v4312_v33 }
0x1054   :  { %v2136_v13 = vsub.f32 %v5065_v49, %v2132_v51 }
0x1056   :  { %v2140_v6 = vmul.f32 %v2136_v13, %v2136_v13 }
0x1058   :  { %v2144_v58 = vsel %vm120_vm2, %v2140_v6, 0.0 }
0x1059   :  { %v2125_v32 = vpop.xlane.xlu1 %2124  ;;  %2145 = vadd.xlane.f32.xlu1 %v2144_v58 }
0x105a   :  { %v2133_v10 = vmul.f32 %v2125_v32, %v4312_v33 }
0x105c   :  { %v2137_v1 = vsub.f32 %v5070_v24, %v2133_v10 }
0x105e   :  { %v2141_v53 = vmul.f32 %v2137_v1, %v2137_v1 }
0x1060   :  { %v2147_v42 = vsel %vm120_vm2, %v2141_v53, 0.0 }
0x1061   :  { %2148 = vadd.xlane.f32.xlu0 %v2147_v42 }
0x1067   :  { %v2128_v63 = vpop.xlane.xlu0 %2127 }
0x1068   :  { %v2134_v46 = vmul.f32 %v2128_v63, %v4312_v33 }
0x106a   :  { %v5092_v48 = vsub.f32 %v5075_v59, %v2134_v46 }
0x106c   :  { %v2142_v29 = vmul.f32 %v5092_v48, %v5092_v48 }
0x106e   :  { %v2150_v8 = vsel %vm120_vm2, %v2142_v29, 0.0 }
0x106f   :  { %2151 = vadd.xlane.f32.xlu2 %v2150_v8  ;;  %v2131_v50 = vpop.xlane.xlu2 %2130 }
0x1070   :  { %v2135_v30 = vmul.f32 %v2131_v50, %v4312_v33 }
0x1072   :  { %v5099_v61 = vsub.f32 %v5080_v25, %v2135_v30 }
0x1074   :  { %v2143_v54 = vmul.f32 %v5099_v61, %v5099_v61 }
0x1076   :  { %v2153_v60 = vsel %vm120_vm2, %v2143_v54, 0.0 }
0x1077   :  { %2154 = vadd.xlane.f32.xlu1 %v2153_v60 }
0x10cc   :  { %v2146_v14 = vpop.xlane.xlu1 %2145 }
0x10cd   :  { %v2156_v62 = vmul.f32 %v2146_v14, %v4312_v33  ;;  %v4185_v14 = vld [vmem:[#allocation2 + $0x3] ss:$0 sm:$0xff] }
0x10cf   :  { %v2160_v45 = vadd.f32 1e-05, %v2156_v62 }
0x10d1   :  { %4041 = vrsqrt.f32 %v2160_v45  ;;  %vm2170_vm5 = vweird.f32 %v2160_v45 }
0x10d4   :  { %v2149_v15 = vpop.xlane.xlu0 %2148 }
0x10d5   :  { %v2157_v19 = vmul.f32 %v2149_v15, %v4312_v33 }
0x10d7   :  { %v4042_v40 = vpop.eup %4041  ;;  %v2161_v56 = vadd.f32 1e-05, %v2157_v19 }
0x10d8   :  { %v2165_v55 = vmul.f32 %v4042_v40, %v2160_v45  ;;  %vm2171_vm4 = vweird.f32 %v4042_v40 }
0x10d9   :  { %4043 = vrsqrt.f32 %v2161_v56  ;;  %vm2172_vm6 = vmor %vm2170_vm5, %vm2171_vm4  ;;  %vm2180_vm8 = vweird.f32 %v2161_v56 }
0x10da   :  { %v2166_v20 = vmul.f32 %v4042_v40, %v2165_v55 }
0x10dc   :  { %v2167_v39 = vmul.f32 0.5, %v2166_v20 }
0x10de   :  { %v2168_v5 = vsub.f32 1.5, %v2167_v39 }
0x10df   :  { %v4044_v36 = vpop.eup %4043 }
0x10e0   :  { %v2169_v0 = vmul.f32 %v4042_v40, %v2168_v5  ;;  %v2175_v12 = vmul.f32 %v4044_v36, %v2161_v56  ;;  %vm2181_vm7 = vweird.f32 %v4044_v36 }
0x10e1   :  { %vm2182_vm9 = vmor %vm2180_vm8, %vm2181_vm7 }
0x10e2   :  { %v2176_v2 = vmul.f32 %v4044_v36, %v2175_v12  ;;  %v2152_v27 = vpop.xlane.xlu2 %2151  ;;  %v2173_v3 = vsel %vm2172_vm6, %v4042_v40, %v2169_v0 }
0x10e3   :  { %v2158_v18 = vmul.f32 %v2152_v27, %v4312_v33  ;;  %v2204_v4 = vmul.f32 %v2173_v3, %v2136_v13 }
0x10e4   :  { %v2177_v52 = vmul.f32 0.5, %v2176_v2 }
0x10e5   :  { %v2162_v41 = vadd.f32 1e-05, %v2158_v18  ;;  %v2208_v28 = vmul.f32 %v4183_v38, %v2204_v4 }
0x10e6   :  { %v2178_v11 = vsub.f32 1.5, %v2177_v52 }
0x10e7   :  { %4045 = vrsqrt.f32 %v2162_v41  ;;  %v2212_v43 = vadd.f32 %v4184_v57, %v2208_v28  ;;  %vm2190_vm11 = vweird.f32 %v2162_v41 }
0x10e8   :  { %v2179_v9 = vmul.f32 %v4044_v36, %v2178_v11 }
0x10ea   :  { %v2183_v7 = vsel %vm2182_vm9, %v4044_v36, %v2179_v9  ;;  %v2155_v22 = vpop.xlane.xlu1 %2154 }
0x10eb   :  { %v2205_v16 = vmul.f32 %v2183_v7, %v2137_v1  ;;  %v2159_v17 = vmul.f32 %v2155_v22, %v4312_v33 }
0x10ed   :  { %v4046_v47 = vpop.eup %4045  ;;  %v2209_v23 = vmul.f32 %v4183_v38, %v2205_v16  ;;  %v2163_v34 = vadd.f32 1e-05, %v2159_v17 }
0x10ee   :  { %v2185_v31 = vmul.f32 %v4046_v47, %v2162_v41  ;;  %vm2191_vm10 = vweird.f32 %v4046_v47 }
0x10ef   :  { %v2213_v26 = vadd.f32 %v4184_v57, %v2209_v23  ;;  %4047 = vrsqrt.f32 %v2163_v34  ;;  %vm2192_vm12 = vmor %vm2190_vm11, %vm2191_vm10  ;;  %vm2200_vm14 = vweird.f32 %v2163_v34 }
0x10f0   :  { %v2186_v21 = vmul.f32 %v4046_v47, %v2185_v31 }
0x10f1   :  { %v2216_v35 = vpack.c.bf16 %v2213_v26, %v2212_v43 }
0x10f2   :  { %v2187_v44 = vmul.f32 0.5, %v2186_v21 }
0x10f3   :  { %3626 = vmatmul.msk.bf16.vlgmr.msrb.gmra.mxu3 %vm120_vm2, %v2216_v35 }
0x10f4   :  { %v2188_v37 = vsub.f32 1.5, %v2187_v44 }
0x10f5   :  { %v4048_v51 = vpop.eup %4047 }
0x10f6   :  { %v2189_v13 = vmul.f32 %v4046_v47, %v2188_v37  ;;  %v2195_v6 = vmul.f32 %v4048_v51, %v2163_v34  ;;  %vm2201_vm13 = vweird.f32 %v4048_v51 }
0x10f7   :  { %vm2202_vm15 = vmor %vm2200_vm14, %vm2201_vm13 }
0x10f8   :  { %v2196_v58 = vmul.f32 %v4048_v51, %v2195_v6  ;;  %v2193_v32 = vsel %vm2192_vm12, %v4046_v47, %v2189_v13 }
0x10f9   :  { %v2206_v53 = vmul.f32 %v2193_v32, %v5092_v48 }
0x10fa   :  { %v2197_v10 = vmul.f32 0.5, %v2196_v58 }
0x10fb   :  { %v2210_v29 = vmul.f32 %v4183_v38, %v2206_v53 }
0x10fc   :  { %v2198_v1 = vsub.f32 1.5, %v2197_v10  ;;  %v4186_v10 = vld [vmem:[#allocation2 + $0x4] ss:$0 sm:$0xff] }
0x10fd   :  { %v2214_v50 = vadd.f32 %v4184_v57, %v2210_v29 }
0x10fe   :  { %v2199_v42 = vmul.f32 %v4048_v51, %v2198_v1 }
0x1100   :  { %v2203_v63 = vsel %vm2202_vm15, %v4048_v51, %v2199_v42 }
0x1101   :  { %v2207_v46 = vmul.f32 %v2203_v63, %v5099_v61 }
0x1103   :  { %v2211_v8 = vmul.f32 %v4183_v38, %v2207_v46 }
0x1105   :  { %v2215_v30 = vadd.f32 %v4184_v57, %v2211_v8 }
0x1107   :  { %v2217_v54 = vpack.c.bf16 %v2215_v30, %v2214_v50 }
0x1109   :  { %3627 = vmatmul.msk.bf16.gmra.mxu3 %vm120_vm2, %v2217_v54 }
0x1176   :  { %v2233_v60 = vpop.f32.mrf.mxu3 }
0x1177   :  { %v2234_v62 = vadd.f32 %v4185_v14, %v2233_v60 }
0x1179   :  { %v2247_v45 = vmul.f32 0.044715, %v2234_v62  ;;  %v2243_v41 = vmul.f32 0.5, %v2234_v62 }
0x117b   :  { %v2251_v15 = vmul.f32 %v2247_v45, %v2234_v62 }
0x117d   :  { %v2255_v19 = vmul.f32 %v2251_v15, %v2234_v62 }
0x117e   :  { %v2235_v48 = vpop.f32.mrf.mxu3 }
0x117f   :  { %v2259_v40 = vadd.f32 %v2255_v19, %v2234_v62  ;;  %v2236_v56 = vadd.f32 %v4185_v14, %v2235_v48 }
0x1181   :  { %v2248_v55 = vmul.f32 0.044715, %v2236_v56  ;;  %v2263_v20 = vmul.f32 0.7978846, %v2259_v40  ;;  %v2244_v11 = vmul.f32 0.5, %v2236_v56 }
0x1183   :  { %v2252_v39 = vmul.f32 %v2248_v55, %v2236_v56  ;;  %4049 = vtanh.f32 %v2263_v20 }
0x1185   :  { %v2256_v61 = vmul.f32 %v2252_v39, %v2236_v56 }
0x1187   :  { %v2260_v5 = vadd.f32 %v2256_v61, %v2236_v56 }
0x1189   :  { %v2264_v36 = vmul.f32 0.7978846, %v2260_v5  ;;  %v4050_v12 = vpop.eup %4049 }
0x118a   :  { %v2271_v18 = vadd.f32 1.0, %v4050_v12 }
0x118b   :  { %4051 = vtanh.f32 %v2264_v36 }
0x118c   :  { %v2238_v0 = vpop.f32.mrf.mxu3  ;;  %v2275_v22 = vmul.f32 %v2271_v18, %v2243_v41 }
0x118d   :  { %v2239_v2 = vadd.f32 %v4185_v14, %v2238_v0 }
0x118f   :  { %v2249_v27 = vmul.f32 0.044715, %v2239_v2  ;;  %v2245_v44 = vmul.f32 0.5, %v2239_v2 }
0x1191   :  { %v4052_v3 = vpop.eup %4051  ;;  %v2253_v52 = vmul.f32 %v2249_v27, %v2239_v2 }
0x1192   :  { %v2272_v4 = vadd.f32 1.0, %v4052_v3 }
0x1193   :  { %v2257_v9 = vmul.f32 %v2253_v52, %v2239_v2 }
0x1194   :  { %v2240_v7 = vpop.f32.mrf.mxu3  ;;  %v2276_v38 = vmul.f32 %v2272_v4, %v2244_v11 }
0x1195   :  { %v2241_v28 = vadd.f32 %v4185_v14, %v2240_v7  ;;  %v2261_v16 = vadd.f32 %v2257_v9, %v2239_v2 }
0x1196   :  { %v2279_v17 = vpack.c.bf16 %v2276_v38, %v2275_v22 }
0x1197   :  { %v2250_v47 = vmul.f32 0.044715, %v2241_v28  ;;  %v2265_v34 = vmul.f32 0.7978846, %v2261_v16  ;;  %v2246_v37 = vmul.f32 0.5, %v2241_v28 }
0x1198   :  { %2289 = vmatmul.bf16.vlgmr.msra.gmra.mxu0 %v2279_v17 }
0x1199   :  { %v2254_v23 = vmul.f32 %v2250_v47, %v2241_v28  ;;  %4053 = vtanh.f32 %v2265_v34 }
0x119b   :  { %v2258_v31 = vmul.f32 %v2254_v23, %v2241_v28 }
0x119d   :  { %v2262_v57 = vadd.f32 %v2258_v31, %v2241_v28 }
0x119f   :  { %v2266_v43 = vmul.f32 0.7978846, %v2262_v57  ;;  %v4054_v26 = vpop.eup %4053 }
0x11a0   :  { %v2273_v21 = vadd.f32 1.0, %v4054_v26 }
0x11a1   :  { %4055 = vtanh.f32 %v2266_v43 }
0x11a2   :  { %v2277_v13 = vmul.f32 %v2273_v21, %v2245_v44 }
0x11a7   :  { %v4056_v35 = vpop.eup %4055 }
0x11a8   :  { %v2274_v51 = vadd.f32 1.0, %v4056_v35 }
0x11aa   :  { %v2278_v6 = vmul.f32 %v2274_v51, %v2246_v37  ;;  %v4187_v37 = vld [vmem:[#allocation2 + $0x9] ss:$0 sm:$0xff] }
0x11ac   :  { %v2280_v58 = vpack.c.bf16 %v2278_v6, %v2277_v13  ;;  %v4188_v6 = vld [vmem:[#allocation2 + $0xa] ss:$0 sm:$0xff] }
0x11ae   :  { %2294 = vmatmul.bf16.gmra.mxu0 %v2280_v58 }
0x1215   :  { %v2290_v32 = vpop.f32.mrf.mxu0 }
0x1216   :  { %v2291_v1 = vadd.f32 %v4186_v10, %v2290_v32 }
0x1218   :  { %v2300_v53 = vadd.f32 %v2291_v1, %v5065_v49 }
0x121a   :  { %v2304_v42 = vsel %vm120_vm2, %v2300_v53, 0.0 }
0x121b   :  { %2305 = vadd.xlane.f32.xlu0 %v2304_v42 }
0x121d   :  { %v2292_v63 = vpop.f32.mrf.mxu0 }
0x121e   :  { %v2293_v46 = vadd.f32 %v4186_v10, %v2292_v63 }
0x1220   :  { %v2301_v29 = vadd.f32 %v2293_v46, %v5070_v24 }
0x1222   :  { %v2307_v8 = vsel %vm120_vm2, %v2301_v29, 0.0 }
0x1223   :  { %2308 = vadd.xlane.f32.xlu2 %v2307_v8 }
0x122b   :  { %v2295_v50 = vpop.f32.mrf.mxu0 }
0x122c   :  { %v2296_v30 = vadd.f32 %v4186_v10, %v2295_v50 }
0x122e   :  { %v2302_v54 = vadd.f32 %v2296_v30, %v5075_v59 }
0x1230   :  { %v2310_v60 = vsel %vm120_vm2, %v2302_v54, 0.0 }
0x1231   :  { %2311 = vadd.xlane.f32.xlu1 %v2310_v60 }
0x1233   :  { %v2297_v14 = vpop.f32.mrf.mxu0 }
0x1234   :  { %v2298_v62 = vadd.f32 %v4186_v10, %v2297_v14  ;;  %v4189_v10 = vld [vmem:[#allocation2 + $0x10] sm:$0xff] }
0x1236   :  { %v2303_v49 = vadd.f32 %v2298_v62, %v5080_v25  ;;  %v4190_v62 = vld [vmem:[#allocation2 + $0x18] sm:$0xff] }
0x1238   :  { %v2313_v45 = vsel %vm120_vm2, %v2303_v49, 0.0 }
0x1239   :  { %2314 = vadd.xlane.f32.xlu0 %v2313_v45 }
0x128e   :  { %v2306_v15 = vpop.xlane.xlu0 %2305 }
0x128f   :  { %v2316_v24 = vmul.f32 %v2306_v15, %v4312_v33 }
0x1291   :  { %v2320_v19 = vsub.f32 %v2300_v53, %v2316_v24 }
0x1293   :  { %v2324_v48 = vmul.f32 %v2320_v19, %v2320_v19 }
0x1295   :  { %v2328_v40 = vsel %vm120_vm2, %v2324_v48, 0.0 }
0x1296   :  { %2329 = vadd.xlane.f32.xlu2 %v2328_v40  ;;  %v2309_v56 = vpop.xlane.xlu2 %2308 }
0x1297   :  { %v2317_v59 = vmul.f32 %v2309_v56, %v4312_v33 }
0x1299   :  { %v2321_v55 = vsub.f32 %v2301_v29, %v2317_v59 }
0x129b   :  { %v2325_v20 = vmul.f32 %v2321_v55, %v2321_v55 }
0x129d   :  { %v2331_v39 = vsel %vm120_vm2, %v2325_v20, 0.0 }
0x129e   :  { %2332 = vadd.xlane.f32.xlu1 %v2331_v39 }
0x12a4   :  { %v2312_v25 = vpop.xlane.xlu1 %2311 }
0x12a5   :  { %v2318_v61 = vmul.f32 %v2312_v25, %v4312_v33 }
0x12a7   :  { %v5125_v5 = vsub.f32 %v2302_v54, %v2318_v61 }
0x12a9   :  { %v2326_v36 = vmul.f32 %v5125_v5, %v5125_v5 }
0x12ab   :  { %v2334_v0 = vsel %vm120_vm2, %v2326_v36, 0.0 }
0x12ac   :  { %v2315_v12 = vpop.xlane.xlu0 %2314  ;;  %2335 = vadd.xlane.f32.xlu0 %v2334_v0 }
0x12ad   :  { %v2319_v2 = vmul.f32 %v2315_v12, %v4312_v33 }
0x12af   :  { %v5131_v27 = vsub.f32 %v2303_v49, %v2319_v2 }
0x12b1   :  { %v2327_v18 = vmul.f32 %v5131_v27, %v5131_v27 }
0x12b3   :  { %v2337_v3 = vsel %vm120_vm2, %v2327_v18, 0.0 }
0x12b4   :  { %2338 = vadd.xlane.f32.xlu2 %v2337_v3 }
0x1309   :  { %v2330_v52 = vpop.xlane.xlu2 %2329 }
0x130a   :  { %v2340_v41 = vmul.f32 %v2330_v52, %v4312_v33 }
0x130c   :  { %v2344_v11 = vadd.f32 1e-05, %v2340_v41 }
0x130e   :  { %4057 = vrsqrt.f32 %v2344_v11  ;;  %vm2354_vm5 = vweird.f32 %v2344_v11 }
0x1311   :  { %v2333_v4 = vpop.xlane.xlu1 %2332 }
0x1312   :  { %v2341_v9 = vmul.f32 %v2333_v4, %v4312_v33 }
0x1314   :  { %v4058_v7 = vpop.eup %4057  ;;  %v2345_v22 = vadd.f32 1e-05, %v2341_v9 }
0x1315   :  { %v2349_v38 = vmul.f32 %v4058_v7, %v2344_v11  ;;  %vm2355_vm4 = vweird.f32 %v4058_v7 }
0x1316   :  { %4059 = vrsqrt.f32 %v2345_v22  ;;  %vm2356_vm6 = vmor %vm2354_vm5, %vm2355_vm4  ;;  %vm2364_vm8 = vweird.f32 %v2345_v22 }
0x1317   :  { %v2350_v28 = vmul.f32 %v4058_v7, %v2349_v38 }
0x1319   :  { %v2351_v16 = vmul.f32 0.5, %v2350_v28 }
0x131b   :  { %v2352_v17 = vsub.f32 1.5, %v2351_v16 }
0x131c   :  { %v4060_v47 = vpop.eup %4059 }
0x131d   :  { %v2353_v23 = vmul.f32 %v4058_v7, %v2352_v17  ;;  %v2359_v34 = vmul.f32 %v4060_v47, %v2345_v22  ;;  %vm2365_vm7 = vweird.f32 %v4060_v47 }
0x131e   :  { %vm2366_vm9 = vmor %vm2364_vm8, %vm2365_vm7 }
0x131f   :  { %v2357_v31 = vsel %vm2356_vm6, %v4058_v7, %v2353_v23  ;;  %v2360_v57 = vmul.f32 %v4060_v47, %v2359_v34  ;;  %v2336_v43 = vpop.xlane.xlu0 %2335 }
0x1320   :  { %v2388_v26 = vmul.f32 %v2357_v31, %v2320_v19  ;;  %v2342_v21 = vmul.f32 %v2336_v43, %v4312_v33 }
0x1321   :  { %v2361_v35 = vmul.f32 0.5, %v2360_v57 }
0x1322   :  { %v2346_v44 = vadd.f32 1e-05, %v2342_v21  ;;  %v2392_v51 = vmul.f32 %v4187_v37, %v2388_v26 }
0x1323   :  { %v2362_v13 = vsub.f32 1.5, %v2361_v35 }
0x1324   :  { %4061 = vrsqrt.f32 %v2346_v44  ;;  %v2396_v58 = vadd.f32 %v4188_v6, %v2392_v51  ;;  %vm2374_vm11 = vweird.f32 %v2346_v44 }
0x1325   :  { %v2363_v32 = vmul.f32 %v4060_v47, %v2362_v13 }
0x1326   :  { %v5139_v1 = vadd.f32 %v4189_v10, %v2396_v58 }
0x1327   :  { %v2367_v53 = vsel %vm2366_vm9, %v4060_v47, %v2363_v32  ;;  %v2339_v42 = vpop.xlane.xlu2 %2338 }
0x1328   :  { %v2389_v63 = vmul.f32 %v2367_v53, %v2321_v55  ;;  %v2343_v46 = vmul.f32 %v2339_v42, %v4312_v33  ;;  %v2404_v29 = vsel %vm120_vm2, %v5139_v1, 0.0 }
0x1329   :  { %2405 = vadd.xlane.f32.xlu1 %v2404_v29 }
0x132a   :  { %v4062_v8 = vpop.eup %4061  ;;  %v2347_v50 = vadd.f32 1e-05, %v2343_v46  ;;  %v2393_v30 = vmul.f32 %v4187_v37, %v2389_v63 }
0x132b   :  { %v2369_v54 = vmul.f32 %v4062_v8, %v2346_v44  ;;  %vm2375_vm10 = vweird.f32 %v4062_v8 }
0x132c   :  { %4063 = vrsqrt.f32 %v2347_v50  ;;  %v2397_v60 = vadd.f32 %v4188_v6, %v2393_v30  ;;  %vm2376_vm12 = vmor %vm2374_vm11, %vm2375_vm10  ;;  %vm2384_vm14 = vweird.f32 %v2347_v50 }
0x132d   :  { %v2370_v14 = vmul.f32 %v4062_v8, %v2369_v54 }
0x132e   :  { %v5144_v49 = vadd.f32 %v4190_v62, %v2397_v60 }
0x132f   :  { %v2371_v45 = vmul.f32 0.5, %v2370_v14 }
0x1330   :  { %v2407_v15 = vsel %vm120_vm2, %v5144_v49, 0.0 }
0x1331   :  { %v2372_v24 = vsub.f32 1.5, %v2371_v45  ;;  %2408 = vadd.xlane.f32.xlu0 %v2407_v15 }
0x1332   :  { %v4064_v19 = vpop.eup %4063 }
0x1333   :  { %v2373_v48 = vmul.f32 %v4062_v8, %v2372_v24  ;;  %v2379_v40 = vmul.f32 %v4064_v19, %v2347_v50  ;;  %vm2385_vm13 = vweird.f32 %v4064_v19 }
0x1334   :  { %vm2386_vm15 = vmor %vm2384_vm14, %vm2385_vm13 }
0x1335   :  { %v2377_v56 = vsel %vm2376_vm12, %v4062_v8, %v2373_v48  ;;  %v2380_v59 = vmul.f32 %v4064_v19, %v2379_v40 }
0x1336   :  { %v2390_v55 = vmul.f32 %v2377_v56, %v5125_v5  ;;  %v4191_v56 = vld [vmem:[#allocation2 + $0x5] ss:$0 sm:$0xff] }
0x1337   :  { %v2381_v20 = vmul.f32 0.5, %v2380_v59 }
0x1338   :  { %v2394_v39 = vmul.f32 %v4187_v37, %v2390_v55 }
0x1339   :  { %v2382_v25 = vsub.f32 1.5, %v2381_v20 }
0x133a   :  { %v2398_v61 = vadd.f32 %v4188_v6, %v2394_v39 }
0x133b   :  { %v2383_v36 = vmul.f32 %v4064_v19, %v2382_v25 }
0x133c   :  { %v5149_v0 = vadd.f32 %v4189_v10, %v2398_v61 }
0x133d   :  { %v2387_v12 = vsel %vm2386_vm15, %v4064_v19, %v2383_v36 }
0x133e   :  { %v2391_v2 = vmul.f32 %v2387_v12, %v5131_v27  ;;  %v2410_v18 = vsel %vm120_vm2, %v5149_v0, 0.0  ;;  %v4192_v12 = vld [vmem:[#allocation2 + $0x6] ss:$0 sm:$0xff] }
0x133f   :  { %2411 = vadd.xlane.f32.xlu2 %v2410_v18 }
0x1340   :  { %v2395_v3 = vmul.f32 %v4187_v37, %v2391_v2 }
0x1342   :  { %v2399_v52 = vadd.f32 %v4188_v6, %v2395_v3 }
0x1344   :  { %v5154_v5 = vadd.f32 %v4190_v62, %v2399_v52 }
0x1346   :  { %v2413_v41 = vsel %vm120_vm2, %v5154_v5, 0.0 }
0x1347   :  { %2414 = vadd.xlane.f32.xlu1 %v2413_v41 }
0x139c   :  { %v2406_v11 = vpop.xlane.xlu1 %2405 }
0x139d   :  { %v2416_v4 = vmul.f32 %v2406_v11, %v4312_v33 }
0x139f   :  { %v2420_v9 = vsub.f32 %v5139_v1, %v2416_v4 }
0x13a1   :  { %v2424_v7 = vmul.f32 %v2420_v9, %v2420_v9 }
0x13a3   :  { %v2428_v27 = vsel %vm120_vm2, %v2424_v7, 0.0 }
0x13a4   :  { %v2409_v22 = vpop.xlane.xlu0 %2408  ;;  %2429 = vadd.xlane.f32.xlu0 %v2428_v27 }
0x13a5   :  { %v2417_v38 = vmul.f32 %v2409_v22, %v4312_v33 }
0x13a7   :  { %v2421_v28 = vsub.f32 %v5144_v49, %v2417_v38 }
0x13a9   :  { %v2425_v16 = vmul.f32 %v2421_v28, %v2421_v28 }
0x13ab   :  { %v2431_v17 = vsel %vm120_vm2, %v2425_v16, 0.0 }
0x13ac   :  { %2432 = vadd.xlane.f32.xlu2 %v2431_v17 }
0x13b2   :  { %v2412_v47 = vpop.xlane.xlu2 %2411 }
0x13b3   :  { %v2418_v23 = vmul.f32 %v2412_v47, %v4312_v33 }
0x13b5   :  { %v5166_v34 = vsub.f32 %v5149_v0, %v2418_v23 }
0x13b7   :  { %v2426_v31 = vmul.f32 %v5166_v34, %v5166_v34 }
0x13b9   :  { %v2434_v57 = vsel %vm120_vm2, %v2426_v31, 0.0 }
0x13ba   :  { %v2415_v43 = vpop.xlane.xlu1 %2414  ;;  %2435 = vadd.xlane.f32.xlu1 %v2434_v57 }
0x13bb   :  { %v2419_v26 = vmul.f32 %v2415_v43, %v4312_v33 }
0x13bd   :  { %v5173_v21 = vsub.f32 %v5154_v5, %v2419_v26 }
0x13bf   :  { %v2427_v35 = vmul.f32 %v5173_v21, %v5173_v21 }
0x13c1   :  { %v2437_v44 = vsel %vm120_vm2, %v2427_v35, 0.0 }
0x13c2   :  { %2438 = vadd.xlane.f32.xlu0 %v2437_v44 }
0x1417   :  { %v2430_v37 = vpop.xlane.xlu0 %2429 }
0x1418   :  { %v2440_v51 = vmul.f32 %v2430_v37, %v4312_v33  ;;  %v4193_v37 = vld [vmem:[#allocation2 + $0x1] ss:$0 sm:$0xff] }
0x141a   :  { %v2444_v13 = vadd.f32 1e-05, %v2440_v51 }
0x141c   :  { %4065 = vrsqrt.f32 %v2444_v13  ;;  %vm2454_vm5 = vweird.f32 %v2444_v13 }
0x141f   :  { %v2433_v6 = vpop.xlane.xlu2 %2432 }
0x1420   :  { %v2441_v58 = vmul.f32 %v2433_v6, %v4312_v33 }
0x1422   :  { %v4066_v32 = vpop.eup %4065  ;;  %v2445_v10 = vadd.f32 1e-05, %v2441_v58 }
0x1423   :  { %v2449_v53 = vmul.f32 %v4066_v32, %v2444_v13  ;;  %vm2455_vm4 = vweird.f32 %v4066_v32 }
0x1424   :  { %4067 = vrsqrt.f32 %v2445_v10  ;;  %vm2456_vm6 = vmor %vm2454_vm5, %vm2455_vm4  ;;  %vm2464_vm8 = vweird.f32 %v2445_v10 }
0x1425   :  { %v2450_v42 = vmul.f32 %v4066_v32, %v2449_v53 }
0x1427   :  { %v2451_v63 = vmul.f32 0.5, %v2450_v42 }
0x1429   :  { %v2452_v46 = vsub.f32 1.5, %v2451_v63 }
0x142a   :  { %v4068_v29 = vpop.eup %4067 }
0x142b   :  { %v2453_v8 = vmul.f32 %v4066_v32, %v2452_v46  ;;  %v2459_v50 = vmul.f32 %v4068_v29, %v2445_v10  ;;  %vm2465_vm7 = vweird.f32 %v4068_v29 }
0x142c   :  { %vm2466_vm9 = vmor %vm2464_vm8, %vm2465_vm7 }
0x142d   :  { %v2460_v30 = vmul.f32 %v4068_v29, %v2459_v50  ;;  %v2436_v54 = vpop.xlane.xlu1 %2435  ;;  %v2457_v14 = vsel %vm2456_vm6, %v4066_v32, %v2453_v8 }
0x142e   :  { %v2442_v60 = vmul.f32 %v2436_v54, %v4312_v33  ;;  %v2488_v24 = vmul.f32 %v2457_v14, %v2420_v9 }
0x142f   :  { %v2461_v62 = vmul.f32 0.5, %v2460_v30 }
0x1430   :  { %v2446_v45 = vadd.f32 1e-05, %v2442_v60  ;;  %v2492_v59 = vmul.f32 %v4191_v56, %v2488_v24 }
0x1431   :  { %v2462_v15 = vsub.f32 1.5, %v2461_v62 }
0x1432   :  { %4069 = vrsqrt.f32 %v2446_v45  ;;  %v2496_v2 = vadd.f32 %v4192_v12, %v2492_v59  ;;  %vm2474_vm11 = vweird.f32 %v2446_v45 }
0x1433   :  { %v2463_v19 = vmul.f32 %v4068_v29, %v2462_v15 }
0x1435   :  { %v2467_v48 = vsel %vm2466_vm9, %v4068_v29, %v2463_v19  ;;  %v2439_v40 = vpop.xlane.xlu0 %2438 }
0x1436   :  { %v2489_v55 = vmul.f32 %v2467_v48, %v2421_v28  ;;  %v2443_v20 = vmul.f32 %v2439_v40, %v4312_v33 }
0x1438   :  { %v4070_v39 = vpop.eup %4069  ;;  %v2493_v25 = vmul.f32 %v4191_v56, %v2489_v55  ;;  %v2447_v61 = vadd.f32 1e-05, %v2443_v20 }
0x1439   :  { %v2469_v36 = vmul.f32 %v4070_v39, %v2446_v45  ;;  %vm2475_vm10 = vweird.f32 %v4070_v39 }
0x143a   :  { %v2497_v18 = vadd.f32 %v4192_v12, %v2493_v25  ;;  %4071 = vrsqrt.f32 %v2447_v61  ;;  %vm2476_vm12 = vmor %vm2474_vm11, %vm2475_vm10  ;;  %vm2484_vm14 = vweird.f32 %v2447_v61 }
0x143b   :  { %v2470_v3 = vmul.f32 %v4070_v39, %v2469_v36 }
0x143c   :  { %v2500_v52 = vpack.c.bf16 %v2497_v18, %v2496_v2 }
0x143d   :  { %v2471_v41 = vmul.f32 0.5, %v2470_v3 }
0x143e   :  { %3628 = vmatmul.msk.bf16.vlgmr.msra.gmra.mxu1 %vm120_vm2, %v2500_v52 }
0x143f   :  { %v2472_v11 = vsub.f32 1.5, %v2471_v41 }
0x1440   :  { %v4072_v4 = vpop.eup %4071 }
0x1441   :  { %v2473_v9 = vmul.f32 %v4070_v39, %v2472_v11  ;;  %v2479_v7 = vmul.f32 %v4072_v4, %v2447_v61  ;;  %vm2485_vm13 = vweird.f32 %v4072_v4 }
0x1442   :  { %vm2486_vm15 = vmor %vm2484_vm14, %vm2485_vm13 }
0x1443   :  { %v2480_v27 = vmul.f32 %v4072_v4, %v2479_v7  ;;  %v2477_v22 = vsel %vm2476_vm12, %v4070_v39, %v2473_v9 }
0x1444   :  { %v2490_v16 = vmul.f32 %v2477_v22, %v5166_v34 }
0x1445   :  { %v2481_v38 = vmul.f32 0.5, %v2480_v27 }
0x1446   :  { %v2494_v31 = vmul.f32 %v4191_v56, %v2490_v16 }
0x1447   :  { %v2482_v28 = vsub.f32 1.5, %v2481_v38 }
0x1448   :  { %v2498_v43 = vadd.f32 %v4192_v12, %v2494_v31 }
0x1449   :  { %v2483_v17 = vmul.f32 %v4072_v4, %v2482_v28 }
0x144b   :  { %v2487_v47 = vsel %vm2486_vm15, %v4072_v4, %v2483_v17 }
0x144c   :  { %v2491_v23 = vmul.f32 %v2487_v47, %v5173_v21 }
0x144e   :  { %v2495_v57 = vmul.f32 %v4191_v56, %v2491_v23 }
0x1450   :  { %v2499_v26 = vadd.f32 %v4192_v12, %v2495_v57 }
0x1452   :  { %v2501_v35 = vpack.c.bf16 %v2499_v26, %v2498_v43 }
0x1454   :  { %3629 = vmatmul.msk.bf16.gmra.mxu1 %vm120_vm2, %v2501_v35 }
0x14bb   :  { %v2517_v44 = vpop.f32.mrf.mxu1 }
0x14bc   :  { %v2518_v51 = vadd.f32 %v4193_v37, %v2517_v44 }
0x14be   :  { %v2567_v6 = vpack.c.bf16 %v2518_v51, %v2518_v51 }
0x14c0   :  { %v2587_v10 = vunpack.c.l.b16 %v2567_v6 }
0x14c3   :  { %v2519_v13 = vpop.f32.mrf.mxu1 }
0x14c4   :  { %v2520_v58 = vadd.f32 %v4193_v37, %v2519_v13 }
0x14c6   :  { %v2568_v34 = vpack.c.bf16 %v2520_v58, %v2520_v58  ;;  %v3803_v32 = vpack.i.bf16 %v2520_v58, %v2518_v51 }
0x14c8   :  { %v2588_v53 = vunpack.c.l.b16 %v2568_v34  ;;  %3804 = vrot.lane.b32.xlu1 %v3803_v32, %s4247_s4 }
0x14ca   :  { %v5187_v21 = vpack.c.b16 %v2588_v53, %v2587_v10 }
0x14d0   :  { %3824 = vrot.lane.b32.xlu1 %v3803_v32, %s4249_s6 }
0x14d1   :  { %v2522_v42 = vpop.f32.mrf.mxu1 }
0x14d2   :  { %v2523_v63 = vadd.f32 %v4193_v37, %v2522_v42 }
0x14d4   :  { %v2569_v29 = vpack.c.bf16 %v2523_v63, %v2523_v63 }
0x14d6   :  { %v2589_v54 = vunpack.c.l.b16 %v2569_v29 }
0x14d9   :  { %v2524_v46 = vpop.f32.mrf.mxu1 }
0x14da   :  { %v2525_v8 = vadd.f32 %v4193_v37, %v2524_v46 }
0x14dc   :  { %v2570_v50 = vpack.c.bf16 %v2525_v8, %v2525_v8  ;;  %v3808_v30 = vpack.i.bf16 %v2525_v8, %v2523_v63 }
0x14de   :  { %v2590_v60 = vunpack.c.l.b16 %v2570_v50  ;;  %3809 = vrot.lane.b32.xlu0 %v3808_v30, %s4248_s5  ;;  %3799 = vrot.lane.b32.xlu2 %v3808_v30, %s4247_s4 }
0x14e0   :  { %v5192_v14 = vpack.c.b16 %v2590_v60, %v2589_v54 }
0x14e6   :  { %3814 = vrot.lane.b32.xlu2 %v3808_v30, %s4249_s6  ;;  %3819 = vrot.lane.b32.xlu0 %v3803_v32, %s4248_s5 }
0x1538   :  { %v3800_v62 = vpop.permute.xlu2 %3799 }
0x1539   :  { %v3802_v45 = vunpack.i.h.bf16 %v3800_v62  ;;  %v3801_v15 = vunpack.i.l.bf16 %v3800_v62 }
0x153a   :  { %v3805_v24 = vpop.permute.xlu1 %3804 }
0x153b   :  { %v2574_v19 = vpack.c.bf16 %v3802_v45, %v3802_v45  ;;  %v2573_v48 = vpack.c.bf16 %v3801_v15, %v3801_v15  ;;  %v3807_v40 = vunpack.i.h.bf16 %v3805_v24  ;;  %v3806_v56 = vunpack.i.l.bf16 %v3805_v24 }
0x153d   :  { %v2635_v59 = vunpack.c.l.b16 %v2574_v19  ;;  %v2634_v55 = vunpack.c.l.b16 %v2573_v48  ;;  %v2572_v20 = vpack.c.bf16 %v3807_v40, %v3807_v40  ;;  %v2571_v39 = vpack.c.bf16 %v3806_v56, %v3806_v56 }
0x153f   :  { %v5196_v25 = vpack.c.b16 %v2635_v59, %v2634_v55  ;;  %v2633_v61 = vunpack.c.l.b16 %v2572_v20  ;;  %v2632_v36 = vunpack.c.l.b16 %v2571_v39  ;;  %v4194_v20 = vld [vmem:[%s5570_s2 + $0x2c] sm:$0xff]  ;;  %v4195_v39 = vld [vmem:[%s5570_s2 + $0x24] sm:$0xff] }
0x1540   :  { %v3815_v12 = vpop.permute.xlu2 %3814 }
0x1541   :  { %v2636_v2 = vpack.c.b16 %v2633_v61, %v2632_v36  ;;  %v3817_v18 = vunpack.i.h.bf16 %v3815_v12  ;;  %v3816_v3 = vunpack.i.l.bf16 %v3815_v12  ;;  %2640 = vrot.lane.b32.xlu2 %v5196_v25, %s4250_s7 }
0x1542   :  { %v3825_v7 = vpop.permute.xlu1 %3824 }
0x1543   :  { %v2582_v52 = vpack.c.bf16 %v3817_v18, %v3817_v18  ;;  %v2581_v41 = vpack.c.bf16 %v3816_v3, %v3816_v3  ;;  %2638 = vrot.lane.b32.xlu0 %v2636_v2, %s4250_s7  ;;  %v3827_v28 = vunpack.i.h.bf16 %v3825_v7  ;;  %v3826_v16 = vunpack.i.l.bf16 %v3825_v7 }
0x1545   :  { %v2725_v11 = vunpack.c.l.b16 %v2582_v52  ;;  %v2724_v4 = vunpack.c.l.b16 %v2581_v41  ;;  %v2580_v57 = vpack.c.bf16 %v3827_v28, %v3827_v28  ;;  %v2579_v43 = vpack.c.bf16 %v3826_v16, %v3826_v16 }
0x1547   :  { %v5201_v9 = vpack.c.b16 %v2725_v11, %v2724_v4  ;;  %v2723_v51 = vunpack.c.l.b16 %v2580_v57  ;;  %v2722_v13 = vunpack.c.l.b16 %v2579_v43  ;;  %v4197_v4 = vld [vmem:[#allocation2 + $0x28] sm:$0xff] }
0x1549   :  { %2730 = vrot.lane.b32.xlu2 %v5201_v9, %s4250_s7  ;;  %v5210_v10 = vpack.c.b16 %v2723_v51, %v2722_v13 }
0x1550   :  { %v3810_v27 = vpop.permute.xlu0 %3809 }
0x1551   :  { %v3812_v22 = vunpack.i.h.bf16 %v3810_v27  ;;  %v3811_v38 = vunpack.i.l.bf16 %v3810_v27  ;;  %2595 = vrot.lane.b32.xlu2 %v5192_v14, %s4250_s7 }
0x1553   :  { %v2578_v17 = vpack.c.bf16 %v3812_v22, %v3812_v22  ;;  %v2577_v47 = vpack.c.bf16 %v3811_v38, %v3811_v38 }
0x1555   :  { %v2680_v23 = vunpack.c.l.b16 %v2578_v17  ;;  %v2679_v31 = vunpack.c.l.b16 %v2577_v47  ;;  %v4198_v17 = vld [vmem:[#allocation2 + $0x30] sm:$0xff] }
0x1557   :  { %v2682_v26 = vpack.c.b16 %v2680_v23, %v2679_v31 }
0x1558   :  { %v3820_v35 = vpop.permute.xlu0 %3819 }
0x1559   :  { %v3822_v44 = vunpack.i.h.bf16 %v3820_v35  ;;  %v3821_v37 = vunpack.i.l.bf16 %v3820_v35  ;;  %3008 = vrot.lane.b32.xlu2 %v5196_v25, %s4251_s8  ;;  %2685 = vrot.lane.b32.xlu1 %v2682_v26, %s4250_s7 }
0x155b   :  { %v2576_v6 = vpack.c.bf16 %v3822_v44, %v3822_v44  ;;  %v2575_v58 = vpack.c.bf16 %v3821_v37, %v3821_v37  ;;  %v4199_v37 = vld [vmem:[#allocation2 + $0x38] sm:$0xff] }
0x155d   :  { %v2678_v34 = vunpack.c.l.b16 %v2576_v6  ;;  %v2677_v32 = vunpack.c.l.b16 %v2575_v58 }
0x155f   :  { %v5212_v53 = vpack.c.b16 %v2678_v34, %v2677_v32 }
0x1561   :  { %2728 = vrot.lane.b32.xlu1 %v5210_v10, %s4250_s7  ;;  %2683 = vrot.lane.b32.xlu0 %v5212_v53, %s4250_s7 }
0x1569   :  { %3049 = vrot.lane.b32.xlu1 %v2682_v26, %s4251_s8  ;;  %2593 = vrot.lane.b32.xlu0 %v5187_v21, %s4250_s7 }
0x1571   :  { %3006 = vrot.lane.b32.xlu0 %v2636_v2, %s4251_s8 }
0x1579   :  { %3090 = vrot.lane.b32.xlu0 %v5201_v9, %s4251_s8 }
0x159b   :  { %v2641_v42 = vpop.permute.xlu2 %2640 }
0x159c   :  { %v2652_v63 = vsel %vm86_vm1, %v2641_v42, 0 }
0x159d   :  { %2660 = vmatpush.bf16.xpose.msra.mxu3 %v2652_v63 }
0x15a3   :  { %v2731_v46 = vpop.permute.xlu2 %2730 }
0x15a4   :  { %v2742_v29 = vsel %vm86_vm1, %v2731_v46, 0 }
0x15a5   :  { %2750 = vmatpush.bf16.xpose.msrb.mxu1 %v2742_v29 }
0x15ab   :  { %v2596_v8 = vpop.permute.xlu2 %2595 }
0x15ac   :  { %v2607_v50 = vsel %vm86_vm1, %v2596_v8, 0 }
0x15ad   :  { %2615 = vmatpush.bf16.xpose.msrb.mxu2 %v2607_v50 }
0x15b3   :  { %v3009_v60 = vpop.permute.xlu2 %3008 }
0x15b5   :  { %v2639_v30 = vpop.permute.xlu0 %2638 }
0x15b6   :  { %v2649_v54 = vsel %vm86_vm1, %v2639_v30, 0 }
0x15b7   :  { %2661 = vmatpush.bf16.xpose.msra.mxu3 %v2649_v54 }
0x15be   :  { %3632 = vmatmul.msk.bf16.vlgmr.msra.gmra.mxu3 %vm86_vm1, %v2636_v2  ;;  %v4196_v2 = vld [vmem:[#allocation2 + $0x20] sm:$0xff] }
0x15bf   :  { %3024 = vmatpush.bf16.msrb.mxu3 %v3009_v60 }
0x15cb   :  { %v2686_v62 = vpop.permute.xlu1 %2685 }
0x15cc   :  { %v2697_v45 = vsel %vm86_vm1, %v2686_v62, 0 }
0x15cd   :  { %2705 = vmatpush.bf16.xpose.msrb.mxu0 %v2697_v45 }
0x15ce   :  { %3633 = vmatmul.msk.bf16.gmra.mxu3 %vm86_vm1, %v5196_v25 }
0x15d3   :  { %v2729_v15 = vpop.permute.xlu1 %2728  ;;  %v2684_v24 = vpop.permute.xlu0 %2683 }
0x15d4   :  { %v2739_v19 = vsel %vm86_vm1, %v2729_v15, 0  ;;  %v2694_v48 = vsel %vm86_vm1, %v2684_v24, 0 }
0x15d5   :  { %2706 = vmatpush.bf16.xpose.msrb.mxu0 %v2694_v48  ;;  %2751 = vmatpush.bf16.xpose.msrb.mxu1 %v2739_v19 }
0x15db   :  { %v3050_v40 = vpop.permute.xlu1 %3049  ;;  %v2594_v56 = vpop.permute.xlu0 %2593 }
0x15dc   :  { %v2604_v59 = vsel %vm86_vm1, %v2594_v56, 0  ;;  %3634 = vmatmul.msk.bf16.vlgmr.msrb.gmra.mxu0 %vm86_vm1, %v5212_v53  ;;  %3636 = vmatmul.msk.bf16.vlgmr.msrb.gmra.mxu1 %vm86_vm1, %v5210_v10 }
0x15dd   :  { %3065 = vmatpush.bf16.msra.mxu0 %v3050_v40  ;;  %2616 = vmatpush.bf16.xpose.msrb.mxu2 %v2604_v59 }
0x15e3   :  { %v3007_v55 = vpop.permute.xlu0 %3006 }
0x15e4   :  { %3630 = vmatmul.msk.bf16.vlgmr.msrb.gmra.mxu2 %vm86_vm1, %v5187_v21  ;;  %3025 = vmatpush.bf16.msrb.mxu3 %v3007_v55 }
0x15e8   :  { %3320 = vmatpush.bf16.msra.mxu3 %v4194_v20 }
0x15eb   :  { %v3091_v25 = vpop.permute.xlu0 %3090 }
0x15ec   :  { %3321 = vmatpush.bf16.msra.mxu3 %v4195_v39  ;;  %3635 = vmatmul.msk.bf16.gmra.mxu0 %vm86_vm1, %v2682_v26 }
0x15ed   :  { %3637 = vmatmul.msk.bf16.gmra.mxu1 %vm86_vm1, %v5201_v9 }
0x15ee   :  { %3106 = vmatpush.bf16.msra.mxu1 %v3091_v25 }
0x15f4   :  { %3631 = vmatmul.msk.bf16.gmra.mxu2 %vm86_vm1, %v5192_v14 }
0x1641   :  { %v2663_v12 = vpop.f32.mrf.mxu3 }
0x1642   :  { %v5256_v52 = vadd.f32 %v4196_v2, %v2663_v12 }
0x1644   :  { %v2775_v22 = vsel %vm120_vm2, %v5256_v52, -inf }
0x1649   :  { %v2665_v7 = vpop.f32.mrf.mxu3 }
0x164a   :  { %v5278_v42 = vadd.f32 %v4197_v4, %v2665_v7 }
0x164c   :  { %v2778_v8 = vsel %vm120_vm2, %v5278_v42, -inf }
0x1651   :  { %v2668_v43 = vpop.f32.mrf.mxu3 }
0x1652   :  { %v5269_v35 = vadd.f32 %v4198_v17, %v2668_v43 }
0x1654   :  { %v2781_v34 = vsel %vm120_vm2, %v5269_v35, -inf }
0x1659   :  { %v2708_v61 = vpop.f32.mrf.mxu0  ;;  %v2753_v28 = vpop.f32.mrf.mxu1 }
0x165a   :  { %v2754_v26 = vadd.f32 %v4196_v2, %v2753_v28  ;;  %v2709_v63 = vadd.f32 %v4196_v2, %v2708_v61  ;;  %v2670_v15 = vpop.f32.mrf.mxu3 }
0x165b   :  { %v5289_v24 = vadd.f32 %v4199_v37, %v2670_v15 }
0x165c   :  { %v2799_v58 = vsel %vm120_vm2, %v2754_v26, -inf  ;;  %v2787_v29 = vsel %vm120_vm2, %v2709_v63, -inf }
0x165d   :  { %v2784_v40 = vsel %vm120_vm2, %v5289_v24, -inf }
0x1661   :  { %v2710_v11 = vpop.f32.mrf.mxu0  ;;  %v2755_v13 = vpop.f32.mrf.mxu1 }
0x1662   :  { %v2711_v38 = vadd.f32 %v4197_v4, %v2710_v11  ;;  %v2756_v54 = vadd.f32 %v4197_v4, %v2755_v13 }
0x1664   :  { %v2790_v57 = vsel %vm120_vm2, %v2711_v38, -inf  ;;  %v2802_v62 = vsel %vm120_vm2, %v2756_v54, -inf }
0x1667   :  { %v2618_v36 = vpop.f32.mrf.mxu2 }
0x1668   :  { %v5252_v18 = vadd.f32 %v4196_v2, %v2618_v36 }
0x1669   :  { %v2713_v23 = vpop.f32.mrf.mxu0 }
0x166a   :  { %v2763_v3 = vsel %vm120_vm2, %v5252_v18, -inf  ;;  %v2758_v50 = vpop.f32.mrf.mxu1  ;;  %v5291_v19 = vadd.f32 %v4198_v17, %v2713_v23 }
0x166b   :  { %2764 = vmax.xlane.f32.xlu1 %v2763_v3  ;;  %v2759_v60 = vadd.f32 %v4198_v17, %v2758_v50 }
0x166c   :  { %v2793_v48 = vsel %vm120_vm2, %v5291_v19, -inf }
0x166d   :  { %v2805_v45 = vsel %vm120_vm2, %v2759_v60, -inf }
0x166f   :  { %v2620_v41 = vpop.f32.mrf.mxu2 }
0x1670   :  { %v5258_v9 = vadd.f32 %v4197_v4, %v2620_v41 }
0x1671   :  { %v2715_v32 = vpop.f32.mrf.mxu0 }
0x1672   :  { %v2766_v27 = vsel %vm120_vm2, %v5258_v9, -inf  ;;  %v5280_v46 = vadd.f32 %v4199_v37, %v2715_v32  ;;  %v2760_v56 = vpop.f32.mrf.mxu1 }
0x1673   :  { %2767 = vmax.xlane.f32.xlu2 %v2766_v27  ;;  %2776 = vmax.xlane.f32.xlu1 %v2775_v22  ;;  %v5297_v59 = vadd.f32 %v4199_v37, %v2760_v56 }
0x1674   :  { %v2796_v30 = vsel %vm120_vm2, %v5280_v46, -inf }
0x1675   :  { %v2808_v55 = vsel %vm120_vm2, %v5297_v59, -inf }
0x1677   :  { %v2623_v16 = vpop.f32.mrf.mxu2 }
0x1678   :  { %v5264_v47 = vadd.f32 %v4198_v17, %v2623_v16 }
0x167a   :  { %v2769_v31 = vsel %vm120_vm2, %v5264_v47, -inf }
0x167b   :  { %2770 = vmax.xlane.f32.xlu2 %v2769_v31  ;;  %2791 = vmax.xlane.f32.xlu1 %v2790_v57 }
0x167f   :  { %v2625_v44 = vpop.f32.mrf.mxu2 }
0x1680   :  { %v5271_v51 = vadd.f32 %v4199_v37, %v2625_v44 }
0x1682   :  { %v2772_v6 = vsel %vm120_vm2, %v5271_v51, -inf }
0x1683   :  { %2773 = vmax.xlane.f32.xlu0 %v2772_v6  ;;  %2800 = vmax.xlane.f32.xlu2 %v2799_v58 }
0x1684   :  { %2782 = vmax.xlane.f32.xlu1 %v2781_v34 }
0x168b   :  { %2788 = vmax.xlane.f32.xlu0 %v2787_v29  ;;  %2779 = vmax.xlane.f32.xlu2 %v2778_v8 }
0x168c   :  { %2797 = vmax.xlane.f32.xlu1 %v2796_v30 }
0x1693   :  { %2803 = vmax.xlane.f32.xlu0 %v2802_v62  ;;  %2806 = vmax.xlane.f32.xlu2 %v2805_v45 }
0x169b   :  { %2794 = vmax.xlane.f32.xlu0 %v2793_v48  ;;  %2785 = vmax.xlane.f32.xlu2 %v2784_v40 }
0x16a3   :  { %2809 = vmax.xlane.f32.xlu0 %v2808_v55 }
0x16de   :  { %v5301_v20 = vpop.xlane.xlu1 %2764 }
0x16e6   :  { %v5303_v39 = vpop.xlane.xlu2 %2767  ;;  %v2777_v25 = vpop.xlane.xlu1 %2776 }
0x16e7   :  { %v2815_v4 = vsub.f32 %v5256_v52, %v2777_v25 }
0x16e9   :  { %v2835_v28 = vmul.f32 1.442695, %v2815_v4 }
0x16ee   :  { %v5305_v61 = vpop.xlane.xlu2 %2770  ;;  %v2792_v36 = vpop.xlane.xlu1 %2791 }
0x16ef   :  { %v2820_v12 = vsub.f32 %v2711_v38, %v2792_v36 }
0x16f1   :  { %v2845_v2 = vmul.f32 1.442695, %v2820_v12 }
0x16f3   :  { %4073 = vpow2.f32 %v2845_v2 }
0x16f6   :  { %v2801_v3 = vpop.xlane.xlu2 %2800  ;;  %v5307_v41 = vpop.xlane.xlu0 %2773 }
0x16f7   :  { %v2823_v11 = vsub.f32 %v2754_v26, %v2801_v3  ;;  %v2783_v50 = vpop.xlane.xlu1 %2782 }
0x16f9   :  { %v2851_v7 = vmul.f32 1.442695, %v2823_v11  ;;  %v5310_v27 = vpop.eup %4073 }
0x16fa   :  { %v2886_v22 = vsel %vm120_vm2, %v5310_v27, 0.0 }
0x16fb   :  { %4075 = vpow2.f32 %v2851_v7  ;;  %2887 = vadd.xlane.f32.xlu2 %v2886_v22  ;;  %v2812_v7 = vsub.f32 %v5258_v9, %v5303_v39 }
0x16fc   :  { %4077 = vpow2.f32 %v2835_v28 }
0x16fe   :  { %v2789_v16 = vpop.xlane.xlu0 %2788  ;;  %v2780_v52 = vpop.xlane.xlu2 %2779 }
0x16ff   :  { %v2819_v17 = vsub.f32 %v2709_v63, %v2789_v16  ;;  %v2816_v6 = vsub.f32 %v5278_v42, %v2780_v52  ;;  %v2798_v2 = vpop.xlane.xlu1 %2797  ;;  %v2829_v16 = vmul.f32 1.442695, %v2812_v7  ;;  %v2814_v52 = vsub.f32 %v5271_v51, %v5307_v41 }
0x1700   :  { %v2822_v11 = vsub.f32 %v5280_v46, %v2798_v2 }
0x1701   :  { %v5314_v38 = vpop.eup %4075  ;;  %v2843_v23 = vmul.f32 1.442695, %v2819_v17  ;;  %v2837_v34 = vmul.f32 1.442695, %v2816_v6 }
0x1702   :  { %v2895_v31 = vsel %vm120_vm2, %v5314_v38, 0.0  ;;  %v5318_v43 = vpop.eup %4077  ;;  %v2849_v22 = vmul.f32 1.442695, %v2822_v11 }
0x1703   :  { %2896 = vadd.xlane.f32.xlu0 %v2895_v31  ;;  %4079 = vpow2.f32 %v2843_v23  ;;  %v2871_v37 = vsel %vm120_vm2, %v5318_v43, 0.0  ;;  %v2813_v23 = vsub.f32 %v5264_v47, %v5305_v61 }
0x1705   :  { %v2831_v31 = vmul.f32 1.442695, %v2813_v23 }
0x1706   :  { %v2804_v57 = vpop.xlane.xlu0 %2803  ;;  %v2807_v32 = vpop.xlane.xlu2 %2806 }
0x1707   :  { %v2824_v26 = vsub.f32 %v2756_v54, %v2804_v57  ;;  %v2825_v29 = vsub.f32 %v2759_v60, %v2807_v32  ;;  %v2817_v54 = vsub.f32 %v5269_v35, %v2783_v50  ;;  %v2833_v57 = vmul.f32 1.442695, %v2814_v52  ;;  %v4203_v50 = vld [vmem:[%s5570_s2 + $0x54] sm:$0xff] }
0x1709   :  { %v2853_v44 = vmul.f32 1.442695, %v2824_v26  ;;  %v5322_v13 = vpop.eup %4079  ;;  %v2855_v42 = vmul.f32 1.442695, %v2825_v29  ;;  %v2839_v45 = vmul.f32 1.442695, %v2817_v54 }
0x170a   :  { %v2883_v58 = vsel %vm120_vm2, %v5322_v13, 0.0 }
0x170b   :  { %2872 = vadd.xlane.f32.xlu0 %v2871_v37  ;;  %4081 = vpow2.f32 %v2853_v44  ;;  %2884 = vadd.xlane.f32.xlu1 %v2883_v58  ;;  %v4200_v58 = vld [vmem:[%s5570_s2 + $0x6c] sm:$0xff] }
0x170c   :  { %4083 = vpow2.f32 %v2837_v34  ;;  %v4201_v34 = vld [vmem:[%s5570_s2 + $0x64] sm:$0xff] }
0x170d   :  { %4085 = vpow2.f32 %v2855_v42 }
0x170e   :  { %v2786_v60 = vpop.xlane.xlu2 %2785  ;;  %4087 = vpow2.f32 %v2839_v45  ;;  %v2795_v35 = vpop.xlane.xlu0 %2794 }
0x170f   :  { %v2821_v55 = vsub.f32 %v5291_v19, %v2795_v35  ;;  %v4204_v35 = vld [vmem:[%s5570_s2 + $0x4c] sm:$0xff] }
0x1711   :  { %v5327_v63 = vpop.eup %4081  ;;  %v2847_v25 = vmul.f32 1.442695, %v2821_v55 }
0x1712   :  { %v2898_v8 = vsel %vm120_vm2, %v5327_v63, 0.0  ;;  %v5333_v30 = vpop.eup %4083 }
0x1713   :  { %3047 = vrot.lane.b32.xlu2 %v5212_v53, %s4251_s8  ;;  %2899 = vadd.xlane.f32.xlu1 %v2898_v8  ;;  %v2874_v62 = vsel %vm120_vm2, %v5333_v30, 0.0  ;;  %v5340_v15 = vpop.eup %4085  ;;  %v2818_v53 = vsub.f32 %v5289_v24, %v2786_v60 }
0x1714   :  { %v2901_v48 = vsel %vm120_vm2, %v5340_v15, 0.0  ;;  %v5345_v56 = vpop.eup %4087 }
0x1715   :  { %v2841_v40 = vmul.f32 1.442695, %v2818_v53 }
0x1716   :  { %v2810_v36 = vpop.xlane.xlu0 %2809 }
0x1717   :  { %4089 = vpow2.f32 %v2841_v40  ;;  %v2826_v24 = vsub.f32 %v5297_v59, %v2810_v36  ;;  %v2811_v59 = vsub.f32 %v5252_v18, %v5301_v20 }
0x1718   :  { %4091 = vpow2.f32 %v2847_v25  ;;  %v4205_v25 = vld [vmem:[%s5570_s2 + $0x44] sm:$0xff] }
0x1719   :  { %v2857_v4 = vmul.f32 1.442695, %v2826_v24  ;;  %v2827_v46 = vmul.f32 1.442695, %v2811_v59 }
0x171b   :  { %2875 = vadd.xlane.f32.xlu1 %v2874_v62  ;;  %4093 = vpow2.f32 %v2857_v4 }
0x171c   :  { %4095 = vpow2.f32 %v2849_v22 }
0x171d   :  { %v5350_v12 = vpop.eup %4089  ;;  %4097 = vpow2.f32 %v2829_v16 }
0x171e   :  { %v2880_v3 = vsel %vm120_vm2, %v5350_v12, 0.0  ;;  %v5356_v19 = vpop.eup %4091  ;;  %4099 = vpow2.f32 %v2827_v46 }
0x171f   :  { %3088 = vrot.lane.b32.xlu0 %v5210_v10, %s4251_s8  ;;  %v2877_v10 = vsel %vm120_vm2, %v5345_v56, 0.0  ;;  %v2889_v28 = vsel %vm120_vm2, %v5356_v19, 0.0  ;;  %4101 = vpow2.f32 %v2831_v31 }
0x1720   :  { %4103 = vpow2.f32 %v2833_v57 }
0x1721   :  { %v5364_v17 = vpop.eup %4093 }
0x1722   :  { %v2904_v9 = vsel %vm120_vm2, %v5364_v17, 0.0  ;;  %v5370_v39 = vpop.eup %4095 }
0x1723   :  { %2902 = vadd.xlane.f32.xlu1 %v2901_v48  ;;  %v2892_v18 = vsel %vm120_vm2, %v5370_v39, 0.0  ;;  %v5374_v20 = vpop.eup %4097 }
0x1724   :  { %v2862_v47 = vsel %vm120_vm2, %v5374_v20, 0.0  ;;  %v5380_v61 = vpop.eup %4099 }
0x1725   :  { %v2859_v26 = vsel %vm120_vm2, %v5380_v61, 0.0  ;;  %v5386_v44 = vpop.eup %4101 }
0x1726   :  { %v2865_v51 = vsel %vm120_vm2, %v5386_v44, 0.0  ;;  %v5390_v41 = vpop.eup %4103 }
0x1727   :  { %v2868_v37 = vsel %vm120_vm2, %v5390_v41, 0.0 }
0x172b   :  { %2878 = vadd.xlane.f32.xlu1 %v2877_v10 }
0x1733   :  { %2881 = vadd.xlane.f32.xlu1 %v2880_v3 }
0x173c   :  { %2890 = vadd.xlane.f32.xlu2 %v2889_v28 }
0x1744   :  { %2905 = vadd.xlane.f32.xlu2 %v2904_v9 }
0x1749   :  { %2893 = vadd.xlane.f32.xlu0 %v2892_v18 }
0x174c   :  { %2863 = vadd.xlane.f32.xlu2 %v2862_v47  ;;  %2965 = vrot.lane.b32.xlu1 %v5187_v21, %s4251_s8 }
0x1751   :  { %2860 = vadd.xlane.f32.xlu0 %v2859_v26 }
0x1754   :  { %2866 = vadd.xlane.f32.xlu2 %v2865_v51 }
0x175c   :  { %2869 = vadd.xlane.f32.xlu2 %v2868_v37 }
0x1765   :  { %2967 = vrot.lane.b32.xlu0 %v5192_v14, %s4251_s8  ;;  %v4202_v14 = vld [vmem:[%s5570_s2 + $0x5c] sm:$0xff] }
0x176e   :  { %v2888_v21 = vpop.xlane.xlu2 %2887 }
0x176f   :  { %4105 = vrcp.f32 %v2888_v21 }
0x1775   :  { %v4106_v8 = vpop.eup %4105 }
0x1776   :  { %v3048_v6 = vpop.permute.xlu2 %3047  ;;  %v2897_v32 = vpop.xlane.xlu0 %2896  ;;  %v2932_v42 = vmul.f32 %v4106_v8, %v5310_v27 }
0x1777   :  { %3066 = vmatpush.bf16.msra.mxu0 %v3048_v6 }
0x1778   :  { %v2948_v62 = vpack.c.bf16 %v2932_v42, %v2932_v42 }
0x177a   :  { %v3042_v27 = vunpack.c.l.b16 %v2948_v62 }
0x177b   :  { %3371 = vmatpush.bf16.msrb.mxu0 %v4200_v58 }
0x177e   :  { %v2885_v29 = vpop.xlane.xlu1 %2884  ;;  %v2873_v60 = vpop.xlane.xlu0 %2872 }
0x177f   :  { %3372 = vmatpush.bf16.msrb.mxu0 %v4201_v34  ;;  %4107 = vrcp.f32 %v2885_v29 }
0x1780   :  { %4109 = vrcp.f32 %v2897_v32 }
0x1783   :  { %3373 = vmatpush.bf16.msrb.mxu0 %v4202_v14 }
0x1785   :  { %v4108_v54 = vpop.eup %4107 }
0x1786   :  { %v2931_v45 = vmul.f32 %v4108_v54, %v5322_v13  ;;  %v2900_v53 = vpop.xlane.xlu1 %2899  ;;  %v4110_v48 = vpop.eup %4109 }
0x1787   :  { %3374 = vmatpush.bf16.msrb.mxu0 %v4203_v50  ;;  %4111 = vrcp.f32 %v2900_v53  ;;  %v2935_v55 = vmul.f32 %v4110_v48, %v5314_v38  ;;  %v4206_v38 = vld [vmem:[%s5570_s2 + $0x3c] sm:$0xff] }
0x1788   :  { %v2947_v40 = vpack.c.bf16 %v2931_v45, %v2931_v45  ;;  %4113 = vrcp.f32 %v2873_v60 }
0x1789   :  { %v2951_v24 = vpack.c.bf16 %v2935_v55, %v2935_v55 }
0x178a   :  { %v3041_v10 = vunpack.c.l.b16 %v2947_v40 }
0x178b   :  { %3375 = vmatpush.bf16.msrb.mxu0 %v4204_v35  ;;  %v3082_v22 = vunpack.c.l.b16 %v2951_v24 }
0x178c   :  { %v3045_v13 = vpack.c.b16 %v3042_v27, %v3041_v10 }
0x178d   :  { %v4112_v36 = vpop.eup %4111 }
0x178e   :  { %v2936_v2 = vmul.f32 %v4112_v36, %v5327_v63  ;;  %3642 = vmatmul.msk.bf16.vlgmr.msra.gmra.mxu0 %vm120_vm2, %v3045_v13  ;;  %v2876_v3 = vpop.xlane.xlu1 %2875  ;;  %v4114_v11 = vpop.eup %4113  ;;  %v4207_v63 = vld [vmem:[%s5570_s2 + $0x34] sm:$0xff] }
0x178f   :  { %3376 = vmatpush.bf16.msrb.mxu0 %v4205_v25  ;;  %4115 = vrcp.f32 %v2876_v3  ;;  %v2927_v28 = vmul.f32 %v4114_v11, %v5318_v43 }
0x1790   :  { %v2952_v7 = vpack.c.bf16 %v2936_v2, %v2936_v2 }
0x1791   :  { %v3089_v4 = vpop.permute.xlu0 %3088  ;;  %v2943_v23 = vpack.c.bf16 %v2927_v28, %v2927_v28 }
0x1792   :  { %3107 = vmatpush.bf16.msra.mxu1 %v3089_v4  ;;  %v3083_v59 = vunpack.c.l.b16 %v2952_v7 }
0x1793   :  { %3377 = vmatpush.bf16.msrb.mxu0 %v4206_v38  ;;  %v3000_v52 = vunpack.c.l.b16 %v2943_v23 }
0x1794   :  { %v3086_v16 = vpack.c.b16 %v3083_v59, %v3082_v22 }
0x1795   :  { %v4116_v46 = vpop.eup %4115 }
0x1796   :  { %v2928_v9 = vmul.f32 %v4116_v46, %v5333_v30  ;;  %v2903_v31 = vpop.xlane.xlu1 %2902  ;;  %3644 = vmatmul.msk.bf16.vlgmr.msra.gmra.mxu1 %vm120_vm2, %v3086_v16  ;;  %v4208_v46 = vld [vmem:[%s5570_s2 + $0x1c] sm:$0xff] }
0x1797   :  { %3378 = vmatpush.bf16.msrb.mxu0 %v4207_v63 }
0x1798   :  { %v2944_v18 = vpack.c.bf16 %v2928_v9, %v2928_v9  ;;  %v4209_v9 = vld [vmem:[%s5570_s2 + $0x14] sm:$0xff] }
0x179a   :  { %v3001_v47 = vunpack.c.l.b16 %v2944_v18 }
0x179c   :  { %v3004_v57 = vpack.c.b16 %v3001_v47, %v3000_v52 }
0x179e   :  { %v2879_v26 = vpop.xlane.xlu1 %2878  ;;  %3640 = vmatmul.msk.bf16.vlgmr.msrb.gmra.mxu3 %vm120_vm2, %v3004_v57 }
0x179f   :  { %4117 = vrcp.f32 %v2879_v26 }
0x17a5   :  { %v4118_v51 = vpop.eup %4117 }
0x17a6   :  { %v2882_v43 = vpop.xlane.xlu1 %2881  ;;  %v2929_v37 = vmul.f32 %v4118_v51, %v5345_v56 }
0x17a7   :  { %4119 = vrcp.f32 %v2882_v43 }
0x17a8   :  { %v2945_v6 = vpack.c.bf16 %v2929_v37, %v2929_v37  ;;  %4121 = vrcp.f32 %v2903_v31 }
0x17aa   :  { %v3002_v32 = vunpack.c.l.b16 %v2945_v6 }
0x17ad   :  { %v4120_v21 = vpop.eup %4119 }
0x17ae   :  { %v2930_v30 = vmul.f32 %v4120_v21, %v5350_v12  ;;  %v4122_v42 = vpop.eup %4121 }
0x17af   :  { %v2891_v58 = vpop.xlane.xlu2 %2890  ;;  %v2937_v50 = vmul.f32 %v4122_v42, %v5340_v15 }
0x17b0   :  { %v2946_v34 = vpack.c.bf16 %v2930_v30, %v2930_v30  ;;  %4123 = vrcp.f32 %v2891_v58 }
0x17b1   :  { %v2953_v45 = vpack.c.bf16 %v2937_v50, %v2937_v50 }
0x17b2   :  { %v3003_v29 = vunpack.c.l.b16 %v2946_v34 }
0x17b3   :  { %v3084_v40 = vunpack.c.l.b16 %v2953_v45 }
0x17b4   :  { %v3005_v8 = vpack.c.b16 %v3003_v29, %v3002_v32 }
0x17b6   :  { %3641 = vmatmul.msk.bf16.gmra.mxu3 %vm120_vm2, %v3005_v8  ;;  %v4124_v56 = vpop.eup %4123 }
0x17b7   :  { %v2906_v14 = vpop.xlane.xlu2 %2905  ;;  %v2933_v12 = vmul.f32 %v4124_v56, %v5356_v19 }
0x17b8   :  { %4125 = vrcp.f32 %v2906_v14 }
0x17b9   :  { %v2949_v27 = vpack.c.bf16 %v2933_v12, %v2933_v12 }
0x17bb   :  { %v3043_v36 = vunpack.c.l.b16 %v2949_v27 }
0x17bc   :  { %v2894_v54 = vpop.xlane.xlu0 %2893 }
0x17bd   :  { %4127 = vrcp.f32 %v2894_v54 }
0x17be   :  { %v4126_v62 = vpop.eup %4125  ;;  %v2966_v59 = vpop.permute.xlu1 %2965 }
0x17bf   :  { %v2938_v60 = vmul.f32 %v4126_v62, %v5364_v17  ;;  %v2864_v53 = vpop.xlane.xlu2 %2863 }
0x17c1   :  { %v2954_v48 = vpack.c.bf16 %v2938_v60, %v2938_v60 }
0x17c3   :  { %v4128_v35 = vpop.eup %4127  ;;  %v3085_v55 = vunpack.c.l.b16 %v2954_v48 }
0x17c4   :  { %v2934_v10 = vmul.f32 %v4128_v35, %v5370_v39  ;;  %v2861_v25 = vpop.xlane.xlu0 %2860 }
0x17c5   :  { %v3087_v15 = vpack.c.b16 %v3085_v55, %v3084_v40  ;;  %4129 = vrcp.f32 %v2861_v25 }
0x17c6   :  { %v2950_v13 = vpack.c.bf16 %v2934_v10, %v2934_v10  ;;  %4131 = vrcp.f32 %v2864_v53 }
0x17c7   :  { %3645 = vmatmul.msk.bf16.gmra.mxu1 %vm120_vm2, %v3087_v15  ;;  %v2867_v2 = vpop.xlane.xlu2 %2866 }
0x17c8   :  { %v3044_v24 = vunpack.c.l.b16 %v2950_v13 }
0x17ca   :  { %v3046_v19 = vpack.c.b16 %v3044_v24, %v3043_v36 }
0x17cb   :  { %v4130_v17 = vpop.eup %4129 }
0x17cc   :  { %3643 = vmatmul.msk.bf16.gmra.mxu0 %vm120_vm2, %v3046_v19  ;;  %v4132_v3 = vpop.eup %4131  ;;  %v2923_v11 = vmul.f32 %v4130_v17, %v5380_v61 }
0x17cd   :  { %v2924_v4 = vmul.f32 %v4132_v3, %v5374_v20 }
0x17ce   :  { %v2939_v39 = vpack.c.bf16 %v2923_v11, %v2923_v11 }
0x17cf   :  { %v2870_v38 = vpop.xlane.xlu2 %2869  ;;  %v2940_v7 = vpack.c.bf16 %v2924_v4, %v2924_v4 }
0x17d0   :  { %4133 = vrcp.f32 %v2870_v38  ;;  %v2959_v28 = vunpack.c.l.b16 %v2939_v39 }
0x17d1   :  { %4135 = vrcp.f32 %v2867_v2  ;;  %v2960_v63 = vunpack.c.l.b16 %v2940_v7 }
0x17d3   :  { %v2963_v16 = vpack.c.b16 %v2960_v63, %v2959_v28 }
0x17d6   :  { %v4134_v61 = vpop.eup %4133 }
0x17d7   :  { %v2968_v22 = vpop.permute.xlu0 %2967  ;;  %v4136_v20 = vpop.eup %4135  ;;  %v2926_v23 = vmul.f32 %v4134_v61, %v5390_v41 }
0x17d8   :  { %2983 = vmatpush.bf16.msra.mxu2 %v2968_v22  ;;  %v2925_v31 = vmul.f32 %v4136_v20, %v5386_v44 }
0x17d9   :  { %v2942_v18 = vpack.c.bf16 %v2926_v23, %v2926_v23 }
0x17da   :  { %v2941_v52 = vpack.c.bf16 %v2925_v31, %v2925_v31 }
0x17db   :  { %v2962_v47 = vunpack.c.l.b16 %v2942_v18 }
0x17dc   :  { %2984 = vmatpush.bf16.msra.mxu2 %v2966_v59  ;;  %v2961_v57 = vunpack.c.l.b16 %v2941_v52  ;;  %v4210_v52 = vld [vmem:[#allocation2 + $0x2] ss:$0 sm:$0xff] }
0x17de   :  { %v2964_v26 = vpack.c.b16 %v2962_v47, %v2961_v57 }
0x17df   :  { %3638 = vmatmul.msk.bf16.vlgmr.msra.gmra.mxu2 %vm120_vm2, %v2963_v16 }
0x17e0   :  { %3193 = vmatpush.bf16.msrb.mxu2 %v4208_v46 }
0x17e4   :  { %3194 = vmatpush.bf16.msrb.mxu2 %v4209_v9 }
0x17ef   :  { %3639 = vmatmul.msk.bf16.gmra.mxu2 %vm120_vm2, %v2964_v26 }
0x180b   :  { %v3068_v43 = vpop.f32.mrf.mxu0 }
0x1813   :  { %v3070_v51 = vpop.f32.mrf.mxu0  ;;  %v3109_v37 = vpop.f32.mrf.mxu1 }
0x1814   :  { %v3833_v21 = vpack.i.bf16 %v3070_v51, %v3068_v43 }
0x1816   :  { %3834 = vrot.lane.b32.xlu0 %v3833_v21, %s4252_s9 }
0x181b   :  { %v3111_v41 = vpop.f32.mrf.mxu1 }
0x181c   :  { %v3838_v6 = vpack.i.bf16 %v3111_v41, %v3109_v37 }
0x181e   :  { %3839 = vrot.lane.b32.xlu1 %v3838_v6, %s4253_s10 }
0x1821   :  { %v3027_v30 = vpop.f32.mrf.mxu3 }
0x1829   :  { %v3029_v58 = vpop.f32.mrf.mxu3 }
0x182a   :  { %v3828_v44 = vpack.i.bf16 %v3029_v58, %v3027_v30 }
0x182c   :  { %3829 = vrot.lane.b32.xlu2 %v3828_v44, %s4245_s18 }
0x1839   :  { %v3032_v34 = vpop.f32.mrf.mxu3 }
0x1841   :  { %v3034_v32 = vpop.f32.mrf.mxu3 }
0x1842   :  { %v3848_v29 = vpack.i.bf16 %v3034_v32, %v3032_v34 }
0x1844   :  { %v3114_v8 = vpop.f32.mrf.mxu1  ;;  %3849 = vrot.lane.b32.xlu0 %v3848_v29, %s4245_s18 }
0x1849   :  { %v3073_v14 = vpop.f32.mrf.mxu0 }
0x184c   :  { %v3116_v42 = vpop.f32.mrf.mxu1 }
0x184d   :  { %v3853_v50 = vpack.i.bf16 %v3116_v42, %v3114_v8 }
0x184f   :  { %3854 = vrot.lane.b32.xlu0 %v3853_v50, %s4253_s10 }
0x1851   :  { %v3075_v54 = vpop.f32.mrf.mxu0 }
0x1852   :  { %v3843_v56 = vpack.i.bf16 %v3075_v54, %v3073_v14 }
0x1854   :  { %3844 = vrot.lane.b32.xlu1 %v3843_v56, %s4252_s9 }
0x1862   :  { %v2986_v62 = vpop.f32.mrf.mxu2 }
0x186a   :  { %v2988_v48 = vpop.f32.mrf.mxu2 }
0x1872   :  { %v2991_v17 = vpop.f32.mrf.mxu2 }
0x187a   :  { %v2993_v7 = vpop.f32.mrf.mxu2 }
0x1886   :  { %v3830_v45 = vpop.permute.xlu2 %3829 }
0x1887   :  { %v3832_v12 = vunpack.i.h.bf16 %v3830_v45  ;;  %v3831_v60 = vunpack.i.l.bf16 %v3830_v45 }
0x1888   :  { %v3835_v53 = vpop.permute.xlu0 %3834 }
0x1889   :  { %v3837_v35 = vunpack.i.h.bf16 %v3835_v53  ;;  %v3836_v40 = vunpack.i.l.bf16 %v3835_v53  ;;  %v3167_v27 = vsel %vm86_vm1, %v2986_v62, %v3831_v60  ;;  %v3168_v55 = vsel %vm86_vm1, %v2988_v48, %v3832_v12 }
0x188b   :  { %v3172_v15 = vsel %vm910_vm0, %v3168_v55, %v3837_v35  ;;  %v3171_v36 = vsel %vm910_vm0, %v3167_v27, %v3836_v40 }
0x1890   :  { %v3840_v10 = vpop.permute.xlu1 %3839 }
0x1891   :  { %v3842_v25 = vunpack.i.h.bf16 %v3840_v10  ;;  %v3841_v13 = vunpack.i.l.bf16 %v3840_v10 }
0x1893   :  { %v3175_v24 = vsel %vm915_vm3, %v3171_v36, %v3841_v13  ;;  %v3176_v19 = vsel %vm915_vm3, %v3172_v15, %v3842_v25 }
0x1894   :  { %v3179_v2 = vpack.c.bf16 %v3176_v19, %v3175_v24 }
0x1896   :  { %3646 = vmatmul.msk.bf16.vlgmr.msrb.gmra.mxu2 %vm120_vm2, %v3179_v2 }
0x18b6   :  { %v3850_v3 = vpop.permute.xlu0 %3849 }
0x18b7   :  { %v3852_v11 = vunpack.i.h.bf16 %v3850_v3  ;;  %v3851_v4 = vunpack.i.l.bf16 %v3850_v3 }
0x18b9   :  { %v3170_v59 = vsel %vm86_vm1, %v2993_v7, %v3852_v11  ;;  %v3169_v63 = vsel %vm86_vm1, %v2991_v17, %v3851_v4 }
0x18c1   :  { %v3855_v39 = vpop.permute.xlu0 %3854 }
0x18c2   :  { %v3857_v16 = vunpack.i.h.bf16 %v3855_v39  ;;  %v3856_v46 = vunpack.i.l.bf16 %v3855_v39 }
0x18c6   :  { %v3845_v38 = vpop.permute.xlu1 %3844 }
0x18c7   :  { %v3847_v22 = vunpack.i.h.bf16 %v3845_v38  ;;  %v3846_v28 = vunpack.i.l.bf16 %v3845_v38 }
0x18c9   :  { %v3173_v61 = vsel %vm910_vm0, %v3169_v63, %v3846_v28  ;;  %v3174_v20 = vsel %vm910_vm0, %v3170_v59, %v3847_v22 }
0x18ca   :  { %v3177_v23 = vsel %vm915_vm3, %v3173_v61, %v3856_v46  ;;  %v3178_v9 = vsel %vm915_vm3, %v3174_v20, %v3857_v16  ;;  %v4211_v61 = vld [vmem:[#allocation2 + $0x7] ss:$0 sm:$0xff] }
0x18cb   :  { %v3180_v31 = vpack.c.bf16 %v3178_v9, %v3177_v23 }
0x18cd   :  { %3647 = vmatmul.msk.bf16.gmra.mxu2 %vm120_vm2, %v3180_v31  ;;  %v4212_v31 = vld [vmem:[#allocation2 + $0x8] ss:$0 sm:$0xff] }
0x1919   :  { %v3196_v18 = vpop.f32.mrf.mxu2 }
0x191a   :  { %v3197_v47 = vadd.f32 %v4210_v52, %v3196_v18 }
0x191c   :  { %v5471_v57 = vadd.f32 %v3197_v47, %v5139_v1 }
0x191e   :  { %v3210_v26 = vsel %vm120_vm2, %v5471_v57, 0.0 }
0x191f   :  { %3211 = vadd.xlane.f32.xlu2 %v3210_v26 }
0x1921   :  { %v3198_v43 = vpop.f32.mrf.mxu2 }
0x1922   :  { %v3199_v51 = vadd.f32 %v4210_v52, %v3198_v43 }
0x1924   :  { %v5476_v37 = vadd.f32 %v3199_v51, %v5144_v49 }
0x1926   :  { %v3213_v21 = vsel %vm120_vm2, %v5476_v37, 0.0 }
0x1927   :  { %3214 = vadd.xlane.f32.xlu1 %v3213_v21 }
0x1950   :  { %v3201_v41 = vpop.f32.mrf.mxu2 }
0x1951   :  { %v3202_v6 = vadd.f32 %v4210_v52, %v3201_v41 }
0x1953   :  { %v5481_v30 = vadd.f32 %v3202_v6, %v5149_v0 }
0x1955   :  { %v3216_v1 = vsel %vm120_vm2, %v5481_v30, 0.0 }
0x1956   :  { %3217 = vadd.xlane.f32.xlu0 %v3216_v1 }
0x1958   :  { %v3203_v58 = vpop.f32.mrf.mxu2 }
0x1959   :  { %v3204_v44 = vadd.f32 %v4210_v52, %v3203_v58 }
0x195b   :  { %v5486_v34 = vadd.f32 %v3204_v44, %v5154_v5 }
0x195d   :  { %v3219_v49 = vsel %vm120_vm2, %v5486_v34, 0.0 }
0x195e   :  { %3220 = vadd.xlane.f32.xlu2 %v3219_v49 }
0x1992   :  { %v3212_v32 = vpop.xlane.xlu2 %3211 }
0x1993   :  { %v3222_v29 = vmul.f32 %v3212_v32, %v4312_v33 }
0x1995   :  { %v3226_v8 = vsub.f32 %v5471_v57, %v3222_v29 }
0x1997   :  { %v3230_v0 = vmul.f32 %v3226_v8, %v3226_v8 }
0x1999   :  { %v3234_v14 = vsel %vm120_vm2, %v3230_v0, 0.0 }
0x199a   :  { %v3215_v42 = vpop.xlane.xlu1 %3214  ;;  %3235 = vadd.xlane.f32.xlu1 %v3234_v14 }
0x199b   :  { %v3223_v50 = vmul.f32 %v3215_v42, %v4312_v33 }
0x199d   :  { %v3227_v54 = vsub.f32 %v5476_v37, %v3223_v50 }
0x199f   :  { %v3231_v5 = vmul.f32 %v3227_v54, %v3227_v54 }
0x19a1   :  { %v3237_v56 = vsel %vm120_vm2, %v3231_v5, 0.0 }
0x19a2   :  { %3238 = vadd.xlane.f32.xlu0 %v3237_v56 }
0x19c9   :  { %v3218_v62 = vpop.xlane.xlu0 %3217 }
0x19ca   :  { %v3224_v45 = vmul.f32 %v3218_v62, %v4312_v33 }
0x19cc   :  { %v5498_v12 = vsub.f32 %v5481_v30, %v3224_v45 }
0x19ce   :  { %v3232_v60 = vmul.f32 %v5498_v12, %v5498_v12 }
0x19d0   :  { %v3240_v53 = vsel %vm120_vm2, %v3232_v60, 0.0 }
0x19d1   :  { %3241 = vadd.xlane.f32.xlu2 %v3240_v53  ;;  %v3221_v48 = vpop.xlane.xlu2 %3220 }
0x19d2   :  { %v3225_v35 = vmul.f32 %v3221_v48, %v4312_v33 }
0x19d4   :  { %v5505_v40 = vsub.f32 %v5486_v34, %v3225_v35 }
0x19d6   :  { %v3233_v27 = vmul.f32 %v5505_v40, %v5505_v40 }
0x19d8   :  { %v3243_v55 = vsel %vm120_vm2, %v3233_v27, 0.0 }
0x19d9   :  { %3244 = vadd.xlane.f32.xlu1 %v3243_v55 }
0x1a0d   :  { %v3236_v10 = vpop.xlane.xlu1 %3235 }
0x1a0e   :  { %v3246_v25 = vmul.f32 %v3236_v10, %v4312_v33  ;;  %v4213_v10 = vld [vmem:[#allocation2 + $0x3] ss:$0 sm:$0xff] }
0x1a10   :  { %v3250_v13 = vadd.f32 1e-05, %v3246_v25 }
0x1a12   :  { %4137 = vrsqrt.f32 %v3250_v13  ;;  %vm3260_vm0 = vweird.f32 %v3250_v13 }
0x1a15   :  { %v3239_v15 = vpop.xlane.xlu0 %3238 }
0x1a16   :  { %v3247_v36 = vmul.f32 %v3239_v15, %v4312_v33 }
0x1a18   :  { %v4138_v24 = vpop.eup %4137  ;;  %v3251_v19 = vadd.f32 1e-05, %v3247_v36 }
0x1a19   :  { %v3255_v2 = vmul.f32 %v4138_v24, %v3250_v13  ;;  %vm3261_vm1 = vweird.f32 %v4138_v24 }
0x1a1a   :  { %4139 = vrsqrt.f32 %v3251_v19  ;;  %vm3262_vm3 = vmor %vm3260_vm0, %vm3261_vm1  ;;  %vm3270_vm5 = vweird.f32 %v3251_v19 }
0x1a1b   :  { %v3256_v17 = vmul.f32 %v4138_v24, %v3255_v2 }
0x1a1d   :  { %v3257_v3 = vmul.f32 0.5, %v3256_v17 }
0x1a1f   :  { %v3258_v11 = vsub.f32 1.5, %v3257_v3 }
0x1a20   :  { %v4140_v4 = vpop.eup %4139 }
0x1a21   :  { %v3259_v39 = vmul.f32 %v4138_v24, %v3258_v11  ;;  %v3265_v38 = vmul.f32 %v4140_v4, %v3251_v19  ;;  %vm3271_vm4 = vweird.f32 %v4140_v4 }
0x1a22   :  { %vm3272_vm6 = vmor %vm3270_vm5, %vm3271_vm4 }
0x1a23   :  { %v3266_v7 = vmul.f32 %v4140_v4, %v3265_v38  ;;  %v3263_v22 = vsel %vm3262_vm3, %v4138_v24, %v3259_v39 }
0x1a24   :  { %v3294_v63 = vmul.f32 %v3263_v22, %v3226_v8 }
0x1a25   :  { %v3267_v28 = vmul.f32 0.5, %v3266_v7 }
0x1a26   :  { %v3298_v20 = vmul.f32 %v4211_v61, %v3294_v63 }
0x1a27   :  { %v3268_v59 = vsub.f32 1.5, %v3267_v28 }
0x1a28   :  { %v3302_v18 = vadd.f32 %v4212_v31, %v3298_v20 }
0x1a29   :  { %v3269_v16 = vmul.f32 %v4140_v4, %v3268_v59 }
0x1a2b   :  { %v3273_v46 = vsel %vm3272_vm6, %v4140_v4, %v3269_v16 }
0x1a2c   :  { %v3295_v23 = vmul.f32 %v3273_v46, %v3227_v54 }
0x1a2e   :  { %v3299_v9 = vmul.f32 %v4211_v61, %v3295_v23 }
0x1a30   :  { %v3303_v52 = vadd.f32 %v4212_v31, %v3299_v9 }
0x1a32   :  { %v3306_v47 = vpack.c.bf16 %v3303_v52, %v3302_v18 }
0x1a34   :  { %3648 = vmatmul.msk.bf16.vlgmr.msra.gmra.mxu3 %vm120_vm2, %v3306_v47 }
0x1a44   :  { %v3242_v26 = vpop.xlane.xlu2 %3241 }
0x1a45   :  { %v3248_v43 = vmul.f32 %v3242_v26, %v4312_v33 }
0x1a47   :  { %v3252_v51 = vadd.f32 1e-05, %v3248_v43 }
0x1a49   :  { %4141 = vrsqrt.f32 %v3252_v51  ;;  %vm3280_vm8 = vweird.f32 %v3252_v51 }
0x1a4c   :  { %v3245_v21 = vpop.xlane.xlu1 %3244 }
0x1a4d   :  { %v3249_v41 = vmul.f32 %v3245_v21, %v4312_v33 }
0x1a4f   :  { %v4142_v6 = vpop.eup %4141  ;;  %v3253_v1 = vadd.f32 1e-05, %v3249_v41 }
0x1a50   :  { %v3275_v58 = vmul.f32 %v4142_v6, %v3252_v51  ;;  %vm3281_vm7 = vweird.f32 %v4142_v6 }
0x1a51   :  { %4143 = vrsqrt.f32 %v3253_v1  ;;  %vm3282_vm9 = vmor %vm3280_vm8, %vm3281_vm7  ;;  %vm3290_vm11 = vweird.f32 %v3253_v1 }
0x1a52   :  { %v3276_v44 = vmul.f32 %v4142_v6, %v3275_v58 }
0x1a54   :  { %v3277_v49 = vmul.f32 0.5, %v3276_v44 }
0x1a56   :  { %v3278_v32 = vsub.f32 1.5, %v3277_v49 }
0x1a57   :  { %v4144_v29 = vpop.eup %4143 }
0x1a58   :  { %v3279_v8 = vmul.f32 %v4142_v6, %v3278_v32  ;;  %v3285_v0 = vmul.f32 %v4144_v29, %v3253_v1  ;;  %vm3291_vm10 = vweird.f32 %v4144_v29 }
0x1a59   :  { %vm3292_vm12 = vmor %vm3290_vm11, %vm3291_vm10 }
0x1a5a   :  { %v3286_v14 = vmul.f32 %v4144_v29, %v3285_v0  ;;  %v3283_v42 = vsel %vm3282_vm9, %v4142_v6, %v3279_v8 }
0x1a5b   :  { %v3296_v5 = vmul.f32 %v3283_v42, %v5498_v12 }
0x1a5c   :  { %v3287_v50 = vmul.f32 0.5, %v3286_v14 }
0x1a5d   :  { %v3300_v60 = vmul.f32 %v4211_v61, %v3296_v5 }
0x1a5e   :  { %v3288_v54 = vsub.f32 1.5, %v3287_v50  ;;  %v4214_v50 = vld [vmem:[#allocation2 + $0x4] ss:$0 sm:$0xff] }
0x1a5f   :  { %v3304_v48 = vadd.f32 %v4212_v31, %v3300_v60 }
0x1a60   :  { %v3289_v56 = vmul.f32 %v4144_v29, %v3288_v54 }
0x1a62   :  { %v3293_v62 = vsel %vm3292_vm12, %v4144_v29, %v3289_v56 }
0x1a63   :  { %v3297_v45 = vmul.f32 %v3293_v62, %v5505_v40 }
0x1a65   :  { %v3301_v53 = vmul.f32 %v4211_v61, %v3297_v45 }
0x1a67   :  { %v3305_v35 = vadd.f32 %v4212_v31, %v3301_v53 }
0x1a69   :  { %v3307_v27 = vpack.c.bf16 %v3305_v35, %v3304_v48 }
0x1a6b   :  { %3649 = vmatmul.msk.bf16.gmra.mxu3 %vm120_vm2, %v3307_v27 }
0x1ab7   :  { %v3323_v55 = vpop.f32.mrf.mxu3 }
0x1ab8   :  { %v3324_v25 = vadd.f32 %v4213_v10, %v3323_v55 }
0x1aba   :  { %v3337_v13 = vmul.f32 0.044715, %v3324_v25  ;;  %v3333_v22 = vmul.f32 0.5, %v3324_v25 }
0x1abc   :  { %v3341_v15 = vmul.f32 %v3337_v13, %v3324_v25 }
0x1abe   :  { %v3345_v36 = vmul.f32 %v3341_v15, %v3324_v25 }
0x1abf   :  { %v3325_v12 = vpop.f32.mrf.mxu3 }
0x1ac0   :  { %v3349_v24 = vadd.f32 %v3345_v36, %v3324_v25  ;;  %v3326_v19 = vadd.f32 %v4213_v10, %v3325_v12 }
0x1ac2   :  { %v3338_v2 = vmul.f32 0.044715, %v3326_v19  ;;  %v3353_v17 = vmul.f32 0.7978846, %v3349_v24  ;;  %v3334_v28 = vmul.f32 0.5, %v3326_v19 }
0x1ac4   :  { %v3342_v3 = vmul.f32 %v3338_v2, %v3326_v19  ;;  %4145 = vtanh.f32 %v3353_v17 }
0x1ac6   :  { %v3346_v40 = vmul.f32 %v3342_v3, %v3326_v19 }
0x1ac8   :  { %v3350_v11 = vadd.f32 %v3346_v40, %v3326_v19 }
0x1aca   :  { %v3354_v4 = vmul.f32 0.7978846, %v3350_v11  ;;  %v4146_v39 = vpop.eup %4145 }
0x1acb   :  { %v3361_v38 = vadd.f32 1.0, %v4146_v39 }
0x1acc   :  { %4147 = vtanh.f32 %v3354_v4 }
0x1acd   :  { %v3365_v63 = vmul.f32 %v3361_v38, %v3333_v22 }
0x1ad2   :  { %v4148_v7 = vpop.eup %4147 }
0x1ad3   :  { %v3362_v59 = vadd.f32 1.0, %v4148_v7 }
0x1ad5   :  { %v3366_v16 = vmul.f32 %v3362_v59, %v3334_v28 }
0x1ad7   :  { %v3369_v46 = vpack.c.bf16 %v3366_v16, %v3365_v63 }
0x1ad9   :  { %3379 = vmatmul.bf16.vlgmr.msrb.gmra.mxu0 %v3369_v46 }
0x1aee   :  { %v3328_v61 = vpop.f32.mrf.mxu3 }
0x1aef   :  { %v3329_v20 = vadd.f32 %v4213_v10, %v3328_v61 }
0x1af1   :  { %v3339_v23 = vmul.f32 0.044715, %v3329_v20  ;;  %v3335_v49 = vmul.f32 0.5, %v3329_v20 }
0x1af3   :  { %v3343_v9 = vmul.f32 %v3339_v23, %v3329_v20 }
0x1af5   :  { %v3347_v31 = vmul.f32 %v3343_v9, %v3329_v20 }
0x1af6   :  { %v3330_v18 = vpop.f32.mrf.mxu3 }
0x1af7   :  { %v3331_v52 = vadd.f32 %v4213_v10, %v3330_v18  ;;  %v3351_v47 = vadd.f32 %v3347_v31, %v3329_v20 }
0x1af9   :  { %v3340_v26 = vmul.f32 0.044715, %v3331_v52  ;;  %v3355_v51 = vmul.f32 0.7978846, %v3351_v47  ;;  %v3336_v32 = vmul.f32 0.5, %v3331_v52 }
0x1afb   :  { %v3344_v43 = vmul.f32 %v3340_v26, %v3331_v52  ;;  %4149 = vtanh.f32 %v3355_v51 }
0x1afd   :  { %v3348_v21 = vmul.f32 %v3344_v43, %v3331_v52 }
0x1aff   :  { %v3352_v41 = vadd.f32 %v3348_v21, %v3331_v52 }
0x1b01   :  { %v3356_v6 = vmul.f32 0.7978846, %v3352_v41  ;;  %v4150_v1 = vpop.eup %4149 }
0x1b02   :  { %v3363_v58 = vadd.f32 1.0, %v4150_v1 }
0x1b03   :  { %4151 = vtanh.f32 %v3356_v6 }
0x1b04   :  { %v3367_v8 = vmul.f32 %v3363_v58, %v3335_v49 }
0x1b09   :  { %v4152_v44 = vpop.eup %4151 }
0x1b0a   :  { %v3364_v29 = vadd.f32 1.0, %v4152_v44 }
0x1b0c   :  { %v3368_v0 = vmul.f32 %v3364_v29, %v3336_v32 }
0x1b0e   :  { %v3370_v14 = vpack.c.bf16 %v3368_v0, %v3367_v8 }
0x1b10   :  { %3384 = vmatmul.bf16.gmra.mxu0 %v3370_v14 }
0x1b56   :  { %v3380_v42 = vpop.f32.mrf.mxu0 }
0x1b57   :  { %v3381_v54 = vadd.f32 %v4214_v50, %v3380_v42 }
0x1b59   :  { %v3390_v5 = vadd.f32 %v3381_v54, %v5471_v57  ;;  %v42_v54 = vld [vmem:[#allocation2 + $0xb] sm:$0x1] }
0x1b5b   :  { %v3394_v56 = vsel %vm120_vm2, %v3390_v5, 0.0 }
0x1b5c   :  { %3395 = vadd.xlane.f32.xlu1 %v3394_v56 }
0x1b5e   :  { %v3382_v62 = vpop.f32.mrf.mxu0 }
0x1b5f   :  { %v3383_v48 = vadd.f32 %v4214_v50, %v3382_v62  ;;  %v4254_v62 = vmov 0  }
0x1b60   :  { %3858 = vset.pattern.permute.xlu1 %v4254_v62  ;;  %3859 = vset.pattern.permute.xlu0 %v4254_v62 }
0x1b61   :  { %v3391_v55 = vadd.f32 %v3383_v48, %v5476_v37 }
0x1b63   :  { %v3397_v13 = vsel %vm120_vm2, %v3391_v55, 0.0 }
0x1b8d   :  { %v3385_v45 = vpop.f32.mrf.mxu0 }
0x1b8e   :  { %v3386_v60 = vadd.f32 %v4214_v50, %v3385_v45 }
0x1b90   :  { %v3392_v53 = vadd.f32 %v3386_v60, %v5481_v30 }
0x1b92   :  { %v3400_v35 = vsel %vm120_vm2, %v3392_v53, 0.0 }
0x1b93   :  { %3401 = vadd.xlane.f32.xlu0 %v3400_v35 }
0x1b95   :  { %v3387_v27 = vpop.f32.mrf.mxu0 }
0x1b96   :  { %v3388_v10 = vadd.f32 %v4214_v50, %v3387_v27 }
0x1b98   :  { %v3393_v25 = vadd.f32 %v3388_v10, %v5486_v34 }
0x1b9a   :  { %v3403_v57 = vsel %vm120_vm2, %v3393_v25, 0.0 }
0x1b9b   :  { %3404 = vadd.xlane.f32.xlu2 %v3403_v57  ;;  %3398 = vadd.xlane.f32.xlu0 %v3397_v13 }
0x1bcf   :  { %v3396_v15 = vpop.xlane.xlu1 %3395 }
0x1bd0   :  { %v3406_v36 = vmul.f32 %v3396_v15, %v4312_v33  ;;  %v4215_v15 = vld [vmem:[#allocation2 + $0x9] ss:$0 sm:$0xff] }
0x1bd2   :  { %v5527_v30 = vsub.f32 %v3390_v5, %v3406_v36 }
0x1bd4   :  { %v3414_v12 = vmul.f32 %v5527_v30, %v5527_v30 }
0x1bd6   :  { %v3418_v24 = vsel %vm120_vm2, %v3414_v12, 0.0 }
0x1bd7   :  { %3419 = vadd.xlane.f32.xlu0 %v3418_v24 }
0x1c06   :  { %v3402_v37 = vpop.xlane.xlu0 %3401 }
0x1c07   :  { %v3408_v34 = vmul.f32 %v3402_v37, %v4312_v33 }
0x1c09   :  { %v5533_v19 = vsub.f32 %v3392_v53, %v3408_v34  ;;  %v4216_v34 = vld [vmem:[#allocation2 + $0xa] ss:$0 sm:$0xff] }
0x1c0b   :  { %v3416_v2 = vmul.f32 %v5533_v19, %v5533_v19 }
0x1c0d   :  { %v3424_v17 = vsel %vm120_vm2, %v3416_v2, 0.0 }
0x1c0e   :  { %v3405_v3 = vpop.xlane.xlu2 %3404  ;;  %3425 = vadd.xlane.f32.xlu2 %v3424_v17  ;;  %v3399_v40 = vpop.xlane.xlu0 %3398 }
0x1c0f   :  { %v3409_v11 = vmul.f32 %v3405_v3, %v4312_v33  ;;  %v3407_v4 = vmul.f32 %v3399_v40, %v4312_v33 }
0x1c11   :  { %v5540_v39 = vsub.f32 %v3393_v25, %v3409_v11  ;;  %v5542_v38 = vsub.f32 %v3391_v55, %v3407_v4 }
0x1c13   :  { %v3417_v7 = vmul.f32 %v5540_v39, %v5540_v39  ;;  %v3415_v22 = vmul.f32 %v5542_v38, %v5542_v38 }
0x1c15   :  { %v3427_v28 = vsel %vm120_vm2, %v3417_v7, 0.0  ;;  %v3421_v59 = vsel %vm120_vm2, %v3415_v22, 0.0 }
0x1c16   :  { %3428 = vadd.xlane.f32.xlu1 %v3427_v28  ;;  %3422 = vadd.xlane.f32.xlu2 %v3421_v59 }
0x1c2f   :  { %3494 = vperm.xlu1 %3858, %v42_v54  }
0x1c4a   :  { %v3420_v63 = vpop.xlane.xlu0 %3419 }
0x1c4b   :  { %v3430_v16 = vmul.f32 %v3420_v63, %v4312_v33 }
0x1c4d   :  { %v3434_v46 = vadd.f32 1e-05, %v3430_v16 }
0x1c4f   :  { %4153 = vrsqrt.f32 %v3434_v46  ;;  %vm3444_vm3 = vweird.f32 %v3434_v46 }
0x1c55   :  { %v4154_v9 = vpop.eup %4153 }
0x1c56   :  { %v3439_v26 = vmul.f32 %v4154_v9, %v3434_v46  ;;  %vm3445_vm1 = vweird.f32 %v4154_v9 }
0x1c57   :  { %vm3446_vm5 = vmor %vm3444_vm3, %vm3445_vm1 }
0x1c58   :  { %v3440_v6 = vmul.f32 %v4154_v9, %v3439_v26 }
0x1c5a   :  { %v3441_v44 = vmul.f32 0.5, %v3440_v6 }
0x1c5c   :  { %v3442_v42 = vsub.f32 1.5, %v3441_v44 }
0x1c5e   :  { %v3443_v60 = vmul.f32 %v4154_v9, %v3442_v42 }
0x1c60   :  { %v3447_v10 = vsel %vm3446_vm5, %v4154_v9, %v3443_v60 }
0x1c61   :  { %v3478_v37 = vmul.f32 %v3447_v10, %v5527_v30 }
0x1c63   :  { %v3482_v40 = vmul.f32 %v4215_v15, %v3478_v37 }
0x1c65   :  { %v3486_v7 = vadd.f32 %v4216_v34, %v3482_v40 }
0x1c81   :  { %v3426_v61 = vpop.xlane.xlu2 %3425 }
0x1c82   :  { %v3432_v20 = vmul.f32 %v3426_v61, %v4312_v33 }
0x1c84   :  { %v3436_v23 = vadd.f32 1e-05, %v3432_v20 }
0x1c86   :  { %4155 = vrsqrt.f32 %v3436_v23  ;;  %vm3464_vm14 = vweird.f32 %v3436_v23 }
0x1c89   :  { %v3429_v31 = vpop.xlane.xlu1 %3428  ;;  %v3423_v18 = vpop.xlane.xlu2 %3422 }
0x1c8a   :  { %v3433_v52 = vmul.f32 %v3429_v31, %v4312_v33  ;;  %v3431_v47 = vmul.f32 %v3423_v18, %v4312_v33 }
0x1c8c   :  { %v4156_v43 = vpop.eup %4155  ;;  %v3437_v51 = vadd.f32 1e-05, %v3433_v52  ;;  %v3435_v21 = vadd.f32 1e-05, %v3431_v47 }
0x1c8d   :  { %v3459_v41 = vmul.f32 %v4156_v43, %v3436_v23  ;;  %vm3465_vm13 = vweird.f32 %v4156_v43 }
0x1c8e   :  { %4157 = vrsqrt.f32 %v3437_v51  ;;  %vm3466_vm15 = vmor %vm3464_vm14, %vm3465_vm13  ;;  %vm3474_vm6 = vweird.f32 %v3437_v51  ;;  %vm3454_vm8 = vweird.f32 %v3435_v21 }
0x1c8f   :  { %v3460_v1 = vmul.f32 %v4156_v43, %v3459_v41  ;;  %4159 = vrsqrt.f32 %v3435_v21 }
0x1c91   :  { %v3461_v58 = vmul.f32 0.5, %v3460_v1 }
0x1c93   :  { %v3462_v49 = vsub.f32 1.5, %v3461_v58 }
0x1c94   :  { %v4158_v32 = vpop.eup %4157 }
0x1c95   :  { %v4160_v29 = vpop.eup %4159  ;;  %v3463_v8 = vmul.f32 %v4156_v43, %v3462_v49  ;;  %v3469_v0 = vmul.f32 %v4158_v32, %v3437_v51  ;;  %vm3475_vm0 = vweird.f32 %v4158_v32 }
0x1c96   :  { %v3449_v14 = vmul.f32 %v4160_v29, %v3435_v21  ;;  %vm3455_vm4 = vweird.f32 %v4160_v29  ;;  %vm3476_vm7 = vmor %vm3474_vm6, %vm3475_vm0 }
0x1c97   :  { %v3470_v33 = vmul.f32 %v4158_v32, %v3469_v0  ;;  %v3467_v5 = vsel %vm3466_vm15, %v4156_v43, %v3463_v8  ;;  %vm3456_vm9 = vmor %vm3454_vm8, %vm3455_vm4 }
0x1c98   :  { %v3450_v50 = vmul.f32 %v4160_v29, %v3449_v14  ;;  %v3480_v48 = vmul.f32 %v3467_v5, %v5533_v19 }
0x1c99   :  { %v3471_v56 = vmul.f32 0.5, %v3470_v33 }
0x1c9a   :  { %v3451_v45 = vmul.f32 0.5, %v3450_v50  ;;  %v3484_v36 = vmul.f32 %v4215_v15, %v3480_v48 }
0x1c9b   :  { %v3472_v53 = vsub.f32 1.5, %v3471_v56 }
0x1c9c   :  { %v3452_v35 = vsub.f32 1.5, %v3451_v45  ;;  %v3488_v19 = vadd.f32 %v4216_v34, %v3484_v36 }
0x1c9d   :  { %v3473_v27 = vmul.f32 %v4158_v32, %v3472_v53 }
0x1c9e   :  { %v3453_v55 = vmul.f32 %v4160_v29, %v3452_v35 }
0x1c9f   :  { %v3477_v25 = vsel %vm3476_vm7, %v4158_v32, %v3473_v27 }
0x1ca0   :  { %v3481_v57 = vmul.f32 %v3477_v25, %v5540_v39  ;;  %v3457_v13 = vsel %vm3456_vm9, %v4160_v29, %v3453_v55 }
0x1ca1   :  { %v3479_v12 = vmul.f32 %v3457_v13, %v5542_v38  ;;  %v78_v38 = vld [vmem:[%s5570_s2 + $0x74] sm:$0x1]  ;;  %v3495_v30 = vpop.permute.xlu1 %3494 }
0x1ca2   :  { %v3485_v24 = vmul.f32 %v4215_v15, %v3481_v57 }
0x1ca3   :  { %v3483_v17 = vmul.f32 %v4215_v15, %v3479_v12 }
0x1ca4   :  { %v3489_v2 = vadd.f32 %v4216_v34, %v3485_v24 }
0x1ca5   :  { %v3487_v4 = vadd.f32 %v4216_v34, %v3483_v17 }
0x1ca6   :  { %v3491_v3 = vpack.c.bf16 %v3489_v2, %v3488_v19 }
0x1ca7   :  { %v3490_v39 = vpack.c.bf16 %v3487_v4, %v3486_v7 }
0x1ca8   :  { %v3504_v11 = vsel %vm120_vm2, %v3491_v3, 0 }
0x1ca9   :  { %3512 = vmatpush.bf16.xpose.msrb.mxu1 %v3504_v11  ;;  %v3501_v22 = vsel %vm120_vm2, %v3490_v39, 0 }
0x1cb1   :  { %3513 = vmatpush.bf16.xpose.msrb.mxu1 %v3501_v22 }
0x1cb8   :  { %3650 = vmatmul.msk.bf16.vlgmr.msrb.gmra.mxu1 %vm120_vm2, %v78_v38 }
0x1d35   :  { %v3515_v28 = vpop.f32.mrf.mxu1 }
0x1d36   :  { %v3516_v59 = vadd.f32 %v3515_v28, %v3495_v30 }
0x1d38   :  { %v3519_v63 = vsel %vm120_vm2, %v3516_v59, 0.0 }
0x1d39   :  { %3520 = vst [vmem:[%s5571_s3] sm:$0x1] %v3519_v63 }
0x1d3d   :  { %v3517_v16 = vpop.f32.mrf.mxu1 }
0x1d3e   :  { %3525 = vsyncpa [#allocation3], 1 }

</bundles_post_ra>
